<compile_context>
chip_gen: v6e
topology: v6e:2x2x1
jax: 0.10.0
libtpu: 0.0.40
codegen_flags: <defaults>
</compile_context>

<pallas_src>
import functools

import numpy as np
import jax
import jax.numpy as jnp
from jax import lax
from jax.experimental import pallas as pl
from jax.experimental.pallas import tpu as pltpu


# ---------------------------------------------------------------------------
# Fused forward kernel: 5 MXU matmuls + VPU epilogue, everything stays in VMEM
# ---------------------------------------------------------------------------
def fused_forward_kernel(x_ref,                               # (bt, W)              f32
                         w1_ref, b1_ref,                      # (W, (W+4)*32) bf16, (1, (W+4)*32) f32
                         w2_ref, b2_ref,                      # ((W+4)*32, W*64) bf16, (1, W*64) f32
                         wf1_ref, bf1_ref, s1_ref, t1_ref,    # (W*64, 256) bf16, (1, 256) f32 x3
                         wf2_ref, bf2_ref, s2_ref, t2_ref,    # (256, 128)  bf16, (1, 128) f32 x3
                         wf3_ref, bf3_ref, s3_ref, t3_ref,    # (128, 64)   bf16, (1, 64)  f32 x3
                         wf4_ref, bf4_ref,                    # (1, 64) f32 (already / T), (1, 1) f32
                         o_ref):                              # (bt, 1) f32
    f32, bf16 = jnp.float32, jnp.bfloat16

    x = x_ref[...].astype(bf16)                               # (bt, W)

    # conv1 + ReLU as ONE banded matmul -> (bt, (W+4)*32); halo columns are exactly 0
    h = jnp.dot(x, w1_ref[...], preferred_element_type=f32) + b1_ref[...]
    h = jnp.maximum(h, 0.0)

    # conv2 + ReLU as ONE banded matmul -> (bt, W*64), already in fc1's flat order
    h = jnp.dot(h.astype(bf16), w2_ref[...], preferred_element_type=f32) + b2_ref[...]
    h = jnp.maximum(h, 0.0)

    # fc1 + bn1 + relu   (single K = W*64 contraction)
    h = jnp.dot(h.astype(bf16), wf1_ref[...], preferred_element_type=f32) + bf1_ref[...]
    h = jnp.maximum(h * s1_ref[...] + t1_ref[...], 0.0)

    # fc2 + bn2 + relu
    h = jnp.dot(h.astype(bf16), wf2_ref[...], preferred_element_type=f32) + bf2_ref[...]
    h = jnp.maximum(h * s2_ref[...] + t2_ref[...], 0.0)

    # fc3 + bn3 + relu          (dropouts are eval-mode identities)
    h = jnp.dot(h.astype(bf16), wf3_ref[...], preferred_element_type=f32) + bf3_ref[...]
    h = jnp.maximum(h * s3_ref[...] + t3_ref[...], 0.0)

    # fc4 (64 -> 1) on VPU + lane reduce; 1/temperature already folded into wf4/bf4
    z = jnp.sum(h * wf4_ref[...], axis=-1, keepdims=True) + bf4_ref[...]

    # numerically-stable sigmoid (exp on the EUP, no inf intermediates)
    ez = jnp.exp(-jnp.abs(z))
    o_ref[...] = jnp.where(z >= 0, 1.0 / (1.0 + ez), ez / (1.0 + ez))


# ---------------------------------------------------------------------------
# Wrapper: single pallas_call with a batch-tiled "parallel" grid
# ---------------------------------------------------------------------------
def _round_up(n, m):
    return ((n + m - 1) // m) * m


def _resident_spec(a):
    nd = a.ndim
    return pl.BlockSpec(a.shape, lambda i, _nd=nd: (0,) * _nd)   # constant index -> stays in VMEM


@functools.partial(jax.jit, static_argnames=("b_tile",))
def bayesian_cnn_forward(x, prep, b_tile=256):
    """x: (B, window_size) f32; prep: output of prepare_params().  Returns (B, 1) f32."""
    B, W = x.shape
    x = x.astype(jnp.float32)

    if B <= b_tile:
        bt, Bp = B, B                      # single tile, block == full array (no padding)
    else:
        bt = b_tile                        # multiple of 8 by construction (256 default)
        Bp = _round_up(B, bt)
        if Bp != B:
            x = jnp.pad(x, ((0, Bp - B), (0, 0)))

    out = pl.pallas_call(
        fused_forward_kernel,
        out_shape=jax.ShapeDtypeStruct((Bp, 1), jnp.float32),
        grid=(Bp // bt,),
        in_specs=[pl.BlockSpec((bt, W), lambda i: (i, 0))]
                 + [_resident_spec(p) for p in prep],
        out_specs=pl.BlockSpec((bt, 1), lambda i: (i, 0)),
        compiler_params=pltpu.CompilerParams(dimension_semantics=("parallel",)),
    )(x, *prep)
    return out[:B]


# ---------------------------------------------------------------------------
# One-time parameter preparation: banded conv matrices, fc1 permutation,
# BatchNorm(eval) folding, 1/T folding, bf16 casting.  Runs once, off hot path.
# ---------------------------------------------------------------------------
def prepare_params(params, window_size, temperature, eps=1e-5, weights_dtype=jnp.bfloat16):
    W = window_size
    WP = W + 4
    p = {k: np.asarray(v, np.float32) for k, v in params.items()}

    # conv1 as a banded matmul producing the haloed (W+4)*32-wide activation row.
    # Halo positions (s in {0,1,W+2,W+3}) have zero columns + zero bias -> relu gives the
    # exact zeros that conv2's 'same' padding expects.
    w1 = p["conv1_w"][:, 0, :].T                         # (5, 32)  [tap, c_out]
    w1band = np.zeros((W, WP * 32), np.float32)
    b1vec = np.zeros((WP * 32,), np.float32)
    for s in range(2, W + 2):                            # valid conv1 output positions
        b1vec[s * 32:(s + 1) * 32] = p["conv1_b"]
        for tap in range(5):
            i = s - 4 + tap                              # input sample feeding (pos s-2, tap)
            if 0 <= i < W:
                w1band[i, s * 32:(s + 1) * 32] = w1[tap]

    # conv2 as a banded matmul: ((W+4)*32) -> (W*64); output column order is t*64 + c_out,
    # i.e. exactly the flat order fc1 consumes (after its own permutation below).
    w2 = np.transpose(p["conv2_w"], (2, 1, 0))           # (5, 32, 64)  [tap, c_in, c_out]
    w2band = np.zeros((WP * 32, W * 64), np.float32)
    for t in range(W):
        for tap in range(5):
            s = t + tap
            w2band[s * 32:(s + 1) * 32, t * 64:(t + 1) * 64] = w2[tap]
    b2vec = np.tile(p["conv2_b"], W)                     # (W*64,)

    def bn_fold(i):
        s = p[f"bn{i}_gamma"] / np.sqrt(p[f"bn{i}_var"] + eps)
        return s.reshape(1, -1), (p[f"bn{i}_beta"] - p[f"bn{i}_mean"] * s).reshape(1, -1)

    s1, t1 = bn_fold(1)
    s2, t2 = bn_fold(2)
    s3, t3 = bn_fold(3)

    # fc1: permute input-feature axis from torch .view order (c*W + t) to (t*64 + c).
    wf1 = p["fc1_w"].T.reshape(64, W, 256).transpose(1, 0, 2).reshape(W * 64, 256)
    wf2, wf3 = p["fc2_w"].T, p["fc3_w"].T
    # fold 1/temperature into fc4 (no SMEM scalar, no epilogue multiply)
    wf4 = (p["fc4_w"] / float(temperature)).reshape(1, 64)
    bf4 = (p["fc4_b"] / float(temperature)).reshape(1, 1)

    wd = weights_dtype
    return (jnp.asarray(w1band, wd), jnp.asarray(b1vec.reshape(1, -1)),
            jnp.asarray(w2band, wd), jnp.asarray(b2vec.reshape(1, -1)),
            jnp.asarray(wf1, wd), jnp.asarray(p["fc1_b"].reshape(1, -1)),
            jnp.asarray(s1), jnp.asarray(t1),
            jnp.asarray(wf2, wd), jnp.asarray(p["fc2_b"].reshape(1, -1)),
            jnp.asarray(s2), jnp.asarray(t2),
            jnp.asarray(wf3, wd), jnp.asarray(p["fc3_b"].reshape(1, -1)),
            jnp.asarray(s3), jnp.asarray(t3),
            jnp.asarray(wf4), jnp.asarray(bf4))


# ---------------------------------------------------------------------------
# Deterministic synthetic parameters (shapes from BayesianCNN.__init__)
# ---------------------------------------------------------------------------
def init_params(key, window_size):
    ks = jax.random.split(key, 16)

    def n(k, shape, scale=0.1):
        return scale * jax.random.normal(k, shape, jnp.float32)

    W = window_size
    p = {
        "conv1_w": n(ks[0], (32, 1, 5)),  "conv1_b": n(ks[1], (32,)),
        "conv2_w": n(ks[2], (64, 32, 5)), "conv2_b": n(ks[3], (64,)),
        "fc1_w": n(ks[4], (256, 64 * W)), "fc1_b": n(ks[5], (256,)),
        "fc2_w": n(ks[6], (128, 256)),    "fc2_b": n(ks[7], (128,)),
        "fc3_w": n(ks[8], (64, 128)),     "fc3_b": n(ks[9], (64,)),
        "fc4_w": n(ks[10], (1, 64)),      "fc4_b": n(ks[11], (1,)),
    }
    for i, d, kk in ((1, 256, 12), (2, 128, 13), (3, 64, 14)):
        kg, kb, km, kv = jax.random.split(ks[kk], 4)
        p[f"bn{i}_gamma"] = 1.0 + 0.1 * jax.random.normal(kg, (d,), jnp.float32)
        p[f"bn{i}_beta"] = 0.1 * jax.random.normal(kb, (d,), jnp.float32)
        p[f"bn{i}_mean"] = 0.1 * jax.random.normal(km, (d,), jnp.float32)
        p[f"bn{i}_var"] = 1.0 + 0.1 * jnp.abs(jax.random.normal(kv, (d,), jnp.float32))
    return p


# ---------------------------------------------------------------------------
# Pure-JAX f32 reference reproducing the PyTorch forward (eval mode)
# ---------------------------------------------------------------------------
def reference_forward(x, params, temperature):
    eps = 1e-5
    B = x.shape[0]
    dn = ("NCH", "OIH", "NCH")

    h = x[:, None, :]                                                    # (B, 1, W)
    h = lax.conv_general_dilated(h, params["conv1_w"], (1,), [(2, 2)],
                                 dimension_numbers=dn)
    h = jnp.maximum(h + params["conv1_b"][None, :, None], 0.0)
    h = lax.conv_general_dilated(h, params["conv2_w"], (1,), [(2, 2)],
                                 dimension_numbers=dn)
    h = jnp.maximum(h + params["conv2_b"][None, :, None], 0.0)
    h = h.reshape(B, -1)                                                 # torch .view order

    def bn(v, i):
        return ((v - params[f"bn{i}_mean"]) / jnp.sqrt(params[f"bn{i}_var"] + eps)
                * params[f"bn{i}_gamma"] + params[f"bn{i}_beta"])

    h = jnp.maximum(bn(h @ params["fc1_w"].T + params["fc1_b"], 1), 0.0)
    h = jnp.maximum(bn(h @ params["fc2_w"].T + params["fc2_b"], 2), 0.0)
    h = jnp.maximum(bn(h @ params["fc3_w"].T + params["fc3_b"], 3), 0.0)
    z = h @ params["fc4_w"].T + params["fc4_b"]
    return jax.nn.sigmoid(z / temperature)


if __name__ == "__main__":
    window_size, dropout, temperature = 16, 0.1, 2.0
    B = 2

    key = jax.random.PRNGKey(0)
    kx, kp = jax.random.split(key)
    x = jax.random.normal(kx, (B, window_size), jnp.float32)
    params = init_params(kp, window_size)

    prep = prepare_params(params, window_size, temperature)   # one-time, off the hot path

    # small-batch path (single tile, no padding)
    out = jax.block_until_ready(bayesian_cnn_forward(x, prep))
    ref = reference_forward(x, params, temperature)
    assert out.shape == (B, 1), out.shape
    # bf16 weight storage + f32 accumulation -> ~1e-3-level differences vs f32 reference
    assert jnp.allclose(out, ref, atol=1e-2, rtol=1e-2), (out, ref)

    # gridded path (multiple batch tiles + batch padding + "parallel" semantics)
    x2 = jax.random.normal(jax.random.PRNGKey(1), (40, window_size), jnp.float32)
    out2 = jax.block_until_ready(bayesian_cnn_forward(x2, prep, b_tile=16))
    ref2 = reference_forward(x2, params, temperature)
    assert out2.shape == (40, 1), out2.shape
    assert jnp.allclose(out2, ref2, atol=1e-2, rtol=1e-2), \
        float(jnp.max(jnp.abs(out2 - ref2)))

    print("KERNEL_OK")
</pallas_src>

<mosaic_0001>
module attributes {stable_mosaic.version = 11 : i64} {
  func.func @fused_forward_kernel(%arg0: i32, %arg1: memref<2x16xf32, #tpu.memory_space<vmem>>, %arg2: memref<16x640xbf16, #tpu.memory_space<vmem>>, %arg3: memref<1x640xf32, #tpu.memory_space<vmem>>, %arg4: memref<640x1024xbf16, #tpu.memory_space<vmem>>, %arg5: memref<1x1024xf32, #tpu.memory_space<vmem>>, %arg6: memref<1024x256xbf16, #tpu.memory_space<vmem>>, %arg7: memref<1x256xf32, #tpu.memory_space<vmem>>, %arg8: memref<1x256xf32, #tpu.memory_space<vmem>>, %arg9: memref<1x256xf32, #tpu.memory_space<vmem>>, %arg10: memref<256x128xbf16, #tpu.memory_space<vmem>>, %arg11: memref<1x128xf32, #tpu.memory_space<vmem>>, %arg12: memref<1x128xf32, #tpu.memory_space<vmem>>, %arg13: memref<1x128xf32, #tpu.memory_space<vmem>>, %arg14: memref<128x64xbf16, #tpu.memory_space<vmem>>, %arg15: memref<1x64xf32, #tpu.memory_space<vmem>>, %arg16: memref<1x64xf32, #tpu.memory_space<vmem>>, %arg17: memref<1x64xf32, #tpu.memory_space<vmem>>, %arg18: memref<1x64xf32, #tpu.memory_space<vmem>>, %arg19: memref<1x1xf32, #tpu.memory_space<vmem>>, %arg20: memref<2x1xf32, #tpu.memory_space<vmem>>) attributes {dimension_semantics = [#tpu.dimension_semantics<parallel>], iteration_bounds = array<i64: 1>, scalar_prefetch = 0 : i64, scratch_operands = 0 : i64, tpu.core_type = #tpu.core_type<tc>, window_params = [{transform_indices = @transform_0, window_bounds = array<i64: 2, 16>}, {pipeline_mode = #tpu.pipeline_mode<synchronous>, transform_indices = @transform_1, window_bounds = array<i64: 16, 640>}, {pipeline_mode = #tpu.pipeline_mode<synchronous>, transform_indices = @transform_2, window_bounds = array<i64: 1, 640>}, {pipeline_mode = #tpu.pipeline_mode<synchronous>, transform_indices = @transform_3, window_bounds = array<i64: 640, 1024>}, {pipeline_mode = #tpu.pipeline_mode<synchronous>, transform_indices = @transform_4, window_bounds = array<i64: 1, 1024>}, {pipeline_mode = #tpu.pipeline_mode<synchronous>, transform_indices = @transform_5, window_bounds = array<i64: 1024, 256>}, {pipeline_mode = #tpu.pipeline_mode<synchronous>, transform_indices = @transform_6, window_bounds = array<i64: 1, 256>}, {pipeline_mode = #tpu.pipeline_mode<synchronous>, transform_indices = @transform_7, window_bounds = array<i64: 1, 256>}, {pipeline_mode = #tpu.pipeline_mode<synchronous>, transform_indices = @transform_8, window_bounds = array<i64: 1, 256>}, {pipeline_mode = #tpu.pipeline_mode<synchronous>, transform_indices = @transform_9, window_bounds = array<i64: 256, 128>}, {pipeline_mode = #tpu.pipeline_mode<synchronous>, transform_indices = @transform_10, window_bounds = array<i64: 1, 128>}, {pipeline_mode = #tpu.pipeline_mode<synchronous>, transform_indices = @transform_11, window_bounds = array<i64: 1, 128>}, {pipeline_mode = #tpu.pipeline_mode<synchronous>, transform_indices = @transform_12, window_bounds = array<i64: 1, 128>}, {pipeline_mode = #tpu.pipeline_mode<synchronous>, transform_indices = @transform_13, window_bounds = array<i64: 128, 64>}, {pipeline_mode = #tpu.pipeline_mode<synchronous>, transform_indices = @transform_14, window_bounds = array<i64: 1, 64>}, {pipeline_mode = #tpu.pipeline_mode<synchronous>, transform_indices = @transform_15, window_bounds = array<i64: 1, 64>}, {pipeline_mode = #tpu.pipeline_mode<synchronous>, transform_indices = @transform_16, window_bounds = array<i64: 1, 64>}, {pipeline_mode = #tpu.pipeline_mode<synchronous>, transform_indices = @transform_17, window_bounds = array<i64: 1, 64>}, {pipeline_mode = #tpu.pipeline_mode<synchronous>, transform_indices = @transform_18, window_bounds = array<i64: 1, 1>}, {transform_indices = @transform_19, window_bounds = array<i64: 2, 1>}]} {
    %c0 = arith.constant 0 : index
    %c0_0 = arith.constant 0 : index
    %0 = vector.load %arg1[%c0, %c0_0] : memref<2x16xf32, #tpu.memory_space<vmem>>, vector<2x16xf32>
    %1 = arith.truncf %0 : vector<2x16xf32> to vector<2x16xbf16>
    %c0_1 = arith.constant 0 : index
    %c0_2 = arith.constant 0 : index
    %2 = vector.load %arg2[%c0_1, %c0_2] : memref<16x640xbf16, #tpu.memory_space<vmem>>, vector<16x640xbf16>
    %cst = arith.constant dense<0.000000e+00> : vector<2x640xf32>
    %3 = tpu.matmul %1, %2, %cst {dimension_numbers = #tpu.dot_dimension_numbers<[1], [0], [0], [1], [0, 0, 1, 1], [], []>} : vector<2x16xbf16>, vector<16x640xbf16>, vector<2x640xf32> -> vector<2x640xf32>
    %c0_3 = arith.constant 0 : index
    %c0_4 = arith.constant 0 : index
    %4 = vector.load %arg3[%c0_3, %c0_4] : memref<1x640xf32, #tpu.memory_space<vmem>>, vector<1x640xf32>
    %5 = vector.broadcast %4 : vector<1x640xf32> to vector<2x640xf32>
    %6 = arith.addf %3, %5 : vector<2x640xf32>
    %cst_5 = arith.constant 0.000000e+00 : f32
    %7 = vector.broadcast %cst_5 : f32 to vector<2x640xf32>
    %8 = arith.maximumf %6, %7 : vector<2x640xf32>
    %9 = arith.truncf %8 : vector<2x640xf32> to vector<2x640xbf16>
    %c0_6 = arith.constant 0 : index
    %c0_7 = arith.constant 0 : index
    %10 = vector.load %arg4[%c0_6, %c0_7] : memref<640x1024xbf16, #tpu.memory_space<vmem>>, vector<640x1024xbf16>
    %cst_8 = arith.constant dense<0.000000e+00> : vector<2x1024xf32>
    %11 = tpu.matmul %9, %10, %cst_8 {dimension_numbers = #tpu.dot_dimension_numbers<[1], [0], [0], [1], [0, 0, 1, 1], [], []>} : vector<2x640xbf16>, vector<640x1024xbf16>, vector<2x1024xf32> -> vector<2x1024xf32>
    %c0_9 = arith.constant 0 : index
    %c0_10 = arith.constant 0 : index
    %12 = vector.load %arg5[%c0_9, %c0_10] : memref<1x1024xf32, #tpu.memory_space<vmem>>, vector<1x1024xf32>
    %13 = vector.broadcast %12 : vector<1x1024xf32> to vector<2x1024xf32>
    %14 = arith.addf %11, %13 : vector<2x1024xf32>
    %cst_11 = arith.constant 0.000000e+00 : f32
    %15 = vector.broadcast %cst_11 : f32 to vector<2x1024xf32>
    %16 = arith.maximumf %14, %15 : vector<2x1024xf32>
    %17 = arith.truncf %16 : vector<2x1024xf32> to vector<2x1024xbf16>
    %c0_12 = arith.constant 0 : index
    %c0_13 = arith.constant 0 : index
    %18 = vector.load %arg6[%c0_12, %c0_13] : memref<1024x256xbf16, #tpu.memory_space<vmem>>, vector<1024x256xbf16>
    %cst_14 = arith.constant dense<0.000000e+00> : vector<2x256xf32>
    %19 = tpu.matmul %17, %18, %cst_14 {dimension_numbers = #tpu.dot_dimension_numbers<[1], [0], [0], [1], [0, 0, 1, 1], [], []>} : vector<2x1024xbf16>, vector<1024x256xbf16>, vector<2x256xf32> -> vector<2x256xf32>
    %c0_15 = arith.constant 0 : index
    %c0_16 = arith.constant 0 : index
    %20 = vector.load %arg7[%c0_15, %c0_16] : memref<1x256xf32, #tpu.memory_space<vmem>>, vector<1x256xf32>
    %21 = vector.broadcast %20 : vector<1x256xf32> to vector<2x256xf32>
    %22 = arith.addf %19, %21 : vector<2x256xf32>
    %c0_17 = arith.constant 0 : index
    %c0_18 = arith.constant 0 : index
    %23 = vector.load %arg8[%c0_17, %c0_18] : memref<1x256xf32, #tpu.memory_space<vmem>>, vector<1x256xf32>
    %24 = vector.broadcast %23 : vector<1x256xf32> to vector<2x256xf32>
    %25 = arith.mulf %22, %24 : vector<2x256xf32>
    %c0_19 = arith.constant 0 : index
    %c0_20 = arith.constant 0 : index
    %26 = vector.load %arg9[%c0_19, %c0_20] : memref<1x256xf32, #tpu.memory_space<vmem>>, vector<1x256xf32>
    %27 = vector.broadcast %26 : vector<1x256xf32> to vector<2x256xf32>
    %28 = arith.addf %25, %27 : vector<2x256xf32>
    %cst_21 = arith.constant 0.000000e+00 : f32
    %29 = vector.broadcast %cst_21 : f32 to vector<2x256xf32>
    %30 = arith.maximumf %28, %29 : vector<2x256xf32>
    %31 = arith.truncf %30 : vector<2x256xf32> to vector<2x256xbf16>
    %c0_22 = arith.constant 0 : index
    %c0_23 = arith.constant 0 : index
    %32 = vector.load %arg10[%c0_22, %c0_23] : memref<256x128xbf16, #tpu.memory_space<vmem>>, vector<256x128xbf16>
    %cst_24 = arith.constant dense<0.000000e+00> : vector<2x128xf32>
    %33 = tpu.matmul %31, %32, %cst_24 {dimension_numbers = #tpu.dot_dimension_numbers<[1], [0], [0], [1], [0, 0, 1, 1], [], []>} : vector<2x256xbf16>, vector<256x128xbf16>, vector<2x128xf32> -> vector<2x128xf32>
    %c0_25 = arith.constant 0 : index
    %c0_26 = arith.constant 0 : index
    %34 = vector.load %arg11[%c0_25, %c0_26] : memref<1x128xf32, #tpu.memory_space<vmem>>, vector<1x128xf32>
    %35 = vector.broadcast %34 : vector<1x128xf32> to vector<2x128xf32>
    %36 = arith.addf %33, %35 : vector<2x128xf32>
    %c0_27 = arith.constant 0 : index
    %c0_28 = arith.constant 0 : index
    %37 = vector.load %arg12[%c0_27, %c0_28] : memref<1x128xf32, #tpu.memory_space<vmem>>, vector<1x128xf32>
    %38 = vector.broadcast %37 : vector<1x128xf32> to vector<2x128xf32>
    %39 = arith.mulf %36, %38 : vector<2x128xf32>
    %c0_29 = arith.constant 0 : index
    %c0_30 = arith.constant 0 : index
    %40 = vector.load %arg13[%c0_29, %c0_30] : memref<1x128xf32, #tpu.memory_space<vmem>>, vector<1x128xf32>
    %41 = vector.broadcast %40 : vector<1x128xf32> to vector<2x128xf32>
    %42 = arith.addf %39, %41 : vector<2x128xf32>
    %cst_31 = arith.constant 0.000000e+00 : f32
    %43 = vector.broadcast %cst_31 : f32 to vector<2x128xf32>
    %44 = arith.maximumf %42, %43 : vector<2x128xf32>
    %45 = arith.truncf %44 : vector<2x128xf32> to vector<2x128xbf16>
    %c0_32 = arith.constant 0 : index
    %c0_33 = arith.constant 0 : index
    %46 = vector.load %arg14[%c0_32, %c0_33] : memref<128x64xbf16, #tpu.memory_space<vmem>>, vector<128x64xbf16>
    %cst_34 = arith.constant dense<0.000000e+00> : vector<2x64xf32>
    %47 = tpu.matmul %45, %46, %cst_34 {dimension_numbers = #tpu.dot_dimension_numbers<[1], [0], [0], [1], [0, 0, 1, 1], [], []>} : vector<2x128xbf16>, vector<128x64xbf16>, vector<2x64xf32> -> vector<2x64xf32>
    %c0_35 = arith.constant 0 : index
    %c0_36 = arith.constant 0 : index
    %48 = vector.load %arg15[%c0_35, %c0_36] : memref<1x64xf32, #tpu.memory_space<vmem>>, vector<1x64xf32>
    %49 = vector.broadcast %48 : vector<1x64xf32> to vector<2x64xf32>
    %50 = arith.addf %47, %49 : vector<2x64xf32>
    %c0_37 = arith.constant 0 : index
    %c0_38 = arith.constant 0 : index
    %51 = vector.load %arg16[%c0_37, %c0_38] : memref<1x64xf32, #tpu.memory_space<vmem>>, vector<1x64xf32>
    %52 = vector.broadcast %51 : vector<1x64xf32> to vector<2x64xf32>
    %53 = arith.mulf %50, %52 : vector<2x64xf32>
    %c0_39 = arith.constant 0 : index
    %c0_40 = arith.constant 0 : index
    %54 = vector.load %arg17[%c0_39, %c0_40] : memref<1x64xf32, #tpu.memory_space<vmem>>, vector<1x64xf32>
    %55 = vector.broadcast %54 : vector<1x64xf32> to vector<2x64xf32>
    %56 = arith.addf %53, %55 : vector<2x64xf32>
    %cst_41 = arith.constant 0.000000e+00 : f32
    %57 = vector.broadcast %cst_41 : f32 to vector<2x64xf32>
    %58 = arith.maximumf %56, %57 : vector<2x64xf32>
    %c0_42 = arith.constant 0 : index
    %c0_43 = arith.constant 0 : index
    %59 = vector.load %arg18[%c0_42, %c0_43] : memref<1x64xf32, #tpu.memory_space<vmem>>, vector<1x64xf32>
    %60 = vector.broadcast %59 : vector<1x64xf32> to vector<2x64xf32>
    %61 = arith.mulf %58, %60 : vector<2x64xf32>
    %cst_44 = arith.constant dense<0.000000e+00> : vector<2xf32>
    %62 = vector.multi_reduction <add>, %61, %cst_44 [1] : vector<2x64xf32> to vector<2xf32>
    %63 = vector.shape_cast %62 : vector<2xf32> to vector<2x1xf32>
    %c0_45 = arith.constant 0 : index
    %c0_46 = arith.constant 0 : index
    %64 = vector.load %arg19[%c0_45, %c0_46] : memref<1x1xf32, #tpu.memory_space<vmem>>, vector<1x1xf32>
    %65 = vector.broadcast %64 : vector<1x1xf32> to vector<2x1xf32>
    %66 = arith.addf %63, %65 : vector<2x1xf32>
    %67 = math.absf %66 : vector<2x1xf32>
    %cst_47 = arith.constant 0.000000e+00 : f32
    %68 = vector.broadcast %cst_47 : f32 to vector<2x1xf32>
    %69 = arith.subf %68, %67 : vector<2x1xf32>
    %70 = math.exp %69 : vector<2x1xf32>
    %cst_48 = arith.constant 0.000000e+00 : f32
    %71 = vector.broadcast %cst_48 : f32 to vector<2x1xf32>
    %72 = arith.cmpf oge, %66, %71 : vector<2x1xf32>
    %cst_49 = arith.constant 1.000000e+00 : f32
    %73 = vector.broadcast %cst_49 : f32 to vector<2x1xf32>
    %74 = arith.addf %73, %70 : vector<2x1xf32>
    %cst_50 = arith.constant 1.000000e+00 : f32
    %75 = vector.broadcast %cst_50 : f32 to vector<2x1xf32>
    %76 = arith.divf %75, %74 : vector<2x1xf32>
    %cst_51 = arith.constant 1.000000e+00 : f32
    %77 = vector.broadcast %cst_51 : f32 to vector<2x1xf32>
    %78 = arith.addf %77, %70 : vector<2x1xf32>
    %79 = arith.divf %70, %78 : vector<2x1xf32>
    %80 = arith.select %72, %76, %79 : vector<2x1xi1>, vector<2x1xf32>
    %c0_52 = arith.constant 0 : index
    %c0_53 = arith.constant 0 : index
    %81 = vector.load %arg20[%c0_52, %c0_53] : memref<2x1xf32, #tpu.memory_space<vmem>>, vector<2x1xf32>
    tpu.vector_store %arg20[%c0_52, %c0_53], %80 {strides = array<i32>} : memref<2x1xf32, #tpu.memory_space<vmem>>, vector<2x1xf32>,
    return
  }
  func.func @transform_0(%arg0: i32) -> (i32, i32) {
    %c0_i32 = arith.constant 0 : i32
    %c0_i32_0 = arith.constant 0 : i32
    return %arg0, %c0_i32 : i32, i32
  }
  func.func @transform_1(%arg0: i32) -> (i32, i32) {
    %c0_i32 = arith.constant 0 : i32
    %c0_i32_0 = arith.constant 0 : i32
    %c0_i32_1 = arith.constant 0 : i32
    return %c0_i32, %c0_i32_0 : i32, i32
  }
  func.func @transform_2(%arg0: i32) -> (i32, i32) {
    %c0_i32 = arith.constant 0 : i32
    %c0_i32_0 = arith.constant 0 : i32
    %c0_i32_1 = arith.constant 0 : i32
    return %c0_i32, %c0_i32_0 : i32, i32
  }
  func.func @transform_3(%arg0: i32) -> (i32, i32) {
    %c0_i32 = arith.constant 0 : i32
    %c0_i32_0 = arith.constant 0 : i32
    %c0_i32_1 = arith.constant 0 : i32
    return %c0_i32, %c0_i32_0 : i32, i32
  }
  func.func @transform_4(%arg0: i32) -> (i32, i32) {
    %c0_i32 = arith.constant 0 : i32
    %c0_i32_0 = arith.constant 0 : i32
    %c0_i32_1 = arith.constant 0 : i32
    return %c0_i32, %c0_i32_0 : i32, i32
  }
  func.func @transform_5(%arg0: i32) -> (i32, i32) {
    %c0_i32 = arith.constant 0 : i32
    %c0_i32_0 = arith.constant 0 : i32
    %c0_i32_1 = arith.constant 0 : i32
    return %c0_i32, %c0_i32_0 : i32, i32
  }
  func.func @transform_6(%arg0: i32) -> (i32, i32) {
    %c0_i32 = arith.constant 0 : i32
    %c0_i32_0 = arith.constant 0 : i32
    %c0_i32_1 = arith.constant 0 : i32
    return %c0_i32, %c0_i32_0 : i32, i32
  }
  func.func @transform_7(%arg0: i32) -> (i32, i32) {
    %c0_i32 = arith.constant 0 : i32
    %c0_i32_0 = arith.constant 0 : i32
    %c0_i32_1 = arith.constant 0 : i32
    return %c0_i32, %c0_i32_0 : i32, i32
  }
  func.func @transform_8(%arg0: i32) -> (i32, i32) {
    %c0_i32 = arith.constant 0 : i32
    %c0_i32_0 = arith.constant 0 : i32
    %c0_i32_1 = arith.constant 0 : i32
    return %c0_i32, %c0_i32_0 : i32, i32
  }
  func.func @transform_9(%arg0: i32) -> (i32, i32) {
    %c0_i32 = arith.constant 0 : i32
    %c0_i32_0 = arith.constant 0 : i32
    %c0_i32_1 = arith.constant 0 : i32
    return %c0_i32, %c0_i32_0 : i32, i32
  }
  func.func @transform_10(%arg0: i32) -> (i32, i32) {
    %c0_i32 = arith.constant 0 : i32
    %c0_i32_0 = arith.constant 0 : i32
    %c0_i32_1 = arith.constant 0 : i32
    return %c0_i32, %c0_i32_0 : i32, i32
  }
  func.func @transform_11(%arg0: i32) -> (i32, i32) {
    %c0_i32 = arith.constant 0 : i32
    %c0_i32_0 = arith.constant 0 : i32
    %c0_i32_1 = arith.constant 0 : i32
    return %c0_i32, %c0_i32_0 : i32, i32
  }
  func.func @transform_12(%arg0: i32) -> (i32, i32) {
    %c0_i32 = arith.constant 0 : i32
    %c0_i32_0 = arith.constant 0 : i32
    %c0_i32_1 = arith.constant 0 : i32
    return %c0_i32, %c0_i32_0 : i32, i32
  }
  func.func @transform_13(%arg0: i32) -> (i32, i32) {
    %c0_i32 = arith.constant 0 : i32
    %c0_i32_0 = arith.constant 0 : i32
    %c0_i32_1 = arith.constant 0 : i32
    return %c0_i32, %c0_i32_0 : i32, i32
  }
  func.func @transform_14(%arg0: i32) -> (i32, i32) {
    %c0_i32 = arith.constant 0 : i32
    %c0_i32_0 = arith.constant 0 : i32
    %c0_i32_1 = arith.constant 0 : i32
    return %c0_i32, %c0_i32_0 : i32, i32
  }
  func.func @transform_15(%arg0: i32) -> (i32, i32) {
    %c0_i32 = arith.constant 0 : i32
    %c0_i32_0 = arith.constant 0 : i32
    %c0_i32_1 = arith.constant 0 : i32
    return %c0_i32, %c0_i32_0 : i32, i32
  }
  func.func @transform_16(%arg0: i32) -> (i32, i32) {
    %c0_i32 = arith.constant 0 : i32
    %c0_i32_0 = arith.constant 0 : i32
    %c0_i32_1 = arith.constant 0 : i32
    return %c0_i32, %c0_i32_0 : i32, i32
  }
  func.func @transform_17(%arg0: i32) -> (i32, i32) {
    %c0_i32 = arith.constant 0 : i32
    %c0_i32_0 = arith.constant 0 : i32
    %c0_i32_1 = arith.constant 0 : i32
    return %c0_i32, %c0_i32_0 : i32, i32
  }
  func.func @transform_18(%arg0: i32) -> (i32, i32) {
    %c0_i32 = arith.constant 0 : i32
    %c0_i32_0 = arith.constant 0 : i32
    %c0_i32_1 = arith.constant 0 : i32
    return %c0_i32, %c0_i32_0 : i32, i32
  }
  func.func @transform_19(%arg0: i32) -> (i32, i32) {
    %c0_i32 = arith.constant 0 : i32
    %c0_i32_0 = arith.constant 0 : i32
    return %arg0, %c0_i32 : i32, i32
  }
}

</mosaic_0001>

<bundles_post_ra>
// kernel: bayesian_cnn_forward.1
= control target key start
LH: loop header
LB: loop body
LE: loop exit
PB: predicated region body
PF: predicated region fallthrough
CT: control target
= control target key end

     0   :  { %s5784_s0 = inlined_call_operand.hbm [shape: f32[2,16], index: 0, kind: input, shape index: {}]   ;;  %s5785_s1 = inlined_call_operand.hbm [shape: bf16[16,640], index: 1, kind: input, shape index: {}]   ;;  %s5786_s2 = inlined_call_operand.hbm [shape: f32[1,640], index: 2, kind: input, shape index: {}]   ;;  %s5787_s3 = inlined_call_operand.hbm [shape: bf16[640,1024], index: 3, kind: input, shape index: {}]   ;;  %s5788_s4 = inlined_call_operand.hbm [shape: f32[1,1024], index: 4, kind: input, shape index: {}]   ;;  %s5789_s5 = inlined_call_operand.hbm [shape: bf16[1024,256], index: 5, kind: input, shape index: {}]   ;;  %s5790_s6 = inlined_call_operand.hbm [shape: f32[1,256], index: 6, kind: input, shape index: {}]   ;;  %s5791_s7 = inlined_call_operand.hbm [shape: f32[1,256], index: 7, kind: input, shape index: {}]   ;;  %s5792_s8 = inlined_call_operand.hbm [shape: f32[1,256], index: 8, kind: input, shape index: {}]   ;;  %s5793_s9 = inlined_call_operand.hbm [shape: bf16[256,128], index: 9, kind: input, shape index: {}]   ;;  %s5794_s10 = inlined_call_operand.hbm [shape: f32[1,128], index: 10, kind: input, shape index: {}]   ;;  %s5795_s11 = inlined_call_operand.hbm [shape: f32[1,128], index: 11, kind: input, shape index: {}]   ;;  %s5796_s12 = inlined_call_operand.hbm [shape: f32[1,128], index: 12, kind: input, shape index: {}]   ;;  %s5797_s13 = inlined_call_operand.vmem [shape: bf16[128,64], index: 13, kind: input, shape index: {}]   ;;  %s5798_s14 = inlined_call_operand.hbm [shape: f32[1,64], index: 14, kind: input, shape index: {}]   ;;  %s5799_s15 = inlined_call_operand.hbm [shape: f32[1,64], index: 15, kind: input, shape index: {}]   ;;  %s5800_s16 = inlined_call_operand.hbm [shape: f32[1,64], index: 16, kind: input, shape index: {}]   ;;  %s5801_s17 = inlined_call_operand.hbm [shape: f32[1,64], index: 17, kind: input, shape index: {}]   ;;  %s5802_s18 = inlined_call_operand.<no memory space> [shape: f32[1,1], index: 18, kind: input, shape index: {}]   ;;  %s5803_s19 = inlined_call_operand.vmem [shape: f32[2,1], index: 19, kind: output, shape index: {}]  }
   0x1   :  { %5804 = sst [smem:[#allocation38_spill]] %s5784_s0  ;;  %v24_v0 = vstv %s5802_s18 }
   0x2   :  { %5805 = sst [smem:[#allocation39_spill]] %s5785_s1  ;;  %25 = vst [vmem:[#allocation2] sm:$0x1] %v24_v0 }
   0x3   :  { %5806 = sst [smem:[#allocation40_spill]] %s5786_s2 }
   0x4   :  { %5807 = sst [smem:[#allocation41_spill]] %s5787_s3 }
   0x5   :  { %26 = vsyncpa [#allocation4], 0 }
   0x6   :  { %27 = vsyncpa [#allocation6], 0 }
   0x7   :  { %28 = vsyncpa [#allocation9], 0 }
   0x8   :  { %29 = vsyncpa [#allocation12], 0 }
   0x9   :  { %30 = vsyncpa [#allocation15], 0 }
   0xa   :  { %31 = vsyncpa [#allocation18], 0 }
   0xb   :  { %32 = vsyncpa [#allocation21], 0 }
   0xc   :  { %33 = vsyncpa [#allocation24], 0 }
   0xd   :  { %34 = vsyncpa [#allocation27], 0  ;;  %s5439_s20 = smov [#allocation5]  }
   0xe   :  { %s50_s21 = sshll.u32 %s5439_s20, 4  ;;  %s51_s21 = int_to_ptr.vmem [resolvable:$true] %s50_s21 }
   0xf   :  { %s5089_s1 = scalar_lea.vmem %s51_s21, 640  ;;  %p5094_p1 = scmp.lt.s32.totalorder %s51_s21, %s51_s21 }
  0x10   :  { %p5090_p0 = scmp.ne.s32.totalorder %s51_s21, %s5089_s1  ;;  %p5095_p2 = scmp.lt.s32.totalorder %s5089_s1, %s5089_s1 }
  0x12   :  { %p5096_p3 = por %p5095_p2, %p5094_p1 }
  0x14   :  { %p5097_p4 = pnand %p5096_p3, %p5090_p0 }
  0x16   :  { %5100 = shalt.err (!%p5097_p4)
}
  0x17   :  { %s5440_s18 = smov 320   ;;  %s5441_s22 = smov 20  }
  0x18   :  { %s5808_s24 = sld [smem:[#allocation39_spill]]  ;;  %s5442_s25 = smov [#allocation8]  }
  0x19   :  { %s72_s3 = sshll.u32 %s5442_s25, 4  ;;  %s73_s3 = int_to_ptr.vmem [resolvable:$true] %s72_s3 }
  0x1a   :  { %s5109_s26 = scalar_lea.vmem %s73_s3, 40960  ;;  %p5114_p6 = scmp.lt.s32.totalorder %s73_s3, %s73_s3 }
  0x1b   :  { %p5110_p5 = scmp.ne.s32.totalorder %s73_s3, %s5109_s26  ;;  %p5115_p7 = scmp.lt.s32.totalorder %s5109_s26, %s5109_s26 }
  0x1d   :  { %p5116_p8 = por %p5115_p7, %p5114_p6 }
  0x1e   :  { %56 = dma.hbm_to_vmem [thread:$0]  %s5808_s24, 640, %s51_s21, [#allocation6], %s5440_s18, %s5440_s18, %s5441_s22  }
  0x1f   :  { %p5117_p9 = pnand %p5116_p8, %p5110_p5 }
  0x21   :  { %5120 = shalt.err (!%p5117_p9)
}
  0x22   :  { %s5443_s27 = smov 512   ;;  %s5444_s28 = smov 32  }
  0x23   :  { %s5809_s30 = sld [smem:[#allocation41_spill]]  ;;  %s5445_s20 = smov [#allocation11]  }
  0x24   :  { %s94_s1 = sshll.u32 %s5445_s20, 4  ;;  %s95_s1 = int_to_ptr.vmem [resolvable:$true] %s94_s1 }
  0x25   :  { %s5129_s21 = scalar_lea.vmem %s95_s1, 16384  ;;  %p5134_p11 = scmp.lt.s32.totalorder %s95_s1, %s95_s1 }
  0x26   :  { %p5130_p10 = scmp.ne.s32.totalorder %s95_s1, %s5129_s21  ;;  %p5135_p12 = scmp.lt.s32.totalorder %s5129_s21, %s5129_s21 }
  0x28   :  { %p5136_p13 = por %p5135_p12, %p5134_p11 }
  0x29   :  { %78 = dma.hbm_to_vmem [thread:$0]  %s5809_s30, 40960, %s73_s3, [#allocation9], %s5443_s27, %s5443_s27, %s5444_s28  }
  0x2a   :  { %p5137_p0 = pnand %p5136_p13, %p5130_p10 }
  0x2c   :  { %5140 = shalt.err (!%p5137_p0)
}
  0x2d   :  { %s5446_s18 = smov 128   ;;  %s5447_s22 = smov 8  }
  0x2e   :  { %100 = dma.hbm_to_vmem [thread:$0]  %s5789_s5, 16384, %s95_s1, [#allocation12], %s5446_s18, %s5446_s18, %s5447_s22  }
  0x2f   :  { %s5448_s24 = smov [#allocation14]   ;;  %s5449_s3 = smov [#allocation17]  }
  0x30   :  { %s117_s25 = sshll.u32 %s5448_s24, 4  ;;  %s136_s26 = sshll.u32 %s5449_s3, 4  ;;  %s118_s25 = int_to_ptr.vmem [resolvable:$true] %s117_s25  ;;  %s137_s26 = int_to_ptr.vmem [resolvable:$true] %s136_s26 }
  0x31   :  { %s5149_s27 = scalar_lea.vmem %s118_s25, 32  ;;  %p5154_p2 = scmp.lt.s32.totalorder %s118_s25, %s118_s25 }
  0x32   :  { %p5150_p1 = scmp.ne.s32.totalorder %s118_s25, %s5149_s27  ;;  %p5155_p3 = scmp.lt.s32.totalorder %s5149_s27, %s5149_s27 }
  0x34   :  { %p5156_p4 = por %p5155_p3, %p5154_p2 }
  0x36   :  { %p5157_p5 = pnand %p5156_p4, %p5150_p1 }
  0x38   :  { %5160 = shalt.err (!%p5157_p5)
}
  0x39   :  { %120 = dma.hbm_to_vmem [thread:$0]  %s5791_s7, 32, %s118_s25, [#allocation15]  }
  0x3a   :  { %s5169_s0 = scalar_lea.vmem %s137_s26, 2048  ;;  %p5174_p7 = scmp.lt.s32.totalorder %s137_s26, %s137_s26 }
  0x3b   :  { %p5170_p6 = scmp.ne.s32.totalorder %s137_s26, %s5169_s0  ;;  %p5175_p8 = scmp.lt.s32.totalorder %s5169_s0, %s5169_s0 }
  0x3d   :  { %p5176_p9 = por %p5175_p8, %p5174_p7 }
  0x3f   :  { %p5177_p10 = pnand %p5176_p9, %p5170_p6 }
  0x41   :  { %5180 = shalt.err (!%p5177_p10)
}
  0x42   :  { %s5450_s5 = smov 64   ;;  %s5451_s30 = smov 4  }
  0x43   :  { %142 = dma.hbm_to_vmem [thread:$0]  %s5793_s9, 2048, %s137_s26, [#allocation18], %s5450_s5, %s5450_s5, %s5451_s30  }
  0x44   :  { %s5452_s21 = smov [#allocation20]   ;;  %s5453_s22 = smov [#allocation23]  }
  0x45   :  { %s159_s18 = sshll.u32 %s5452_s21, 4  ;;  %s181_s2 = sshll.u32 %s5453_s22, 4  ;;  %s160_s18 = int_to_ptr.vmem [resolvable:$true] %s159_s18  ;;  %s182_s2 = int_to_ptr.vmem [resolvable:$true] %s181_s2 }
  0x46   :  { %s5189_s7 = scalar_lea.vmem %s160_s18, 16  ;;  %s5193_s23 = scalar_lea.vmem %s160_s18, 32 }
  0x47   :  { %p5190_p11 = scmp.ne.s32.totalorder %s160_s18, %s5189_s7  ;;  %p5194_p12 = scmp.lt.s32.totalorder %s160_s18, %s160_s18 }
  0x48   :  { %p5195_p13 = scmp.lt.s32.totalorder %s5193_s23, %s5189_s7 }
  0x4a   :  { %p5196_p0 = por %p5195_p13, %p5194_p12 }
  0x4c   :  { %p5197_p1 = pnand %p5196_p0, %p5190_p11 }
  0x4e   :  { %5200 = shalt.err (!%p5197_p1)
}
  0x4f   :  { %162 = dma.hbm_to_vmem [thread:$0]  %s5795_s11, 16, %s160_s18, [#allocation21]  }
  0x50   :  { %s5209_s3 = scalar_lea.vmem %s182_s2, 16  ;;  %s5213_s9 = scalar_lea.vmem %s182_s2, 32 }
  0x51   :  { %p5210_p2 = scmp.ne.s32.totalorder %s182_s2, %s5209_s3  ;;  %p5214_p3 = scmp.lt.s32.totalorder %s182_s2, %s182_s2 }
  0x52   :  { %p5215_p4 = scmp.lt.s32.totalorder %s5213_s9, %s5209_s3 }
  0x54   :  { %p5216_p5 = por %p5215_p4, %p5214_p3 }
  0x56   :  { %p5217_p6 = pnand %p5216_p5, %p5210_p2 }
  0x58   :  { %5220 = shalt.err (!%p5217_p6)
}
  0x59   :  { %184 = dma.hbm_to_vmem [thread:$0]  %s5798_s14, 16, %s182_s2, [#allocation24]  }
  0x5a   :  { %s5454_s28 = smov [#allocation26]   ;;  %s5455_s0 = smov [#allocation3]  }
  0x5b   :  { %s201_s29 = sshll.u32 %s5454_s28, 4  ;;  %s41_s5 = sshll.u32 %s5455_s0, 4  ;;  %s202_s29 = int_to_ptr.vmem [resolvable:$true] %s201_s29  ;;  %s42_s5 = int_to_ptr.vmem [resolvable:$true] %s41_s5 }
  0x5c   :  { %s5229_s30 = scalar_lea.vmem %s202_s29, 16  ;;  %s5233_s11 = scalar_lea.vmem %s202_s29, 32 }
  0x5d   :  { %p5230_p7 = scmp.ne.s32.totalorder %s202_s29, %s5229_s30  ;;  %p5234_p8 = scmp.lt.s32.totalorder %s202_s29, %s202_s29 }
  0x5e   :  { %p5235_p9 = scmp.lt.s32.totalorder %s5233_s11, %s5229_s30 }
  0x60   :  { %p5236_p10 = por %p5235_p9, %p5234_p8 }
  0x62   :  { %p5237_p11 = pnand %p5236_p10, %p5230_p7 }
  0x64   :  { %5240 = shalt.err (!%p5237_p11)
}
  0x65   :  { %204 = dma.hbm_to_vmem [thread:$0]  %s5800_s16, 16, %s202_s29, [#allocation27]  }
  0x66   :  { %s5249_s21 = scalar_lea.vmem %s42_s5, 32  ;;  %p5254_p13 = scmp.lt.s32.totalorder %s42_s5, %s42_s5 }
  0x67   :  { %p5250_p12 = scmp.ne.s32.totalorder %s42_s5, %s5249_s21  ;;  %p5255_p0 = scmp.lt.s32.totalorder %s5249_s21, %s5249_s21 }
  0x69   :  { %p5256_p1 = por %p5255_p0, %p5254_p13 }
  0x6b   :  { %p5257_p2 = pnand %p5256_p1, %p5250_p12 }
  0x6d   :  { %5260 = shalt.err (!%p5257_p2)
}
  0x6e   :  { %s5810_s22 = sld [smem:[#allocation38_spill]]  ;;  %s5456_s2 = smov [#allocation7]  }
  0x6f   :  { %s63_s7 = sshll.u32 %s5456_s2, 4  ;;  %s5457_s23 = smov [#allocation10]   ;;  %s64_s7 = int_to_ptr.vmem [resolvable:$true] %s63_s7 }
  0x70   :  { %s85_s24 = sshll.u32 %s5457_s23, 4  ;;  %s5269_s25 = scalar_lea.vmem %s64_s7, 80  ;;  %s86_s24 = int_to_ptr.vmem [resolvable:$true] %s85_s24 }
  0x71   :  { %p5270_p3 = scmp.ne.s32.totalorder %s64_s7, %s5269_s25  ;;  %s5273_s16 = scalar_lea.vmem %s64_s7, 96 }
  0x72   :  { %p5274_p4 = scmp.lt.s32.totalorder %s64_s7, %s64_s7  ;;  %p5275_p5 = scmp.lt.s32.totalorder %s5273_s16, %s5269_s25 }
  0x74   :  { %44 = dma.hbm_to_vmem [thread:$0]  %s5810_s22, 32, %s42_s5, [#allocation4]  }
  0x75   :  { %p5276_p6 = por %p5275_p5, %p5274_p4 }
  0x77   :  { %p5277_p7 = pnand %p5276_p6, %p5270_p3 }
  0x79   :  { %5280 = shalt.err (!%p5277_p7)
}
  0x7a   :  { %s5811_s26 = sld [smem:[#allocation40_spill]]  ;;  %s5289_s27 = scalar_lea.vmem %s86_s24, 128 }
  0x7b   :  { %p5290_p8 = scmp.ne.s32.totalorder %s86_s24, %s5289_s27  ;;  %p5294_p9 = scmp.lt.s32.totalorder %s86_s24, %s86_s24 }
  0x7c   :  { %p5295_p10 = scmp.lt.s32.totalorder %s5289_s27, %s5289_s27 }
  0x7e   :  { %p5296_p11 = por %p5295_p10, %p5294_p9 }
  0x80   :  { %66 = dma.hbm_to_vmem [thread:$0]  %s5811_s26, 80, %s64_s7, [#allocation6]  }
  0x81   :  { %p5297_p12 = pnand %p5296_p11, %p5290_p8 }
  0x83   :  { %5300 = shalt.err (!%p5297_p12)
}
  0x84   :  { %88 = dma.hbm_to_vmem [thread:$0]  %s5788_s4, 128, %s86_s24, [#allocation9]  }
  0x85   :  { %s5458_s0 = smov [#allocation13]   ;;  %s5459_s30 = smov [#allocation16]  }
  0x86   :  { %s107_s5 = sshll.u32 %s5458_s0, 4  ;;  %s127_s11 = sshll.u32 %s5459_s30, 4  ;;  %s108_s5 = int_to_ptr.vmem [resolvable:$true] %s107_s5  ;;  %s128_s11 = int_to_ptr.vmem [resolvable:$true] %s127_s11 }
  0x87   :  { %s5309_s20 = scalar_lea.vmem %s108_s5, 32  ;;  %p5314_p0 = scmp.lt.s32.totalorder %s108_s5, %s108_s5 }
  0x88   :  { %p5310_p13 = scmp.ne.s32.totalorder %s108_s5, %s5309_s20  ;;  %p5315_p1 = scmp.lt.s32.totalorder %s5309_s20, %s5309_s20 }
  0x8a   :  { %p5316_p2 = por %p5315_p1, %p5314_p0 }
  0x8c   :  { %p5317_p3 = pnand %p5316_p2, %p5310_p13 }
  0x8e   :  { %5320 = shalt.err (!%p5317_p3)
}
  0x8f   :  { %110 = dma.hbm_to_vmem [thread:$0]  %s5790_s6, 32, %s108_s5, [#allocation12]  }
  0x90   :  { %s5329_s14 = scalar_lea.vmem %s128_s11, 32  ;;  %p5334_p5 = scmp.lt.s32.totalorder %s128_s11, %s128_s11 }
  0x91   :  { %p5330_p4 = scmp.ne.s32.totalorder %s128_s11, %s5329_s14  ;;  %p5335_p6 = scmp.lt.s32.totalorder %s5329_s14, %s5329_s14 }
  0x93   :  { %p5336_p7 = por %p5335_p6, %p5334_p5 }
  0x95   :  { %p5337_p8 = pnand %p5336_p7, %p5330_p4 }
  0x97   :  { %5340 = shalt.err (!%p5337_p8)
}
  0x98   :  { %130 = dma.hbm_to_vmem [thread:$0]  %s5792_s8, 32, %s128_s11, [#allocation15]  }
  0x99   :  { %s5460_s22 = smov [#allocation19]   ;;  %s5461_s7 = smov [#allocation22]  }
  0x9a   :  { %s149_s2 = sshll.u32 %s5460_s22, 4  ;;  %s169_s23 = sshll.u32 %s5461_s7, 4  ;;  %s150_s2 = int_to_ptr.vmem [resolvable:$true] %s149_s2  ;;  %s170_s23 = int_to_ptr.vmem [resolvable:$true] %s169_s23 }
  0x9b   :  { %s5349_s24 = scalar_lea.vmem %s150_s2, 16  ;;  %s5353_s6 = scalar_lea.vmem %s150_s2, 32 }
  0x9c   :  { %p5350_p9 = scmp.ne.s32.totalorder %s150_s2, %s5349_s24  ;;  %p5354_p10 = scmp.lt.s32.totalorder %s150_s2, %s150_s2 }
  0x9d   :  { %p5355_p11 = scmp.lt.s32.totalorder %s5353_s6, %s5349_s24 }
  0x9f   :  { %p5356_p12 = por %p5355_p11, %p5354_p10 }
  0xa1   :  { %p5357_p13 = pnand %p5356_p12, %p5350_p9 }
  0xa3   :  { %5360 = shalt.err (!%p5357_p13)
}
  0xa4   :  { %152 = dma.hbm_to_vmem [thread:$0]  %s5794_s10, 16, %s150_s2, [#allocation18]  }
  0xa5   :  { %s5369_s3 = scalar_lea.vmem %s170_s23, 16  ;;  %s5373_s8 = scalar_lea.vmem %s170_s23, 32 }
  0xa6   :  { %p5370_p0 = scmp.ne.s32.totalorder %s170_s23, %s5369_s3  ;;  %p5374_p1 = scmp.lt.s32.totalorder %s170_s23, %s170_s23 }
  0xa7   :  { %p5375_p2 = scmp.lt.s32.totalorder %s5373_s8, %s5369_s3 }
  0xa9   :  { %p5376_p3 = por %p5375_p2, %p5374_p1 }
  0xab   :  { %p5377_p4 = pnand %p5376_p3, %p5370_p0 }
  0xad   :  { %5380 = shalt.err (!%p5377_p4)
}
  0xae   :  { %172 = dma.hbm_to_vmem [thread:$0]  %s5796_s12, 16, %s170_s23, [#allocation21]  }
  0xaf   :  { %s5462_s27 = smov [#allocation25]   ;;  %s5463_s29 = smov [#allocation28]  }
  0xb0   :  { %s191_s28 = sshll.u32 %s5462_s27, 4  ;;  %s211_s0 = sshll.u32 %s5463_s29, 4  ;;  %s192_s28 = int_to_ptr.vmem [resolvable:$true] %s191_s28  ;;  %s212_s0 = int_to_ptr.vmem [resolvable:$true] %s211_s0 }
  0xb1   :  { %s5389_s5 = scalar_lea.vmem %s192_s28, 16  ;;  %s5393_s10 = scalar_lea.vmem %s192_s28, 32 }
  0xb2   :  { %p5390_p5 = scmp.ne.s32.totalorder %s192_s28, %s5389_s5  ;;  %p5394_p6 = scmp.lt.s32.totalorder %s192_s28, %s192_s28 }
  0xb3   :  { %p5395_p7 = scmp.lt.s32.totalorder %s5393_s10, %s5389_s5 }
  0xb5   :  { %p5396_p8 = por %p5395_p7, %p5394_p6 }
  0xb7   :  { %p5397_p9 = pnand %p5396_p8, %p5390_p5 }
  0xb9   :  { %5400 = shalt.err (!%p5397_p9)
}
  0xba   :  { %194 = dma.hbm_to_vmem [thread:$0]  %s5799_s15, 16, %s192_s28, [#allocation24]  }
  0xbb   :  { %s5409_s20 = scalar_lea.vmem %s212_s0, 16  ;;  %s5413_s12 = scalar_lea.vmem %s212_s0, 32 }
  0xbc   :  { %p5410_p10 = scmp.ne.s32.totalorder %s212_s0, %s5409_s20  ;;  %p5414_p11 = scmp.lt.s32.totalorder %s212_s0, %s212_s0 }
  0xbd   :  { %p5415_p12 = scmp.lt.s32.totalorder %s5413_s12, %s5409_s20 }
  0xbf   :  { %p5416_p13 = por %p5415_p12, %p5414_p11 }
  0xc1   :  { %p5417_p0 = pnand %p5416_p13, %p5410_p10 }
  0xc3   :  { %5420 = shalt.err (!%p5417_p0)
}
  0xc4   :  { %214 = dma.hbm_to_vmem [thread:$0]  %s5801_s17, 16, %s212_s0, [#allocation27]  }
  0xc5   :  { %5421 = dma.done.wait [#allocation4], 32  }
  0xc6   :  { %5422 = vsyncadd [#allocation4], 4294967264 }
  0xc7   :  { %5423 = dma.done.wait [#allocation6], 720  }
  0xc8   :  { %5424 = vsyncadd [#allocation6], 4294966576 }
  0xc9   :  { %5425 = dma.done.wait [#allocation9], 41088  }
  0xca   :  { %5426 = vsyncadd [#allocation9], 4294926208 }
  0xcb   :  { %5427 = dma.done.wait [#allocation12], 16416  }
  0xcc   :  { %5428 = vsyncadd [#allocation12], 4294950880 }
  0xcd   :  { %5429 = dma.done.wait [#allocation15], 64  }
  0xce   :  { %5430 = vsyncadd [#allocation15], 4294967232 }
  0xcf   :  { %5431 = dma.done.wait [#allocation18], 2064  }
  0xd0   :  { %5432 = vsyncadd [#allocation18], 4294965232 }
  0xd1   :  { %5433 = dma.done.wait [#allocation21], 32  }
  0xd2   :  { %5434 = vsyncadd [#allocation21], 4294967264 }
  0xd3   :  { %5435 = dma.done.wait [#allocation24], 32  }
  0xd4   :  { %5436 = vsyncadd [#allocation24], 4294967264 }
  0xd5   :  { %5437 = dma.done.wait [#allocation27], 32  }
  0xd6   :  { %5438 = vsyncadd [#allocation27], 4294967264  ;;  %v5464_v1 = vmov 0   ;;  %v4853_v2 = vld [vmem:[#allocation5 + $0x4] ss:$20 sps:$4 sm:$0xff]   ;;  %vm330_vm0 = vcmask 130048  }
  0xd7   :  { %366 = vmatprep.mubr.bf16.mxu0 %v5464_v1  ;;  %407 = vmatprep.mubr.bf16.mxu1 %v5464_v1  ;;  %v4855_v3 = vld [vmem:[#allocation5 + $0xc] ss:$20 sps:$4 sm:$0xff]   ;;  %v4858_v5 = vld [vmem:[#allocation5 + $0x8] ss:$20 sps:$4 sm:$0xff]   ;;  %v4859_v8 = vld [vmem:[#allocation5 + $0x10] ss:$20 sps:$4 sm:$0xff]  }
  0xd8   :  { %348 = vmatprep.subr.bf16.mxu0 %v4853_v2  ;;  %v4857_v4 = vld [vmem:[#allocation5] ss:$20 sps:$4 sm:$0xff]   ;;  %v269_v6 = vld [vmem:[#allocation3] sm:$0x3]  ;;  %389 = vmatprep.subr.bf16.mxu1 %v4855_v3  ;;  %v5465_v12 = vmov 0.0   ;;  %vm5466_vm1 = vmmov 0  }
  0xd9   :  { %v270_v7 = vpack.c.bf16 %v269_v6, %v269_v6  ;;  %349 = vmatpush1.bf16.msra.mxu0 %v4857_v4  ;;  %390 = vmatpush1.bf16.msra.mxu1 %v4858_v5  ;;  %v522_v9 = vld [vmem:[#allocation8 + $0x1c0] sm:$0xff]  ;;  %vm4241_vm2 = vcmask 517120   ;;  %vm4263_vm3 = vcmask 1024  }
  0xda   :  { %v526_v10 = vld [vmem:[#allocation8 + $0x1e0] sm:$0xff]  ;;  %4799 = vmatprep.subr.bf16.mxu0 %v5465_v12 }
  0xdb   :  { %v650_v11 = vld [vmem:[#allocation8 + $0x5c0] sm:$0xff]  ;;  %v4343_v13 = vcombine.high %v522_v9, %v526_v10  ;;  %v4342_v17 = vcombine.low %v522_v9, %v526_v10 }
  0xdc   :  { %v654_v14 = vld [vmem:[#allocation8 + $0x5e0] sm:$0xff]  ;;  %4283 = vmatmul.mubr.msk.bf16.vlgmr.msra.gmra.mxu0 %vm330_vm0, %v270_v7  ;;  %4284 = vmatmul.mubr.msk.bf16.vlgmr.msra.gmra.mxu1 %vm330_vm0, %v270_v7 }
  0xdd   :  { %v514_v15 = vld [vmem:[#allocation8 + $0x180] sm:$0xff]  ;;  %v4471_v18 = vcombine.high %v650_v11, %v654_v14  ;;  %4800 = vmatpush3.bf16.msra.mxu0 %v4859_v8  ;;  %4801 = vmatprep.mubr.msk.bf16.mxu0 %vm5466_vm1, %v5465_v12  ;;  %v4470_v26 = vcombine.low %v650_v11, %v654_v14 }
  0xde   :  { %v518_v16 = vld [vmem:[#allocation8 + $0x1a0] sm:$0xff]  ;;  %2428 = vmatprep.subr.bf16.mxu1 %v4343_v13 }
  0xdf   :  { %v4335_v19 = vcombine.high %v514_v15, %v518_v16  ;;  %v506_v20 = vld [vmem:[#allocation8 + $0x140] sm:$0xff]  ;;  %2469 = vmatprep.subr.bf16.mxu0 %v4471_v18  ;;  %2429 = vmatpush1.bf16.msra.mxu1 %v4342_v17  ;;  %v4334_v22 = vcombine.low %v514_v15, %v518_v16 }
  0xe0   :  { %v510_v21 = vld [vmem:[#allocation8 + $0x160] sm:$0xff] }
  0xe1   :  { %v642_v23 = vld [vmem:[#allocation8 + $0x580] sm:$0xff]  ;;  %2430 = vmatprep.subr.bf16.mxu1 %v4335_v19  ;;  %v4327_v25 = vcombine.high %v506_v20, %v510_v21  ;;  %v4326_v30 = vcombine.low %v506_v20, %v510_v21 }
  0xe2   :  { %v646_v24 = vld [vmem:[#allocation8 + $0x5a0] sm:$0xff] }
  0xe3   :  { %v498_v27 = vld [vmem:[#allocation8 + $0x100] sm:$0xff]  ;;  %v4463_v29 = vcombine.high %v642_v23, %v646_v24  ;;  %2431 = vmatpush1.bf16.msra.mxu1 %v4334_v22  ;;  %v4462_v34 = vcombine.low %v642_v23, %v646_v24 }
  0xe4   :  { %v502_v28 = vld [vmem:[#allocation8 + $0x120] sm:$0xff]  ;;  %4802 = vmatmul.mubr.msk.bf16.vlgmr.msra.gmra.mxu0 %vm330_vm0, %v270_v7  ;;  %2432 = vmatprep.subr.bf16.mxu1 %v4327_v25 }
  0xe5   :  { %v634_v31 = vld [vmem:[#allocation8 + $0x540] sm:$0xff]  ;;  %v4319_v33 = vcombine.high %v498_v27, %v502_v28  ;;  %2470 = vmatpush1.bf16.msra.mxu0 %v4470_v26  ;;  %v4318_v38 = vcombine.low %v498_v27, %v502_v28 }
  0xe6   :  { %v638_v32 = vld [vmem:[#allocation8 + $0x560] sm:$0xff]  ;;  %2471 = vmatprep.subr.bf16.mxu0 %v4463_v29 }
  0xe7   :  { %v490_v35 = vld [vmem:[#allocation8 + $0xc0] sm:$0xff]  ;;  %v4455_v37 = vcombine.high %v634_v31, %v638_v32  ;;  %2433 = vmatpush1.bf16.msra.mxu1 %v4326_v30  ;;  %v4454_v42 = vcombine.low %v634_v31, %v638_v32 }
  0xe8   :  { %v494_v36 = vld [vmem:[#allocation8 + $0xe0] sm:$0xff]  ;;  %2434 = vmatprep.subr.bf16.mxu1 %v4319_v33 }
  0xe9   :  { %v626_v39 = vld [vmem:[#allocation8 + $0x500] sm:$0xff]  ;;  %v4311_v41 = vcombine.high %v490_v35, %v494_v36  ;;  %2472 = vmatpush1.bf16.msra.mxu0 %v4462_v34  ;;  %v4310_v47 = vcombine.low %v490_v35, %v494_v36 }
  0xea   :  { %v630_v40 = vld [vmem:[#allocation8 + $0x520] sm:$0xff]  ;;  %2473 = vmatprep.subr.bf16.mxu0 %v4455_v37 }
  0xeb   :  { %v482_v43 = vld [vmem:[#allocation8 + $0x80] sm:$0xff]  ;;  %v4447_v45 = vcombine.high %v626_v39, %v630_v40  ;;  %2435 = vmatpush1.bf16.msra.mxu1 %v4318_v38  ;;  %v4446_v52 = vcombine.low %v626_v39, %v630_v40 }
  0xec   :  { %v486_v44 = vld [vmem:[#allocation8 + $0xa0] sm:$0xff]  ;;  %2436 = vmatprep.subr.bf16.mxu1 %v4311_v41 }
  0xed   :  { %v618_v46 = vld [vmem:[#allocation8 + $0x4c0] sm:$0xff]  ;;  %v4303_v51 = vcombine.high %v482_v43, %v486_v44  ;;  %2474 = vmatpush1.bf16.msra.mxu0 %v4454_v42  ;;  %v4302_v56 = vcombine.low %v482_v43, %v486_v44 }
  0xee   :  { %v622_v48 = vld [vmem:[#allocation8 + $0x4e0] sm:$0xff]  ;;  %2475 = vmatprep.subr.bf16.mxu0 %v4447_v45 }
  0xef   :  { %v474_v49 = vld [vmem:[#allocation8 + $0x40] sm:$0xff]  ;;  %v4439_v55 = vcombine.high %v618_v46, %v622_v48  ;;  %2437 = vmatpush1.bf16.msra.mxu1 %v4310_v47  ;;  %v4438_v60 = vcombine.low %v618_v46, %v622_v48 }
  0xf0   :  { %v478_v50 = vld [vmem:[#allocation8 + $0x60] sm:$0xff]  ;;  %2438 = vmatprep.subr.bf16.mxu1 %v4303_v51 }
  0xf1   :  { %v610_v53 = vld [vmem:[#allocation8 + $0x480] sm:$0xff]  ;;  %v4295_v59 = vcombine.high %v474_v49, %v478_v50  ;;  %2476 = vmatpush1.bf16.msra.mxu0 %v4446_v52  ;;  %v4294_v0 = vcombine.low %v474_v49, %v478_v50 }
  0xf2   :  { %v614_v54 = vld [vmem:[#allocation8 + $0x4a0] sm:$0xff]  ;;  %2477 = vmatprep.subr.bf16.mxu0 %v4439_v55 }
  0xf3   :  { %v466_v57 = vld [vmem:[#allocation8] sm:$0xff]  ;;  %v4431_v63 = vcombine.high %v610_v53, %v614_v54  ;;  %2439 = vmatpush1.bf16.msra.mxu1 %v4302_v56  ;;  %v4430_v5 = vcombine.low %v610_v53, %v614_v54 }
  0xf4   :  { %v470_v58 = vld [vmem:[#allocation8 + $0x20] sm:$0xff]  ;;  %2440 = vmatprep.subr.bf16.mxu1 %v4295_v59 }
  0xf5   :  { %v602_v61 = vld [vmem:[#allocation8 + $0x440] sm:$0xff]  ;;  %v4287_v4 = vcombine.high %v466_v57, %v470_v58  ;;  %2478 = vmatpush1.bf16.msra.mxu0 %v4438_v60  ;;  %v4286_v9 = vcombine.low %v466_v57, %v470_v58 }
  0xf6   :  { %v606_v62 = vld [vmem:[#allocation8 + $0x460] sm:$0xff]  ;;  %2479 = vmatprep.subr.bf16.mxu0 %v4431_v63 }
  0xf7   :  { %v586_v2 = vld [vmem:[#allocation8 + $0x3c0] sm:$0xff]  ;;  %v4423_v8 = vcombine.high %v602_v61, %v606_v62  ;;  %2441 = vmatpush1.bf16.msra.mxu1 %v4294_v0  ;;  %v4422_v14 = vcombine.low %v602_v61, %v606_v62 }
  0xf8   :  { %v590_v3 = vld [vmem:[#allocation8 + $0x3e0] sm:$0xff]  ;;  %2442 = vmatprep.subr.bf16.mxu1 %v4287_v4 }
  0xf9   :  { %v594_v6 = vld [vmem:[#allocation8 + $0x400] sm:$0xff]  ;;  %v4407_v13 = vcombine.high %v586_v2, %v590_v3  ;;  %2480 = vmatpush1.bf16.msra.mxu0 %v4430_v5  ;;  %v4406_v18 = vcombine.low %v586_v2, %v590_v3 }
  0xfa   :  { %v598_v7 = vld [vmem:[#allocation8 + $0x420] sm:$0xff]  ;;  %2481 = vmatprep.subr.bf16.mxu0 %v4423_v8 }
  0xfb   :  { %v578_v10 = vld [vmem:[#allocation8 + $0x380] sm:$0xff]  ;;  %v4415_v17 = vcombine.high %v594_v6, %v598_v7  ;;  %2443 = vmatpush1.bf16.msra.mxu1 %v4286_v9  ;;  %v4414_v22 = vcombine.low %v594_v6, %v598_v7 }
  0xfc   :  { %v582_v11 = vld [vmem:[#allocation8 + $0x3a0] sm:$0xff]  ;;  %2444 = vmatprep.subr.bf16.mxu1 %v4407_v13 }
  0xfd   :  { %v714_v15 = vld [vmem:[#allocation8 + $0x7c0] sm:$0xff]  ;;  %v4399_v21 = vcombine.high %v578_v10, %v582_v11  ;;  %2482 = vmatpush1.bf16.msra.mxu0 %v4422_v14  ;;  %v4398_v26 = vcombine.low %v578_v10, %v582_v11 }
  0xfe   :  { %v718_v16 = vld [vmem:[#allocation8 + $0x7e0] sm:$0xff]  ;;  %2483 = vmatprep.subr.bf16.mxu0 %v4415_v17 }
  0xff   :  { %v570_v19 = vld [vmem:[#allocation8 + $0x340] sm:$0xff]  ;;  %v4535_v25 = vcombine.high %v714_v15, %v718_v16  ;;  %2445 = vmatpush2.bf16.msra.mxu1 %v4406_v18  ;;  %v4534_v30 = vcombine.low %v714_v15, %v718_v16  ;;  %v523_v16 = vld [vmem:[#allocation8 + $0x1c8] sm:$0xff] }
 0x100   :  { %v574_v20 = vld [vmem:[#allocation8 + $0x360] sm:$0xff]  ;;  %2446 = vmatprep.subr.bf16.mxu1 %v4399_v21  ;;  %v527_v18 = vld [vmem:[#allocation8 + $0x1e8] sm:$0xff] }
 0x101   :  { %v706_v23 = vld [vmem:[#allocation8 + $0x780] sm:$0xff]  ;;  %v4391_v29 = vcombine.high %v570_v19, %v574_v20  ;;  %2484 = vmatpush1.bf16.msra.mxu0 %v4414_v22  ;;  %v4390_v34 = vcombine.low %v570_v19, %v574_v20  ;;  %v4344_v20 = vcombine.low %v523_v16, %v527_v18  ;;  %v4345_v21 = vcombine.high %v523_v16, %v527_v18 }
 0x102   :  { %v710_v24 = vld [vmem:[#allocation8 + $0x7a0] sm:$0xff]  ;;  %2485 = vmatprep.subr.bf16.mxu0 %v4535_v25  ;;  %v279_v22 = vlaneseq }
 0x103   :  { %v562_v27 = vld [vmem:[#allocation8 + $0x300] sm:$0xff]  ;;  %v4527_v33 = vcombine.high %v706_v23, %v710_v24  ;;  %2447 = vmatpush2.bf16.msra.mxu1 %v4398_v26  ;;  %v4526_v38 = vcombine.low %v706_v23, %v710_v24  ;;  %v5635_v26 = vld [vmem:[#allocation7] sm:$0x1f] }
 0x104   :  { %v566_v28 = vld [vmem:[#allocation8 + $0x320] sm:$0xff]  ;;  %2448 = vmatprep.subr.bf16.mxu1 %v4391_v29  ;;  %v5629_v23 = vshrl.u32 %v279_v22, 7 }
 0x105   :  { %v698_v31 = vld [vmem:[#allocation8 + $0x740] sm:$0xff]  ;;  %v4383_v37 = vcombine.high %v562_v27, %v566_v28  ;;  %2486 = vmatpush2.bf16.msra.mxu0 %v4534_v30  ;;  %v4382_v42 = vcombine.low %v562_v27, %v566_v28 }
 0x106   :  { %v702_v32 = vld [vmem:[#allocation8 + $0x760] sm:$0xff]  ;;  %2487 = vmatprep.subr.bf16.mxu0 %v4527_v33  ;;  %v5632_v24 = vsub.s32 0, %v5629_v23  ;;  %v289_v25 = vsub.s32 2, %v5629_v23  ;;  %v5638_v27 = vsub.s32 1, %v5629_v23  ;;  %v293_v28 = vsub.s32 3, %v5629_v23 }
 0x107   :  { %v554_v35 = vld [vmem:[#allocation8 + $0x2c0] sm:$0xff]  ;;  %v4519_v41 = vcombine.high %v698_v31, %v702_v32  ;;  %2449 = vmatpush2.bf16.msra.mxu1 %v4390_v34  ;;  %v4518_v46 = vcombine.low %v698_v31, %v702_v32 }
 0x108   :  { %v558_v36 = vld [vmem:[#allocation8 + $0x2e0] sm:$0xff]  ;;  %2450 = vmatprep.subr.bf16.mxu1 %v4383_v37  ;;  %v282_v29 = vrot.slane %v5635_v26, %v5632_v24  ;;  %v290_v30 = vrot.slane %v5635_v26, %v289_v25  ;;  %v286_v31 = vrot.slane %v5635_v26, %v5638_v27  ;;  %v294_v32 = vrot.slane %v5635_v26, %v293_v28 }
 0x109   :  { %v690_v39 = vld [vmem:[#allocation8 + $0x700] sm:$0xff]  ;;  %v4375_v45 = vcombine.high %v554_v35, %v558_v36  ;;  %2488 = vmatpush2.bf16.msra.mxu0 %v4526_v38  ;;  %v4374_v50 = vcombine.low %v554_v35, %v558_v36 }
 0x10a   :  { %v694_v40 = vld [vmem:[#allocation8 + $0x720] sm:$0xff]  ;;  %2489 = vmatprep.subr.bf16.mxu0 %v4519_v41 }
 0x10b   :  { %v546_v43 = vld [vmem:[#allocation8 + $0x280] sm:$0xff]  ;;  %v4511_v49 = vcombine.high %v690_v39, %v694_v40  ;;  %2451 = vmatpush2.bf16.msra.mxu1 %v4382_v42  ;;  %v4510_v52 = vcombine.low %v690_v39, %v694_v40 }
 0x10c   :  { %v550_v44 = vld [vmem:[#allocation8 + $0x2a0] sm:$0xff]  ;;  %2452 = vmatprep.subr.bf16.mxu1 %v4375_v45 }
 0x10d   :  { %v682_v47 = vld [vmem:[#allocation8 + $0x6c0] sm:$0xff]  ;;  %v4367_v51 = vcombine.high %v546_v43, %v550_v44  ;;  %2490 = vmatpush2.bf16.msra.mxu0 %v4518_v46  ;;  %v4366_v56 = vcombine.low %v546_v43, %v550_v44 }
 0x10e   :  { %v686_v48 = vld [vmem:[#allocation8 + $0x6e0] sm:$0xff]  ;;  %2491 = vmatprep.subr.bf16.mxu0 %v4511_v49 }
 0x10f   :  { %v674_v53 = vld [vmem:[#allocation8 + $0x680] sm:$0xff]  ;;  %v4503_v55 = vcombine.high %v682_v47, %v686_v48  ;;  %2453 = vmatpush2.bf16.msra.mxu1 %v4374_v50  ;;  %v4502_v57 = vcombine.low %v682_v47, %v686_v48 }
 0x110   :  { %v678_v54 = vld [vmem:[#allocation8 + $0x6a0] sm:$0xff]  ;;  %2454 = vmatprep.subr.bf16.mxu1 %v4367_v51 }
 0x111   :  { %2492 = vmatpush2.bf16.msra.mxu0 %v4510_v52  ;;  %v4495_v58 = vcombine.high %v674_v53, %v678_v54  ;;  %v4494_v59 = vcombine.low %v674_v53, %v678_v54  ;;  %v538_v60 = vld [vmem:[#allocation8 + $0x240] sm:$0xff]  ;;  %v515_v52 = vld [vmem:[#allocation8 + $0x188] sm:$0xff] }
 0x112   :  { %2493 = vmatprep.subr.bf16.mxu0 %v4503_v55  ;;  %v542_v61 = vld [vmem:[#allocation8 + $0x260] sm:$0xff]  ;;  %v519_v53 = vld [vmem:[#allocation8 + $0x1a8] sm:$0xff] }
 0x113   :  { %2455 = vmatpush2.bf16.msra.mxu1 %v4366_v56  ;;  %v666_v62 = vld [vmem:[#allocation8 + $0x640] sm:$0xff]  ;;  %v4359_v63 = vcombine.high %v538_v60, %v542_v61  ;;  %v4358_v2 = vcombine.low %v538_v60, %v542_v61  ;;  %v4337_v60 = vcombine.high %v515_v52, %v519_v53 }
 0x114   :  { %v670_v0 = vld [vmem:[#allocation8 + $0x660] sm:$0xff] }
 0x115   :  { %2494 = vmatpush2.bf16.msra.mxu0 %v4502_v57  ;;  %v4486_v3 = vcombine.low %v666_v62, %v670_v0  ;;  %v4487_v4 = vcombine.high %v666_v62, %v670_v0  ;;  %2456 = vmatprep.subr.bf16.mxu1 %v4359_v63  ;;  %v530_v5 = vld [vmem:[#allocation8 + $0x200] sm:$0xff]  ;;  %v507_v62 = vld [vmem:[#allocation8 + $0x148] sm:$0xff] }
 0x116   :  { %2495 = vmatprep.subr.bf16.mxu0 %v4495_v58  ;;  %v534_v6 = vld [vmem:[#allocation8 + $0x220] sm:$0xff]  ;;  %v511_v63 = vld [vmem:[#allocation8 + $0x168] sm:$0xff] }
 0x117   :  { %2457 = vmatpush2.bf16.msra.mxu1 %v4358_v2  ;;  %v658_v7 = vld [vmem:[#allocation8 + $0x600] sm:$0xff]  ;;  %v4351_v8 = vcombine.high %v530_v5, %v534_v6  ;;  %v4350_v10 = vcombine.low %v530_v5, %v534_v6  ;;  %v4329_v5 = vcombine.high %v507_v62, %v511_v63 }
 0x118   :  { %v662_v9 = vld [vmem:[#allocation8 + $0x620] sm:$0xff] }
 0x119   :  { %2496 = vmatpush2.bf16.msra.mxu0 %v4494_v59  ;;  %v4478_v11 = vcombine.low %v658_v7, %v662_v9  ;;  %v4479_v13 = vcombine.high %v658_v7, %v662_v9  ;;  %2458 = vmatprep.subr.bf16.mxu1 %v4351_v8  ;;  %v778_v14 = vld [vmem:[#allocation8 + $0x9c0] sm:$0xff]  ;;  %v499_v9 = vld [vmem:[#allocation8 + $0x108] sm:$0xff] }
 0x11a   :  { %2497 = vmatprep.subr.bf16.mxu0 %v4487_v4  ;;  %v782_v15 = vld [vmem:[#allocation8 + $0x9e0] sm:$0xff] }
 0x11b   :  { %2459 = vmatpush2.bf16.msra.mxu1 %v4350_v10  ;;  %v4599_v17 = vcombine.high %v778_v14, %v782_v15  ;;  %v4598_v19 = vcombine.low %v778_v14, %v782_v15  ;;  %v770_v47 = vld [vmem:[#allocation8 + $0x980] sm:$0xff]  ;;  %v503_v10 = vld [vmem:[#allocation8 + $0x128] sm:$0xff]  ;;  %v4328_v14 = vcombine.low %v507_v62, %v511_v63 }
 0x11c   :  { %v774_v48 = vld [vmem:[#allocation8 + $0x9a0] sm:$0xff]  ;;  %v4321_v16 = vcombine.high %v499_v9, %v503_v10  ;;  %v4320_v22 = vcombine.low %v499_v9, %v503_v10  ;;  %v587_v62 = vld [vmem:[#allocation8 + $0x3c8] sm:$0xff] }
 0x11d   :  { %2498 = vmatpush2.bf16.msra.mxu0 %v4486_v3  ;;  %2510 = vmatprep.subr.bf16.mxu1 %v4599_v17  ;;  %v4591_v57 = vcombine.high %v770_v47, %v774_v48  ;;  %v762_v58 = vld [vmem:[#allocation8 + $0x940] sm:$0xff]  ;;  %v4590_v2 = vcombine.low %v770_v47, %v774_v48  ;;  %v4336_v3 = vcombine.low %v515_v52, %v519_v53  ;;  %v467_v52 = vld [vmem:[#allocation8 + $0x8] sm:$0xff] }
 0x11e   :  { %2499 = vmatprep.subr.bf16.mxu0 %v4479_v13  ;;  %v766_v61 = vld [vmem:[#allocation8 + $0x960] sm:$0xff]  ;;  %v471_v53 = vld [vmem:[#allocation8 + $0x28] sm:$0xff] }
 0x11f   :  { %v4583_v4 = vcombine.high %v762_v58, %v766_v61  ;;  %v754_v6 = vld [vmem:[#allocation8 + $0x900] sm:$0xff]  ;;  %v4582_v13 = vcombine.low %v762_v58, %v766_v61  ;;  %v4289_v61 = vcombine.high %v467_v52, %v471_v53  ;;  %v591_v63 = vld [vmem:[#allocation8 + $0x3e8] sm:$0xff] }
 0x120   :  { %v758_v8 = vld [vmem:[#allocation8 + $0x920] sm:$0xff]  ;;  %v643_v10 = vld [vmem:[#allocation8 + $0x588] sm:$0xff] }
 0x121   :  { %2500 = vmatpush2.bf16.msra.mxu0 %v4478_v11  ;;  %v4575_v15 = vcombine.high %v754_v6, %v758_v8  ;;  %v746_v17 = vld [vmem:[#allocation8 + $0x8c0] sm:$0xff] }
 0x122   :  { %2551 = vmatprep.subr.bf16.mxu0 %v4345_v21  ;;  %v750_v18 = vld [vmem:[#allocation8 + $0x8e0] sm:$0xff]  ;;  %v4574_v21 = vcombine.low %v754_v6, %v758_v8  ;;  %v583_v8 = vld [vmem:[#allocation8 + $0x3a8] sm:$0xff] }
 0x19c   :  { %v368_v33 = vpop.f32.mrf.mxu0  ;;  %v409_v34 = vpop.f32.mrf.mxu1 }
 0x19d   :  { %v369_v35 = vadd.f32 %v368_v33, %v282_v29  ;;  %v410_v36 = vadd.f32 %v409_v34, %v290_v30  ;;  %v4567_v29 = vcombine.high %v746_v17, %v750_v18  ;;  %v483_v33 = vld [vmem:[#allocation8 + $0x88] sm:$0xff] }
 0x19e   :  { %v370_v37 = vpop.f32.mrf.mxu0  ;;  %v411_v38 = vpop.f32.mrf.mxu1  ;;  %v487_v34 = vld [vmem:[#allocation8 + $0xa8] sm:$0xff] }
 0x19f   :  { %v458_v39 = vmax.f32 %v410_v36, 0.0  ;;  %v371_v40 = vadd.f32 %v370_v37, %v286_v31  ;;  %v412_v41 = vadd.f32 %v411_v38, %v294_v32  ;;  %v456_v42 = vmax.f32 %v369_v35, 0.0  ;;  %v738_v31 = vld [vmem:[#allocation8 + $0x880] sm:$0xff] }
 0x1a0   :  { %v372_v43 = vpop.f32.mrf.mxu0  ;;  %v413_v44 = vpop.f32.mrf.mxu1  ;;  %v742_v32 = vld [vmem:[#allocation8 + $0x8a0] sm:$0xff]  ;;  %v297_v35 = vsub.s32 4, %v5629_v23  ;;  %v4566_v36 = vcombine.low %v746_v17, %v750_v18  ;;  %v575_v18 = vld [vmem:[#allocation8 + $0x368] sm:$0xff] }
 0x1a1   :  { %v457_v45 = vmax.f32 %v371_v40, 0.0  ;;  %v459_v46 = vmax.f32 %v412_v41, 0.0  ;;  %v5651_v49 = vpack.c.bf16 %v458_v39, %v458_v39  ;;  %v5657_v56 = vpack.c.bf16 %v456_v42, %v456_v42  ;;  %v730_v40 = vld [vmem:[#allocation8 + $0x840] sm:$0xff]  ;;  %v475_v42 = vld [vmem:[#allocation8 + $0x48] sm:$0xff] }
 0x1a2   :  { %v373_v50 = vpop.f32.mrf.mxu0  ;;  %v414_v51 = vpop.f32.mrf.mxu1  ;;  %v4559_v38 = vcombine.high %v738_v31, %v742_v32  ;;  %v4305_v39 = vcombine.high %v483_v33, %v487_v34  ;;  %v734_v41 = vld [vmem:[#allocation8 + $0x860] sm:$0xff]  ;;  %v479_v43 = vld [vmem:[#allocation8 + $0x68] sm:$0xff]  ;;  %v298_v44 = vrot.slane %v5635_v26, %v297_v35 }
 0x1a3   :  { %v5653_v54 = vpack.c.bf16 %v457_v45, %v457_v45  ;;  %v5655_v55 = vpack.c.bf16 %v459_v46, %v459_v46  ;;  %v4558_v45 = vcombine.low %v738_v31, %v742_v32  ;;  %v4304_v46 = vcombine.low %v483_v33, %v487_v34  ;;  %v722_v50 = vld [vmem:[#allocation8 + $0x800] sm:$0xff]  ;;  %v563_v31 = vld [vmem:[#allocation8 + $0x308] sm:$0xff] }
 0x1a4   :  { %v5659_v59 = vpop.f32.mrf.mxu0  ;;  %v4551_v47 = vcombine.high %v730_v40, %v734_v41  ;;  %v4297_v48 = vcombine.high %v475_v42, %v479_v43  ;;  %v726_v51 = vld [vmem:[#allocation8 + $0x820] sm:$0xff]  ;;  %v4550_v58 = vcombine.low %v730_v40, %v734_v41  ;;  %v567_v32 = vld [vmem:[#allocation8 + $0x328] sm:$0xff] }
 0x1a5   :  { %2460 = vmatprep.mubr.bf16.mxu1 %v5653_v54  ;;  %2501 = vmatprep.mubr.bf16.mxu0 %v5655_v55  ;;  %v4543_v26 = vcombine.high %v722_v50, %v726_v51  ;;  %v627_v33 = vld [vmem:[#allocation8 + $0x508] sm:$0xff] }
 0x1a6   :  { %2461 = vmatmul.mubr.bf16.vlgmr.msra.gmra.mxu1 %v5657_v56  ;;  %2502 = vmatmul.mubr.bf16.vlgmr.msra.gmra.mxu0 %v5651_v49  ;;  %v4803_v0 = vpop.f32.mrf.mxu0  ;;  %v631_v34 = vld [vmem:[#allocation8 + $0x528] sm:$0xff] }
 0x1a7   :  { %2511 = vmatpush1.bf16.msra.mxu1 %v4598_v19  ;;  %2552 = vmatpush1.bf16.msra.mxu0 %v4344_v20  ;;  %v491_v19 = vld [vmem:[#allocation8 + $0xc8] sm:$0xff] }
 0x1a8   :  { %2583 = vmatprep.mubr.bf16.mxu0 %v5653_v54  ;;  %2512 = vmatprep.subr.bf16.mxu1 %v4591_v57  ;;  %v453_v7 = vpop.f32.mrf.mxu0  ;;  %v495_v20 = vld [vmem:[#allocation8 + $0xe8] sm:$0xff]  ;;  %v451_v57 = vadd.f32 %v5659_v59, %v298_v44  ;;  %v4409_v59 = vcombine.high %v587_v62, %v591_v63  ;;  %v4384_v44 = vcombine.low %v563_v31, %v567_v32 }
 0x1a9   :  { %2553 = vmatprep.subr.bf16.mxu0 %v4337_v60  ;;  %2542 = vmatprep.mubr.bf16.mxu1 %v5464_v1  ;;  %v4313_v30 = vcombine.high %v491_v19, %v495_v20  ;;  %v4312_v37 = vcombine.low %v491_v19, %v495_v20  ;;  %v4296_v60 = vcombine.low %v475_v42, %v479_v43  ;;  %v651_v0 = vld [vmem:[#allocation8 + $0x5c8] sm:$0xff] }
 0x1aa   :  { %v4804_v11 = vpop.f32.mrf.mxu0  ;;  %v579_v7 = vld [vmem:[#allocation8 + $0x388] sm:$0xff] }
 0x1ab   :  { %2513 = vmatpush1.bf16.msra.mxu1 %v4590_v2  ;;  %2554 = vmatpush1.bf16.msra.mxu0 %v4336_v3  ;;  %v655_v2 = vld [vmem:[#allocation8 + $0x5e8] sm:$0xff]  ;;  %v460_v3 = vmax.f32 %v451_v57, 0.0 }
 0x1ac   :  { %2514 = vmatprep.subr.bf16.mxu1 %v4583_v4  ;;  %2555 = vmatprep.subr.bf16.mxu0 %v4329_v5  ;;  %v4542_v4 = vcombine.low %v722_v50, %v726_v51  ;;  %v4288_v5 = vcombine.low %v467_v52, %v471_v53  ;;  %v4473_v6 = vcombine.high %v651_v0, %v655_v2  ;;  %v647_v11 = vld [vmem:[#allocation8 + $0x5a8] sm:$0xff] }
 0x1ad   :  { %v5672_v9 = vpack.c.bf16 %v460_v3, %v460_v3  ;;  %v4465_v17 = vcombine.high %v643_v10, %v647_v11  ;;  %v635_v19 = vld [vmem:[#allocation8 + $0x548] sm:$0xff] }
 0x1ae   :  { %v639_v20 = vld [vmem:[#allocation8 + $0x568] sm:$0xff] }
 0x1af   :  { %2515 = vmatpush1.bf16.msra.mxu1 %v4582_v13  ;;  %2556 = vmatpush1.bf16.msra.mxu0 %v4328_v14  ;;  %v4408_v13 = vcombine.low %v587_v62, %v591_v63  ;;  %v4472_v14 = vcombine.low %v651_v0, %v655_v2  ;;  %v555_v40 = vld [vmem:[#allocation8 + $0x2c8] sm:$0xff] }
 0x1b0   :  { %2516 = vmatprep.subr.bf16.mxu1 %v4575_v15  ;;  %2557 = vmatprep.subr.bf16.mxu0 %v4321_v16  ;;  %v4401_v15 = vcombine.high %v579_v7, %v583_v8  ;;  %v571_v16 = vld [vmem:[#allocation8 + $0x348] sm:$0xff] }
 0x1b1   :  { %v559_v41 = vld [vmem:[#allocation8 + $0x2e8] sm:$0xff] }
 0x1b2   :  { %v619_v42 = vld [vmem:[#allocation8 + $0x4c8] sm:$0xff]  ;;  %v4376_v53 = vcombine.low %v555_v40, %v559_v41 }
 0x1b3   :  { %2517 = vmatpush1.bf16.msra.mxu1 %v4574_v21  ;;  %2558 = vmatpush1.bf16.msra.mxu0 %v4320_v22  ;;  %v4400_v21 = vcombine.low %v579_v7, %v583_v8  ;;  %v4464_v22 = vcombine.low %v643_v10, %v647_v11  ;;  %v623_v43 = vld [vmem:[#allocation8 + $0x4e8] sm:$0xff] }
 0x1b4   :  { %2518 = vmatprep.subr.bf16.mxu1 %v4567_v29  ;;  %2559 = vmatprep.subr.bf16.mxu0 %v4313_v30  ;;  %v4393_v29 = vcombine.high %v571_v16, %v575_v18  ;;  %v4457_v30 = vcombine.high %v635_v19, %v639_v20  ;;  %v551_v50 = vld [vmem:[#allocation8 + $0x2a8] sm:$0xff]  ;;  %v4440_v57 = vcombine.low %v619_v42, %v623_v43 }
 0x1b5   :  { %v611_v51 = vld [vmem:[#allocation8 + $0x488] sm:$0xff] }
 0x1b6   :  { %v615_v52 = vld [vmem:[#allocation8 + $0x4a8] sm:$0xff] }
 0x1b7   :  { %2519 = vmatpush1.bf16.msra.mxu1 %v4566_v36  ;;  %2560 = vmatpush1.bf16.msra.mxu0 %v4312_v37  ;;  %v4392_v36 = vcombine.low %v571_v16, %v575_v18  ;;  %v4456_v37 = vcombine.low %v635_v19, %v639_v20  ;;  %v603_v62 = vld [vmem:[#allocation8 + $0x448] sm:$0xff]  ;;  %v4432_v2 = vcombine.low %v611_v51, %v615_v52 }
 0x1b8   :  { %2520 = vmatprep.subr.bf16.mxu1 %v4559_v38  ;;  %2561 = vmatprep.subr.bf16.mxu0 %v4305_v39  ;;  %v4385_v38 = vcombine.high %v563_v31, %v567_v32  ;;  %v4449_v39 = vcombine.high %v627_v33, %v631_v34  ;;  %v607_v63 = vld [vmem:[#allocation8 + $0x468] sm:$0xff] }
 0x1b9   :  { %v599_v7 = vld [vmem:[#allocation8 + $0x428] sm:$0xff]  ;;  %v4424_v10 = vcombine.low %v603_v62, %v607_v63 }
 0x1ba   :  { %v779_v16 = vld [vmem:[#allocation8 + $0x9c8] sm:$0xff] }
 0x1bb   :  { %2521 = vmatpush1.bf16.msra.mxu1 %v4558_v45  ;;  %2562 = vmatpush1.bf16.msra.mxu0 %v4304_v46  ;;  %v4448_v45 = vcombine.low %v627_v33, %v631_v34  ;;  %v4377_v46 = vcombine.high %v555_v40, %v559_v41  ;;  %v775_v31 = vld [vmem:[#allocation8 + $0x9a8] sm:$0xff] }
 0x1bc   :  { %2522 = vmatprep.subr.bf16.mxu1 %v4551_v47  ;;  %2563 = vmatprep.subr.bf16.mxu0 %v4297_v48  ;;  %v4441_v47 = vcombine.high %v619_v42, %v623_v43  ;;  %v547_v48 = vld [vmem:[#allocation8 + $0x288] sm:$0xff] }
 0x1bd   :  { %v4368_v0 = vcombine.low %v547_v48, %v551_v50  ;;  %v767_v40 = vld [vmem:[#allocation8 + $0x968] sm:$0xff] }
 0x1bf   :  { %2523 = vmatpush1.bf16.msra.mxu1 %v4550_v58  ;;  %2564 = vmatpush1.bf16.msra.mxu0 %v4296_v60  ;;  %v4369_v58 = vcombine.high %v547_v48, %v551_v50  ;;  %v4433_v60 = vcombine.high %v611_v51, %v615_v52  ;;  %v759_v48 = vld [vmem:[#allocation8 + $0x928] sm:$0xff] }
 0x1c0   :  { %2524 = vmatprep.subr.bf16.mxu1 %v4543_v26  ;;  %2565 = vmatprep.subr.bf16.mxu0 %v4289_v61  ;;  %v539_v26 = vld [vmem:[#allocation8 + $0x248] sm:$0xff] }
 0x1c1   :  { %v543_v61 = vld [vmem:[#allocation8 + $0x268] sm:$0xff] }
 0x1c2   :  { %v4361_v3 = vcombine.high %v539_v26, %v543_v61  ;;  %v4360_v8 = vcombine.low %v539_v26, %v543_v61  ;;  %v751_v26 = vld [vmem:[#allocation8 + $0x8e8] sm:$0xff] }
 0x1c3   :  { %2525 = vmatpush1.bf16.msra.mxu1 %v4542_v4  ;;  %2566 = vmatpush1.bf16.msra.mxu0 %v4288_v5  ;;  %v4425_v4 = vcombine.high %v603_v62, %v607_v63  ;;  %v531_v5 = vld [vmem:[#allocation8 + $0x208] sm:$0xff] }
 0x1c4   :  { %2567 = vmatprep.subr.bf16.mxu0 %v4409_v59  ;;  %2592 = vmatprep.subr.bf16.mxu1 %v4473_v6  ;;  %v535_v59 = vld [vmem:[#allocation8 + $0x228] sm:$0xff] }
 0x1c5   :  { %v595_v6 = vld [vmem:[#allocation8 + $0x408] sm:$0xff]  ;;  %v4353_v11 = vcombine.high %v531_v5, %v535_v59  ;;  %v4352_v18 = vcombine.low %v531_v5, %v535_v59 }
 0x1c6   :  { %2543 = vmatmul.mubr.bf16.vlgmr.msra.gmra.mxu1 %v5672_v9  ;;  %v4416_v19 = vcombine.low %v595_v6, %v599_v7  ;;  %v743_v5 = vld [vmem:[#allocation8 + $0x8a8] sm:$0xff] }
 0x1c7   :  { %2568 = vmatpush2.bf16.msra.mxu0 %v4408_v13  ;;  %2593 = vmatpush1.bf16.msra.mxu1 %v4472_v14  ;;  %v4417_v13 = vcombine.high %v595_v6, %v599_v7  ;;  %v715_v14 = vld [vmem:[#allocation8 + $0x7c8] sm:$0xff] }
 0x1c8   :  { %2624 = vmatprep.mubr.bf16.mxu1 %v5655_v55  ;;  %2569 = vmatprep.subr.bf16.mxu0 %v4401_v15  ;;  %v719_v15 = vld [vmem:[#allocation8 + $0x7e8] sm:$0xff] }
 0x1c9   :  { %2594 = vmatprep.subr.bf16.mxu1 %v4465_v17  ;;  %v783_v17 = vld [vmem:[#allocation8 + $0x9e8] sm:$0xff]  ;;  %v4537_v20 = vcombine.high %v715_v14, %v719_v15  ;;  %v4536_v32 = vcombine.low %v715_v14, %v719_v15 }
 0x1ca   :  { %v4600_v33 = vcombine.low %v779_v16, %v783_v17  ;;  %v735_v14 = vld [vmem:[#allocation8 + $0x868] sm:$0xff] }
 0x1cb   :  { %2570 = vmatpush2.bf16.msra.mxu0 %v4400_v21  ;;  %2595 = vmatpush1.bf16.msra.mxu1 %v4464_v22  ;;  %v4601_v21 = vcombine.high %v779_v16, %v783_v17  ;;  %v707_v22 = vld [vmem:[#allocation8 + $0x788] sm:$0xff] }
 0x1cc   :  { %2571 = vmatprep.subr.bf16.mxu0 %v4393_v29  ;;  %2596 = vmatprep.subr.bf16.mxu1 %v4457_v30  ;;  %v711_v29 = vld [vmem:[#allocation8 + $0x7a8] sm:$0xff] }
 0x1cd   :  { %v771_v30 = vld [vmem:[#allocation8 + $0x988] sm:$0xff]  ;;  %v4529_v34 = vcombine.high %v707_v22, %v711_v29  ;;  %v4528_v41 = vcombine.low %v707_v22, %v711_v29 }
 0x1ce   :  { %v4592_v42 = vcombine.low %v771_v30, %v775_v31  ;;  %v727_v22 = vld [vmem:[#allocation8 + $0x828] sm:$0xff] }
 0x1cf   :  { %2572 = vmatpush2.bf16.msra.mxu0 %v4392_v36  ;;  %2597 = vmatpush1.bf16.msra.mxu1 %v4456_v37  ;;  %v4593_v36 = vcombine.high %v771_v30, %v775_v31  ;;  %v699_v37 = vld [vmem:[#allocation8 + $0x748] sm:$0xff] }
 0x1d0   :  { %2573 = vmatprep.subr.bf16.mxu0 %v4385_v38  ;;  %2598 = vmatprep.subr.bf16.mxu1 %v4449_v39  ;;  %v703_v38 = vld [vmem:[#allocation8 + $0x768] sm:$0xff] }
 0x1d1   :  { %v763_v39 = vld [vmem:[#allocation8 + $0x948] sm:$0xff]  ;;  %v4521_v43 = vcombine.high %v699_v37, %v703_v38  ;;  %v4520_v50 = vcombine.low %v699_v37, %v703_v38  ;;  %v656_v37 = vld [vmem:[#allocation8 + $0x5f0] sm:$0xff] }
 0x1d2   :  { %v4584_v51 = vcombine.low %v763_v39, %v767_v40 }
 0x1d3   :  { %2574 = vmatpush2.bf16.msra.mxu0 %v4384_v44  ;;  %2599 = vmatpush1.bf16.msra.mxu1 %v4448_v45  ;;  %v4585_v44 = vcombine.high %v763_v39, %v767_v40  ;;  %v691_v45 = vld [vmem:[#allocation8 + $0x708] sm:$0xff] }
 0x1d4   :  { %2575 = vmatprep.subr.bf16.mxu0 %v4377_v46  ;;  %2600 = vmatprep.subr.bf16.mxu1 %v4441_v47  ;;  %v695_v46 = vld [vmem:[#allocation8 + $0x728] sm:$0xff] }
 0x1d5   :  { %v755_v47 = vld [vmem:[#allocation8 + $0x908] sm:$0xff]  ;;  %v4513_v52 = vcombine.high %v691_v45, %v695_v46  ;;  %v4512_v61 = vcombine.low %v691_v45, %v695_v46  ;;  %v648_v45 = vld [vmem:[#allocation8 + $0x5b0] sm:$0xff] }
 0x1d6   :  { %v4576_v62 = vcombine.low %v755_v47, %v759_v48 }
 0x1d7   :  { %2576 = vmatpush2.bf16.msra.mxu0 %v4376_v53  ;;  %2601 = vmatpush1.bf16.msra.mxu1 %v4440_v57  ;;  %v4577_v53 = vcombine.high %v755_v47, %v759_v48  ;;  %v683_v57 = vld [vmem:[#allocation8 + $0x6c8] sm:$0xff] }
 0x1d8   :  { %2577 = vmatprep.subr.bf16.mxu0 %v4369_v58  ;;  %2602 = vmatprep.subr.bf16.mxu1 %v4433_v60  ;;  %v687_v58 = vld [vmem:[#allocation8 + $0x6e8] sm:$0xff] }
 0x1d9   :  { %v747_v60 = vld [vmem:[#allocation8 + $0x8c8] sm:$0xff]  ;;  %v4505_v63 = vcombine.high %v683_v57, %v687_v58  ;;  %v4504_v59 = vcombine.low %v683_v57, %v687_v58  ;;  %v640_v57 = vld [vmem:[#allocation8 + $0x570] sm:$0xff] }
 0x1da   :  { %v4568_v6 = vcombine.low %v747_v60, %v751_v26 }
 0x1db   :  { %2578 = vmatpush2.bf16.msra.mxu0 %v4368_v0  ;;  %2603 = vmatpush1.bf16.msra.mxu1 %v4432_v2  ;;  %v4569_v0 = vcombine.high %v747_v60, %v751_v26  ;;  %v675_v2 = vld [vmem:[#allocation8 + $0x688] sm:$0xff] }
 0x1dc   :  { %2579 = vmatprep.subr.bf16.mxu0 %v4361_v3  ;;  %2604 = vmatprep.subr.bf16.mxu1 %v4425_v4  ;;  %v679_v3 = vld [vmem:[#allocation8 + $0x6a8] sm:$0xff] }
 0x1dd   :  { %v739_v4 = vld [vmem:[#allocation8 + $0x888] sm:$0xff]  ;;  %v4497_v7 = vcombine.high %v675_v2, %v679_v3  ;;  %v4496_v15 = vcombine.low %v675_v2, %v679_v3  ;;  %v632_v2 = vld [vmem:[#allocation8 + $0x530] sm:$0xff] }
 0x1de   :  { %v4560_v16 = vcombine.low %v739_v4, %v743_v5 }
 0x1df   :  { %2580 = vmatpush2.bf16.msra.mxu0 %v4360_v8  ;;  %2605 = vmatpush1.bf16.msra.mxu1 %v4424_v10  ;;  %v4561_v8 = vcombine.high %v739_v4, %v743_v5  ;;  %v667_v10 = vld [vmem:[#allocation8 + $0x648] sm:$0xff] }
 0x1e0   :  { %2581 = vmatprep.subr.bf16.mxu0 %v4353_v11  ;;  %2606 = vmatprep.subr.bf16.mxu1 %v4417_v13  ;;  %v671_v11 = vld [vmem:[#allocation8 + $0x668] sm:$0xff] }
 0x1e1   :  { %v731_v13 = vld [vmem:[#allocation8 + $0x848] sm:$0xff]  ;;  %v4489_v17 = vcombine.high %v667_v10, %v671_v11  ;;  %v4488_v29 = vcombine.low %v667_v10, %v671_v11  ;;  %v624_v10 = vld [vmem:[#allocation8 + $0x4f0] sm:$0xff] }
 0x1e2   :  { %v4552_v30 = vcombine.low %v731_v13, %v735_v14 }
 0x1e3   :  { %2582 = vmatpush2.bf16.msra.mxu0 %v4352_v18  ;;  %2607 = vmatpush1.bf16.msra.mxu1 %v4416_v19  ;;  %v4553_v18 = vcombine.high %v731_v13, %v735_v14  ;;  %v659_v19 = vld [vmem:[#allocation8 + $0x608] sm:$0xff] }
 0x1e4   :  { %2608 = vmatprep.subr.bf16.mxu1 %v4537_v20  ;;  %2633 = vmatprep.subr.bf16.mxu0 %v4601_v21  ;;  %v663_v20 = vld [vmem:[#allocation8 + $0x628] sm:$0xff] }
 0x1e5   :  { %v723_v21 = vld [vmem:[#allocation8 + $0x808] sm:$0xff]  ;;  %v4481_v31 = vcombine.high %v659_v19, %v663_v20  ;;  %v4480_v38 = vcombine.low %v659_v19, %v663_v20  ;;  %v616_v19 = vld [vmem:[#allocation8 + $0x4b0] sm:$0xff] }
 0x1e6   :  { %2584 = vmatmul.mubr.bf16.vlgmr.msra.gmra.mxu0 %v5657_v56  ;;  %v4544_v39 = vcombine.low %v723_v21, %v727_v22 }
 0x1e7   :  { %2609 = vmatpush2.bf16.msra.mxu1 %v4536_v32  ;;  %2634 = vmatpush1.bf16.msra.mxu0 %v4600_v33  ;;  %v4545_v32 = vcombine.high %v723_v21, %v727_v22  ;;  %v524_v33 = vld [vmem:[#allocation8 + $0x1d0] sm:$0xff] }
 0x1e8   :  { %2610 = vmatprep.subr.bf16.mxu1 %v4529_v34  ;;  %2635 = vmatprep.subr.bf16.mxu0 %v4593_v36  ;;  %v528_v34 = vld [vmem:[#allocation8 + $0x1f0] sm:$0xff] }
 0x1e9   :  { %2665 = vmatprep.mubr.bf16.mxu0 %v5464_v1  ;;  %v652_v36 = vld [vmem:[#allocation8 + $0x5d0] sm:$0xff]  ;;  %v4347_v40 = vcombine.high %v524_v33, %v528_v34  ;;  %v4346_v46 = vcombine.low %v524_v33, %v528_v34 }
 0x1ea   :  { %v4474_v47 = vcombine.low %v652_v36, %v656_v37  ;;  %v608_v33 = vld [vmem:[#allocation8 + $0x470] sm:$0xff] }
 0x1eb   :  { %2611 = vmatpush2.bf16.msra.mxu1 %v4528_v41  ;;  %2636 = vmatpush1.bf16.msra.mxu0 %v4592_v42  ;;  %v4475_v41 = vcombine.high %v652_v36, %v656_v37  ;;  %v516_v42 = vld [vmem:[#allocation8 + $0x190] sm:$0xff] }
 0x1ec   :  { %2612 = vmatprep.subr.bf16.mxu1 %v4521_v43  ;;  %2637 = vmatprep.subr.bf16.mxu0 %v4585_v44  ;;  %v520_v43 = vld [vmem:[#allocation8 + $0x1b0] sm:$0xff] }
 0x1ed   :  { %v644_v44 = vld [vmem:[#allocation8 + $0x590] sm:$0xff]  ;;  %v4339_v48 = vcombine.high %v516_v42, %v520_v43  ;;  %v4338_v58 = vcombine.low %v516_v42, %v520_v43 }
 0x1ee   :  { %v4466_v60 = vcombine.low %v644_v44, %v648_v45  ;;  %v600_v42 = vld [vmem:[#allocation8 + $0x430] sm:$0xff] }
 0x1ef   :  { %2613 = vmatpush2.bf16.msra.mxu1 %v4520_v50  ;;  %2638 = vmatpush1.bf16.msra.mxu0 %v4584_v51  ;;  %v4467_v50 = vcombine.high %v644_v44, %v648_v45  ;;  %v508_v51 = vld [vmem:[#allocation8 + $0x150] sm:$0xff] }
 0x1f0   :  { %2614 = vmatprep.subr.bf16.mxu1 %v4513_v52  ;;  %2639 = vmatprep.subr.bf16.mxu0 %v4577_v53  ;;  %v512_v52 = vld [vmem:[#allocation8 + $0x170] sm:$0xff] }
 0x1f1   :  { %v636_v53 = vld [vmem:[#allocation8 + $0x550] sm:$0xff]  ;;  %v4331_v26 = vcombine.high %v508_v51, %v512_v52  ;;  %v4330_v3 = vcombine.low %v508_v51, %v512_v52 }
 0x1f2   :  { %v4458_v4 = vcombine.low %v636_v53, %v640_v57  ;;  %v720_v51 = vld [vmem:[#allocation8 + $0x7f0] sm:$0xff] }
 0x1f3   :  { %2615 = vmatpush2.bf16.msra.mxu1 %v4512_v61  ;;  %2640 = vmatpush1.bf16.msra.mxu0 %v4576_v62  ;;  %v4459_v61 = vcombine.high %v636_v53, %v640_v57  ;;  %v500_v62 = vld [vmem:[#allocation8 + $0x110] sm:$0xff] }
 0x1f4   :  { %2616 = vmatprep.subr.bf16.mxu1 %v4505_v63  ;;  %2641 = vmatprep.subr.bf16.mxu0 %v4569_v0  ;;  %v504_v63 = vld [vmem:[#allocation8 + $0x130] sm:$0xff] }
 0x1f5   :  { %v628_v0 = vld [vmem:[#allocation8 + $0x510] sm:$0xff]  ;;  %v4323_v5 = vcombine.high %v500_v62, %v504_v63  ;;  %v4322_v11 = vcombine.low %v500_v62, %v504_v63 }
 0x1f6   :  { %v4450_v13 = vcombine.low %v628_v0, %v632_v2  ;;  %v712_v62 = vld [vmem:[#allocation8 + $0x7b0] sm:$0xff] }
 0x1f7   :  { %2617 = vmatpush2.bf16.msra.mxu1 %v4504_v59  ;;  %2642 = vmatpush1.bf16.msra.mxu0 %v4568_v6  ;;  %v4451_v59 = vcombine.high %v628_v0, %v632_v2  ;;  %v492_v6 = vld [vmem:[#allocation8 + $0xd0] sm:$0xff] }
 0x1f8   :  { %2618 = vmatprep.subr.bf16.mxu1 %v4497_v7  ;;  %2643 = vmatprep.subr.bf16.mxu0 %v4561_v8  ;;  %v496_v7 = vld [vmem:[#allocation8 + $0xf0] sm:$0xff] }
 0x1f9   :  { %v620_v8 = vld [vmem:[#allocation8 + $0x4d0] sm:$0xff]  ;;  %v4315_v14 = vcombine.high %v492_v6, %v496_v7  ;;  %v4314_v20 = vcombine.low %v492_v6, %v496_v7 }
 0x1fa   :  { %v4442_v21 = vcombine.low %v620_v8, %v624_v10  ;;  %v704_v6 = vld [vmem:[#allocation8 + $0x770] sm:$0xff] }
 0x1fb   :  { %2619 = vmatpush2.bf16.msra.mxu1 %v4496_v15  ;;  %2644 = vmatpush1.bf16.msra.mxu0 %v4560_v16  ;;  %v4443_v15 = vcombine.high %v620_v8, %v624_v10  ;;  %v484_v16 = vld [vmem:[#allocation8 + $0x90] sm:$0xff] }
 0x1fc   :  { %2620 = vmatprep.subr.bf16.mxu1 %v4489_v17  ;;  %2645 = vmatprep.subr.bf16.mxu0 %v4553_v18  ;;  %v488_v17 = vld [vmem:[#allocation8 + $0xb0] sm:$0xff] }
 0x1fd   :  { %v612_v18 = vld [vmem:[#allocation8 + $0x490] sm:$0xff]  ;;  %v4307_v22 = vcombine.high %v484_v16, %v488_v17  ;;  %v4306_v34 = vcombine.low %v484_v16, %v488_v17 }
 0x1fe   :  { %v4434_v36 = vcombine.low %v612_v18, %v616_v19  ;;  %v696_v16 = vld [vmem:[#allocation8 + $0x730] sm:$0xff] }
 0x1ff   :  { %2621 = vmatpush2.bf16.msra.mxu1 %v4488_v29  ;;  %2646 = vmatpush1.bf16.msra.mxu0 %v4552_v30  ;;  %v4435_v29 = vcombine.high %v612_v18, %v616_v19  ;;  %v476_v30 = vld [vmem:[#allocation8 + $0x50] sm:$0xff] }
 0x200   :  { %2622 = vmatprep.subr.bf16.mxu1 %v4481_v31  ;;  %2647 = vmatprep.subr.bf16.mxu0 %v4545_v32  ;;  %v480_v31 = vld [vmem:[#allocation8 + $0x70] sm:$0xff] }
 0x201   :  { %v604_v32 = vld [vmem:[#allocation8 + $0x450] sm:$0xff]  ;;  %v4299_v37 = vcombine.high %v476_v30, %v480_v31  ;;  %v4298_v43 = vcombine.low %v476_v30, %v480_v31 }
 0x202   :  { %v4426_v44 = vcombine.low %v604_v32, %v608_v33  ;;  %v688_v30 = vld [vmem:[#allocation8 + $0x6f0] sm:$0xff] }
 0x203   :  { %2623 = vmatpush2.bf16.msra.mxu1 %v4480_v38  ;;  %2648 = vmatpush1.bf16.msra.mxu0 %v4544_v39  ;;  %v4427_v38 = vcombine.high %v604_v32, %v608_v33  ;;  %v468_v39 = vld [vmem:[#allocation8 + $0x10] sm:$0xff] }
 0x204   :  { %2674 = vmatprep.subr.bf16.mxu1 %v4347_v40  ;;  %2715 = vmatprep.subr.bf16.mxu0 %v4475_v41  ;;  %v472_v40 = vld [vmem:[#allocation8 + $0x30] sm:$0xff] }
 0x205   :  { %v596_v41 = vld [vmem:[#allocation8 + $0x410] sm:$0xff]  ;;  %v4291_v45 = vcombine.high %v468_v39, %v472_v40  ;;  %v4290_v52 = vcombine.low %v468_v39, %v472_v40 }
 0x206   :  { %2625 = vmatmul.mubr.bf16.vlgmr.msra.gmra.mxu1 %v5651_v49  ;;  %2666 = vmatmul.mubr.bf16.vlgmr.msra.gmra.mxu0 %v5672_v9  ;;  %v4418_v53 = vcombine.low %v596_v41, %v600_v42  ;;  %v680_v39 = vld [vmem:[#allocation8 + $0x6b0] sm:$0xff] }
 0x207   :  { %2675 = vmatpush1.bf16.msra.mxu1 %v4346_v46  ;;  %2706 = vmatprep.mubr.bf16.mxu1 %v5653_v54  ;;  %v4419_v46 = vcombine.high %v596_v41, %v600_v42 }
 0x208   :  { %2716 = vmatpush1.bf16.msra.mxu0 %v4474_v47  ;;  %2747 = vmatprep.mubr.bf16.mxu0 %v5655_v55  ;;  %v588_v47 = vld [vmem:[#allocation8 + $0x3d0] sm:$0xff] }
 0x209   :  { %2676 = vmatprep.subr.bf16.mxu1 %v4339_v48  ;;  %2717 = vmatprep.subr.bf16.mxu0 %v4467_v50  ;;  %v592_v48 = vld [vmem:[#allocation8 + $0x3f0] sm:$0xff] }
 0x20a   :  { %v716_v50 = vld [vmem:[#allocation8 + $0x7d0] sm:$0xff]  ;;  %v4411_v57 = vcombine.high %v588_v47, %v592_v48  ;;  %v4410_v63 = vcombine.low %v588_v47, %v592_v48 }
 0x20b   :  { %2677 = vmatpush1.bf16.msra.mxu1 %v4338_v58  ;;  %v4539_v58 = vcombine.high %v716_v50, %v720_v51  ;;  %v4538_v0 = vcombine.low %v716_v50, %v720_v51  ;;  %v672_v47 = vld [vmem:[#allocation8 + $0x670] sm:$0xff] }
 0x20c   :  { %2718 = vmatpush1.bf16.msra.mxu0 %v4466_v60  ;;  %2678 = vmatprep.subr.bf16.mxu1 %v4331_v26  ;;  %v580_v60 = vld [vmem:[#allocation8 + $0x390] sm:$0xff] }
 0x20d   :  { %2719 = vmatprep.subr.bf16.mxu0 %v4459_v61  ;;  %v584_v26 = vld [vmem:[#allocation8 + $0x3b0] sm:$0xff] }
 0x20e   :  { %v708_v61 = vld [vmem:[#allocation8 + $0x790] sm:$0xff]  ;;  %v4403_v2 = vcombine.high %v580_v60, %v584_v26  ;;  %v4402_v7 = vcombine.low %v580_v60, %v584_v26 }
 0x20f   :  { %2679 = vmatpush1.bf16.msra.mxu1 %v4330_v3  ;;  %v4531_v3 = vcombine.high %v708_v61, %v712_v62  ;;  %v4530_v8 = vcombine.low %v708_v61, %v712_v62  ;;  %v664_v60 = vld [vmem:[#allocation8 + $0x630] sm:$0xff] }
 0x210   :  { %2720 = vmatpush1.bf16.msra.mxu0 %v4458_v4  ;;  %2680 = vmatprep.subr.bf16.mxu1 %v4323_v5  ;;  %v572_v4 = vld [vmem:[#allocation8 + $0x350] sm:$0xff] }
 0x211   :  { %2721 = vmatprep.subr.bf16.mxu0 %v4451_v59  ;;  %v576_v5 = vld [vmem:[#allocation8 + $0x370] sm:$0xff] }
 0x212   :  { %v700_v59 = vld [vmem:[#allocation8 + $0x750] sm:$0xff]  ;;  %v4395_v10 = vcombine.high %v572_v4, %v576_v5  ;;  %v4394_v17 = vcombine.low %v572_v4, %v576_v5  ;;  %v529_v4 = vld [vmem:[#allocation8 + $0x1f8] sm:$0xff] }
 0x213   :  { %2681 = vmatpush1.bf16.msra.mxu1 %v4322_v11  ;;  %v4523_v11 = vcombine.high %v700_v59, %v704_v6  ;;  %v4522_v18 = vcombine.low %v700_v59, %v704_v6 }
 0x214   :  { %2722 = vmatpush1.bf16.msra.mxu0 %v4450_v13  ;;  %2682 = vmatprep.subr.bf16.mxu1 %v4315_v14  ;;  %v564_v13 = vld [vmem:[#allocation8 + $0x310] sm:$0xff] }
 0x215   :  { %2723 = vmatprep.subr.bf16.mxu0 %v4443_v15  ;;  %v568_v14 = vld [vmem:[#allocation8 + $0x330] sm:$0xff] }
 0x216   :  { %v692_v15 = vld [vmem:[#allocation8 + $0x710] sm:$0xff]  ;;  %v4387_v19 = vcombine.high %v564_v13, %v568_v14  ;;  %v4386_v31 = vcombine.low %v564_v13, %v568_v14  ;;  %v521_v13 = vld [vmem:[#allocation8 + $0x1b8] sm:$0xff] }
 0x217   :  { %2683 = vmatpush1.bf16.msra.mxu1 %v4314_v20  ;;  %v4515_v20 = vcombine.high %v692_v15, %v696_v16  ;;  %v4514_v32 = vcombine.low %v692_v15, %v696_v16 }
 0x218   :  { %2724 = vmatpush1.bf16.msra.mxu0 %v4442_v21  ;;  %2684 = vmatprep.subr.bf16.mxu1 %v4307_v22  ;;  %v556_v21 = vld [vmem:[#allocation8 + $0x2d0] sm:$0xff] }
 0x219   :  { %2725 = vmatprep.subr.bf16.mxu0 %v4435_v29  ;;  %v560_v22 = vld [vmem:[#allocation8 + $0x2f0] sm:$0xff] }
 0x21a   :  { %v684_v29 = vld [vmem:[#allocation8 + $0x6d0] sm:$0xff]  ;;  %v4379_v33 = vcombine.high %v556_v21, %v560_v22  ;;  %v4378_v40 = vcombine.low %v556_v21, %v560_v22  ;;  %v513_v21 = vld [vmem:[#allocation8 + $0x178] sm:$0xff] }
 0x21b   :  { %2685 = vmatpush1.bf16.msra.mxu1 %v4306_v34  ;;  %v4507_v34 = vcombine.high %v684_v29, %v688_v30  ;;  %v4506_v41 = vcombine.low %v684_v29, %v688_v30 }
 0x21c   :  { %2726 = vmatpush1.bf16.msra.mxu0 %v4434_v36  ;;  %2686 = vmatprep.subr.bf16.mxu1 %v4299_v37  ;;  %v548_v36 = vld [vmem:[#allocation8 + $0x290] sm:$0xff] }
 0x21d   :  { %2727 = vmatprep.subr.bf16.mxu0 %v4427_v38  ;;  %v552_v37 = vld [vmem:[#allocation8 + $0x2b0] sm:$0xff] }
 0x21e   :  { %v676_v38 = vld [vmem:[#allocation8 + $0x690] sm:$0xff]  ;;  %v4371_v42 = vcombine.high %v548_v36, %v552_v37  ;;  %v4370_v48 = vcombine.low %v548_v36, %v552_v37  ;;  %v505_v36 = vld [vmem:[#allocation8 + $0x138] sm:$0xff] }
 0x21f   :  { %2687 = vmatpush1.bf16.msra.mxu1 %v4298_v43  ;;  %v4499_v43 = vcombine.high %v676_v38, %v680_v39  ;;  %v4498_v50 = vcombine.low %v676_v38, %v680_v39 }
 0x220   :  { %2728 = vmatpush1.bf16.msra.mxu0 %v4426_v44  ;;  %2688 = vmatprep.subr.bf16.mxu1 %v4291_v45  ;;  %v540_v44 = vld [vmem:[#allocation8 + $0x250] sm:$0xff] }
 0x221   :  { %2729 = vmatprep.subr.bf16.mxu0 %v4419_v46  ;;  %v544_v45 = vld [vmem:[#allocation8 + $0x270] sm:$0xff] }
 0x222   :  { %v668_v46 = vld [vmem:[#allocation8 + $0x650] sm:$0xff]  ;;  %v4363_v51 = vcombine.high %v540_v44, %v544_v45  ;;  %v4362_v26 = vcombine.low %v540_v44, %v544_v45 }
 0x223   :  { %2689 = vmatpush1.bf16.msra.mxu1 %v4290_v52  ;;  %v4491_v52 = vcombine.high %v668_v46, %v672_v47  ;;  %v4490_v61 = vcombine.low %v668_v46, %v672_v47 }
 0x224   :  { %2730 = vmatpush1.bf16.msra.mxu0 %v4418_v53  ;;  %2690 = vmatprep.subr.bf16.mxu1 %v4411_v57  ;;  %v532_v53 = vld [vmem:[#allocation8 + $0x210] sm:$0xff] }
 0x225   :  { %2731 = vmatprep.subr.bf16.mxu0 %v4539_v58  ;;  %v536_v57 = vld [vmem:[#allocation8 + $0x230] sm:$0xff] }
 0x226   :  { %v660_v58 = vld [vmem:[#allocation8 + $0x610] sm:$0xff]  ;;  %v4355_v62 = vcombine.high %v532_v53, %v536_v57  ;;  %v4354_v5 = vcombine.low %v532_v53, %v536_v57 }
 0x227   :  { %2691 = vmatpush2.bf16.msra.mxu1 %v4410_v63  ;;  %v4483_v63 = vcombine.high %v660_v58, %v664_v60  ;;  %v4482_v59 = vcombine.low %v660_v58, %v664_v60 }
 0x228   :  { %2732 = vmatpush2.bf16.msra.mxu0 %v4538_v0  ;;  %2692 = vmatprep.subr.bf16.mxu1 %v4403_v2  ;;  %v780_v0 = vld [vmem:[#allocation8 + $0x9d0] sm:$0xff] }
 0x229   :  { %2733 = vmatprep.subr.bf16.mxu0 %v4531_v3  ;;  %v784_v2 = vld [vmem:[#allocation8 + $0x9f0] sm:$0xff]  ;;  %v525_v3 = vld [vmem:[#allocation8 + $0x1d8] sm:$0xff] }
 0x22a   :  { %v4603_v6 = vcombine.high %v780_v0, %v784_v2  ;;  %v4602_v14 = vcombine.low %v780_v0, %v784_v2  ;;  %v4348_v15 = vcombine.low %v525_v3, %v529_v4 }
 0x22b   :  { %2693 = vmatpush2.bf16.msra.mxu1 %v4402_v7  ;;  %v4349_v7 = vcombine.high %v525_v3, %v529_v4 }
 0x22c   :  { %2734 = vmatpush2.bf16.msra.mxu0 %v4530_v8  ;;  %2694 = vmatprep.subr.bf16.mxu1 %v4395_v10  ;;  %v772_v8 = vld [vmem:[#allocation8 + $0x990] sm:$0xff] }
 0x22d   :  { %2735 = vmatprep.subr.bf16.mxu0 %v4523_v11  ;;  %v776_v10 = vld [vmem:[#allocation8 + $0x9b0] sm:$0xff]  ;;  %v517_v11 = vld [vmem:[#allocation8 + $0x198] sm:$0xff] }
 0x22e   :  { %v4595_v16 = vcombine.high %v772_v8, %v776_v10  ;;  %v4594_v22 = vcombine.low %v772_v8, %v776_v10  ;;  %v4340_v29 = vcombine.low %v517_v11, %v521_v13 }
 0x22f   :  { %2695 = vmatpush2.bf16.msra.mxu1 %v4394_v17  ;;  %v4341_v17 = vcombine.high %v517_v11, %v521_v13 }
 0x230   :  { %2736 = vmatpush2.bf16.msra.mxu0 %v4522_v18  ;;  %2696 = vmatprep.subr.bf16.mxu1 %v4387_v19  ;;  %v764_v18 = vld [vmem:[#allocation8 + $0x950] sm:$0xff] }
 0x231   :  { %2737 = vmatprep.subr.bf16.mxu0 %v4515_v20  ;;  %v768_v19 = vld [vmem:[#allocation8 + $0x970] sm:$0xff]  ;;  %v509_v20 = vld [vmem:[#allocation8 + $0x158] sm:$0xff] }
 0x232   :  { %v4587_v30 = vcombine.high %v764_v18, %v768_v19  ;;  %v4586_v37 = vcombine.low %v764_v18, %v768_v19  ;;  %v4332_v38 = vcombine.low %v509_v20, %v513_v21 }
 0x233   :  { %2697 = vmatpush2.bf16.msra.mxu1 %v4386_v31  ;;  %v4333_v31 = vcombine.high %v509_v20, %v513_v21  ;;  %v5686_v21 = vld [vmem:[#allocation10] sm:$0xff] }
 0x234   :  { %2738 = vmatpush2.bf16.msra.mxu0 %v4514_v32  ;;  %2698 = vmatprep.subr.bf16.mxu1 %v4379_v33  ;;  %v756_v32 = vld [vmem:[#allocation8 + $0x910] sm:$0xff] }
 0x235   :  { %2739 = vmatprep.subr.bf16.mxu0 %v4507_v34  ;;  %v760_v33 = vld [vmem:[#allocation8 + $0x930] sm:$0xff]  ;;  %v501_v34 = vld [vmem:[#allocation8 + $0x118] sm:$0xff] }
 0x236   :  { %v4579_v39 = vcombine.high %v756_v32, %v760_v33  ;;  %v4578_v44 = vcombine.low %v756_v32, %v760_v33  ;;  %v4324_v45 = vcombine.low %v501_v34, %v505_v36  ;;  %v585_v32 = vld [vmem:[#allocation8 + $0x3b8] sm:$0xff] }
 0x237   :  { %2699 = vmatpush2.bf16.msra.mxu1 %v4378_v40  ;;  %v4325_v40 = vcombine.high %v501_v34, %v505_v36  ;;  %v791_v34 = vrot.slane %v5686_v21, %v5632_v24 }
 0x238   :  { %2740 = vmatpush2.bf16.msra.mxu0 %v4506_v41  ;;  %2700 = vmatprep.subr.bf16.mxu1 %v4371_v42  ;;  %v752_v41 = vld [vmem:[#allocation8 + $0x8f0] sm:$0xff]  ;;  %v493_v42 = vld [vmem:[#allocation8 + $0xd8] sm:$0xff] }
 0x239   :  { %2741 = vmatprep.subr.bf16.mxu0 %v4499_v43  ;;  %v497_v43 = vld [vmem:[#allocation8 + $0xf8] sm:$0xff] }
 0x23a   :  { %v4317_v47 = vcombine.high %v493_v42, %v497_v43  ;;  %v4316_v57 = vcombine.low %v493_v42, %v497_v43  ;;  %v573_v42 = vld [vmem:[#allocation8 + $0x358] sm:$0xff] }
 0x23b   :  { %2701 = vmatpush2.bf16.msra.mxu1 %v4370_v48  ;;  %v740_v48 = vld [vmem:[#allocation8 + $0x890] sm:$0xff]  ;;  %v577_v43 = vld [vmem:[#allocation8 + $0x378] sm:$0xff] }
 0x23c   :  { %2742 = vmatpush2.bf16.msra.mxu0 %v4498_v50  ;;  %2702 = vmatprep.subr.bf16.mxu1 %v4363_v51  ;;  %v744_v50 = vld [vmem:[#allocation8 + $0x8b0] sm:$0xff]  ;;  %v485_v51 = vld [vmem:[#allocation8 + $0x98] sm:$0xff] }
 0x23d   :  { %2743 = vmatprep.subr.bf16.mxu0 %v4491_v52  ;;  %v489_v52 = vld [vmem:[#allocation8 + $0xb8] sm:$0xff]  ;;  %v4563_v58 = vcombine.high %v740_v48, %v744_v50  ;;  %v4562_v0 = vcombine.low %v740_v48, %v744_v50 }
 0x23e   :  { %v4309_v60 = vcombine.high %v485_v51, %v489_v52  ;;  %v4308_v2 = vcombine.low %v485_v51, %v489_v52  ;;  %v4397_v52 = vcombine.high %v573_v42, %v577_v43 }
 0x23f   :  { %2703 = vmatpush2.bf16.msra.mxu1 %v4362_v26  ;;  %v732_v26 = vld [vmem:[#allocation8 + $0x850] sm:$0xff] }
 0x240   :  { %2744 = vmatpush2.bf16.msra.mxu0 %v4490_v61  ;;  %2704 = vmatprep.subr.bf16.mxu1 %v4355_v62  ;;  %v736_v61 = vld [vmem:[#allocation8 + $0x870] sm:$0xff]  ;;  %v477_v62 = vld [vmem:[#allocation8 + $0x58] sm:$0xff] }
 0x241   :  { %2745 = vmatprep.subr.bf16.mxu0 %v4483_v63  ;;  %v481_v63 = vld [vmem:[#allocation8 + $0x78] sm:$0xff]  ;;  %v4555_v3 = vcombine.high %v732_v26, %v736_v61  ;;  %v4554_v8 = vcombine.low %v732_v26, %v736_v61 }
 0x242   :  { %v4301_v4 = vcombine.high %v477_v62, %v481_v63  ;;  %v4300_v10 = vcombine.low %v477_v62, %v481_v63  ;;  %v565_v26 = vld [vmem:[#allocation8 + $0x318] sm:$0xff] }
 0x243   :  { %2705 = vmatpush2.bf16.msra.mxu1 %v4354_v5  ;;  %v724_v5 = vld [vmem:[#allocation8 + $0x810] sm:$0xff]  ;;  %v569_v61 = vld [vmem:[#allocation8 + $0x338] sm:$0xff] }
 0x244   :  { %2746 = vmatpush2.bf16.msra.mxu0 %v4482_v59  ;;  %2756 = vmatprep.subr.bf16.mxu1 %v4603_v6  ;;  %v728_v59 = vld [vmem:[#allocation8 + $0x830] sm:$0xff]  ;;  %v469_v6 = vld [vmem:[#allocation8 + $0x18] sm:$0xff] }
 0x245   :  { %2797 = vmatprep.subr.bf16.mxu0 %v4349_v7  ;;  %v473_v7 = vld [vmem:[#allocation8 + $0x38] sm:$0xff]  ;;  %v4547_v11 = vcombine.high %v724_v5, %v728_v59  ;;  %v4546_v18 = vcombine.low %v724_v5, %v728_v59 }
 0x246   :  { %2707 = vmatmul.mubr.bf16.vlgmr.msra.gmra.mxu1 %v5657_v56  ;;  %v4293_v13 = vcombine.high %v469_v6, %v473_v7  ;;  %v4292_v19 = vcombine.low %v469_v6, %v473_v7  ;;  %v625_v5 = vld [vmem:[#allocation8 + $0x4f8] sm:$0xff] }
 0x247   :  { %2748 = vmatmul.mubr.bf16.vlgmr.msra.gmra.mxu0 %v5651_v49  ;;  %2757 = vmatpush1.bf16.msra.mxu1 %v4602_v14  ;;  %v653_v14 = vld [vmem:[#allocation8 + $0x5d8] sm:$0xff] }
 0x248   :  { %2798 = vmatpush1.bf16.msra.mxu0 %v4348_v15  ;;  %2829 = vmatprep.mubr.bf16.mxu0 %v5653_v54  ;;  %v748_v54 = vld [vmem:[#allocation8 + $0x8d0] sm:$0xff]  ;;  %v657_v15 = vld [vmem:[#allocation8 + $0x5f8] sm:$0xff] }
 0x249   :  { %2758 = vmatprep.subr.bf16.mxu1 %v4595_v16  ;;  %2799 = vmatprep.subr.bf16.mxu0 %v4341_v17  ;;  %v4571_v46 = vcombine.high %v748_v54, %v752_v41  ;;  %v4570_v53 = vcombine.low %v748_v54, %v752_v41  ;;  %v589_v16 = vld [vmem:[#allocation8 + $0x3d8] sm:$0xff]  ;;  %v4477_v20 = vcombine.high %v653_v14, %v657_v15 }
 0x24a   :  { %2788 = vmatprep.mubr.bf16.mxu1 %v5464_v1  ;;  %v593_v17 = vld [vmem:[#allocation8 + $0x3f8] sm:$0xff]  ;;  %v4476_v33 = vcombine.low %v653_v14, %v657_v15 }
 0x24b   :  { %2759 = vmatpush1.bf16.msra.mxu1 %v4594_v22  ;;  %v4413_v22 = vcombine.high %v589_v16, %v593_v17  ;;  %v4412_v36 = vcombine.low %v589_v16, %v593_v17  ;;  %v557_v59 = vld [vmem:[#allocation8 + $0x2d8] sm:$0xff] }
 0x24c   :  { %2800 = vmatpush1.bf16.msra.mxu0 %v4340_v29  ;;  %2760 = vmatprep.subr.bf16.mxu1 %v4587_v30  ;;  %v645_v29 = vld [vmem:[#allocation8 + $0x598] sm:$0xff] }
 0x24d   :  { %2801 = vmatprep.subr.bf16.mxu0 %v4333_v31  ;;  %v649_v30 = vld [vmem:[#allocation8 + $0x5b8] sm:$0xff] }
 0x24e   :  { %v581_v31 = vld [vmem:[#allocation8 + $0x398] sm:$0xff] }
 0x24f   :  { %2761 = vmatpush1.bf16.msra.mxu1 %v4586_v37  ;;  %v4469_v37 = vcombine.high %v645_v29, %v649_v30  ;;  %v4404_v48 = vcombine.low %v581_v31, %v585_v32  ;;  %v561_v6 = vld [vmem:[#allocation8 + $0x2f8] sm:$0xff] }
 0x250   :  { %2802 = vmatpush1.bf16.msra.mxu0 %v4332_v38  ;;  %2762 = vmatprep.subr.bf16.mxu1 %v4579_v39  ;;  %v4405_v38 = vcombine.high %v581_v31, %v585_v32  ;;  %v637_v39 = vld [vmem:[#allocation8 + $0x558] sm:$0xff] }
 0x251   :  { %2803 = vmatprep.subr.bf16.mxu0 %v4325_v40  ;;  %v641_v40 = vld [vmem:[#allocation8 + $0x578] sm:$0xff] }
 0x252   :  { %v4461_v50 = vcombine.high %v637_v39, %v641_v40  ;;  %v617_v14 = vld [vmem:[#allocation8 + $0x4b8] sm:$0xff] }
 0x253   :  { %2763 = vmatpush1.bf16.msra.mxu1 %v4578_v44  ;;  %v549_v15 = vld [vmem:[#allocation8 + $0x298] sm:$0xff] }
 0x254   :  { %2804 = vmatpush1.bf16.msra.mxu0 %v4324_v45  ;;  %2764 = vmatprep.subr.bf16.mxu1 %v4571_v46  ;;  %v4468_v45 = vcombine.low %v645_v29, %v649_v30  ;;  %v553_v16 = vld [vmem:[#allocation8 + $0x2b8] sm:$0xff] }
 0x255   :  { %2805 = vmatprep.subr.bf16.mxu0 %v4317_v47  ;;  %v609_v29 = vld [vmem:[#allocation8 + $0x478] sm:$0xff] }
 0x256   :  { %v541_v30 = vld [vmem:[#allocation8 + $0x258] sm:$0xff] }
 0x257   :  { %2765 = vmatpush1.bf16.msra.mxu1 %v4570_v53  ;;  %v629_v53 = vld [vmem:[#allocation8 + $0x518] sm:$0xff] }
 0x258   :  { %2806 = vmatpush1.bf16.msra.mxu0 %v4316_v57  ;;  %2766 = vmatprep.subr.bf16.mxu1 %v4563_v58  ;;  %v633_v57 = vld [vmem:[#allocation8 + $0x538] sm:$0xff] }
 0x259   :  { %2807 = vmatprep.subr.bf16.mxu0 %v4309_v60  ;;  %v4452_v7 = vcombine.low %v629_v53, %v633_v57  ;;  %v545_v31 = vld [vmem:[#allocation8 + $0x278] sm:$0xff] }
 0x25b   :  { %2767 = vmatpush1.bf16.msra.mxu1 %v4562_v0  ;;  %v4396_v0 = vcombine.low %v573_v42, %v577_v43 }
 0x25c   :  { %2808 = vmatpush1.bf16.msra.mxu0 %v4308_v2  ;;  %2768 = vmatprep.subr.bf16.mxu1 %v4555_v3  ;;  %v4453_v2 = vcombine.high %v629_v53, %v633_v57  ;;  %v4389_v3 = vcombine.high %v565_v26, %v569_v61 }
 0x25d   :  { %2809 = vmatprep.subr.bf16.mxu0 %v4301_v4  ;;  %v621_v4 = vld [vmem:[#allocation8 + $0x4d8] sm:$0xff] }
 0x25e   :  { %v4444_v17 = vcombine.low %v621_v4, %v625_v5 }
 0x25f   :  { %2769 = vmatpush1.bf16.msra.mxu1 %v4554_v8  ;;  %v4388_v8 = vcombine.low %v565_v26, %v569_v61  ;;  %v713_v26 = vld [vmem:[#allocation8 + $0x7b8] sm:$0xff] }
 0x260   :  { %2810 = vmatpush1.bf16.msra.mxu0 %v4300_v10  ;;  %2770 = vmatprep.subr.bf16.mxu1 %v4547_v11  ;;  %v4445_v10 = vcombine.high %v621_v4, %v625_v5  ;;  %v4381_v11 = vcombine.high %v557_v59, %v561_v6  ;;  %v773_v61 = vld [vmem:[#allocation8 + $0x998] sm:$0xff] }
 0x261   :  { %2811 = vmatprep.subr.bf16.mxu0 %v4293_v13  ;;  %v613_v13 = vld [vmem:[#allocation8 + $0x498] sm:$0xff] }
 0x262   :  { %v4436_v32 = vcombine.low %v613_v13, %v617_v14  ;;  %v705_v4 = vld [vmem:[#allocation8 + $0x778] sm:$0xff] }
 0x263   :  { %2771 = vmatpush1.bf16.msra.mxu1 %v4546_v18  ;;  %v4380_v18 = vcombine.low %v557_v59, %v561_v6  ;;  %v765_v59 = vld [vmem:[#allocation8 + $0x958] sm:$0xff] }
 0x264   :  { %2812 = vmatpush1.bf16.msra.mxu0 %v4292_v19  ;;  %2838 = vmatprep.subr.bf16.mxu1 %v4477_v20  ;;  %v4437_v19 = vcombine.high %v613_v13, %v617_v14  ;;  %v4373_v20 = vcombine.high %v549_v15, %v553_v16  ;;  %v769_v6 = vld [vmem:[#allocation8 + $0x978] sm:$0xff] }
 0x265   :  { %2813 = vmatprep.subr.bf16.mxu0 %v4413_v22  ;;  %v605_v22 = vld [vmem:[#allocation8 + $0x458] sm:$0xff]  ;;  %v4589_v14 = vcombine.high %v765_v59, %v769_v6 }
 0x266   :  { %2789 = vmatmul.mubr.bf16.vlgmr.msra.gmra.mxu1 %v5672_v9  ;;  %v2462_v54 = vpop.f32.mrf.mxu1  ;;  %v2503_v41 = vpop.f32.mrf.mxu0 }
 0x267   :  { %v2463_v44 = vadd.f32 %v2462_v54, %v791_v34  ;;  %2839 = vmatpush1.bf16.msra.mxu1 %v4476_v33  ;;  %2870 = vmatprep.mubr.bf16.mxu1 %v5655_v55  ;;  %v4460_v55 = vcombine.low %v637_v39, %v641_v40  ;;  %v4372_v33 = vcombine.low %v549_v15, %v553_v16  ;;  %v533_v39 = vld [vmem:[#allocation8 + $0x218] sm:$0xff] }
 0x268   :  { %2814 = vmatpush2.bf16.msra.mxu0 %v4412_v36  ;;  %v5692_v46 = vpop.f32.mrf.mxu1  ;;  %v5694_v47 = vpop.f32.mrf.mxu0  ;;  %2840 = vmatprep.subr.bf16.mxu1 %v4469_v37  ;;  %v4429_v34 = vcombine.high %v605_v22, %v609_v29  ;;  %v4365_v36 = vcombine.high %v541_v30, %v545_v31  ;;  %v597_v37 = vld [vmem:[#allocation8 + $0x418] sm:$0xff]  ;;  %v4428_v54 = vcombine.low %v605_v22, %v609_v29 }
 0x269   :  { %v5696_v51 = vadd.f32 %v2503_v41, %v2463_v44  ;;  %2815 = vmatprep.subr.bf16.mxu0 %v4405_v38  ;;  %v601_v38 = vld [vmem:[#allocation8 + $0x438] sm:$0xff]  ;;  %v4364_v41 = vcombine.low %v541_v30, %v545_v31 }
 0x26a   :  { %v2466_v58 = vpop.f32.mrf.mxu1  ;;  %v2507_v60 = vpop.f32.mrf.mxu0  ;;  %v537_v40 = vld [vmem:[#allocation8 + $0x238] sm:$0xff]  ;;  %v4421_v42 = vcombine.high %v597_v37, %v601_v38 }
 0x26b   :  { %2841 = vmatpush1.bf16.msra.mxu1 %v4468_v45  ;;  %v4357_v43 = vcombine.high %v533_v39, %v537_v40  ;;  %v717_v44 = vld [vmem:[#allocation8 + $0x7d8] sm:$0xff]  ;;  %v4356_v53 = vcombine.low %v533_v39, %v537_v40 }
 0x26c   :  { %2816 = vmatpush2.bf16.msra.mxu0 %v4404_v48  ;;  %v2467_v62 = vpop.f32.mrf.mxu1  ;;  %v2508_v63 = vpop.f32.mrf.mxu0  ;;  %2842 = vmatprep.subr.bf16.mxu1 %v4461_v50  ;;  %v721_v45 = vld [vmem:[#allocation8 + $0x7f8] sm:$0xff] }
 0x26d   :  { %2817 = vmatprep.subr.bf16.mxu0 %v4397_v52  ;;  %v781_v48 = vld [vmem:[#allocation8 + $0x9d8] sm:$0xff]  ;;  %v4420_v52 = vcombine.low %v597_v37, %v601_v38  ;;  %v4541_v57 = vcombine.high %v717_v44, %v721_v45  ;;  %v4540_v62 = vcombine.low %v717_v44, %v721_v45 }
 0x26e   :  { %v785_v50 = vld [vmem:[#allocation8 + $0x9f8] sm:$0xff] }
 0x26f   :  { %2843 = vmatpush1.bf16.msra.mxu1 %v4460_v55  ;;  %v4605_v58 = vcombine.high %v781_v48, %v785_v50  ;;  %v709_v60 = vld [vmem:[#allocation8 + $0x798] sm:$0xff]  ;;  %v4604_v63 = vcombine.low %v781_v48, %v785_v50 }
 0x270   :  { %2818 = vmatpush2.bf16.msra.mxu0 %v4396_v0  ;;  %2844 = vmatprep.subr.bf16.mxu1 %v4453_v2  ;;  %v777_v55 = vld [vmem:[#allocation8 + $0x9b8] sm:$0xff]  ;;  %v4533_v0 = vcombine.high %v709_v60, %v713_v26 }
 0x271   :  { %2819 = vmatprep.subr.bf16.mxu0 %v4389_v3  ;;  %v4597_v2 = vcombine.high %v773_v61, %v777_v55  ;;  %v701_v3 = vld [vmem:[#allocation8 + $0x758] sm:$0xff] }
 0x272   :  { %v4525_v13 = vcombine.high %v701_v3, %v705_v4  ;;  %v693_v15 = vld [vmem:[#allocation8 + $0x718] sm:$0xff] }
 0x273   :  { %2845 = vmatpush1.bf16.msra.mxu1 %v4452_v7  ;;  %v697_v16 = vld [vmem:[#allocation8 + $0x738] sm:$0xff] }
 0x274   :  { %2820 = vmatpush2.bf16.msra.mxu0 %v4388_v8  ;;  %2846 = vmatprep.subr.bf16.mxu1 %v4445_v10  ;;  %v4532_v8 = vcombine.low %v709_v60, %v713_v26  ;;  %v4517_v22 = vcombine.high %v693_v15, %v697_v16  ;;  %v685_v30 = vld [vmem:[#allocation8 + $0x6d8] sm:$0xff] }
 0x275   :  { %2821 = vmatprep.subr.bf16.mxu0 %v4381_v11  ;;  %v4596_v11 = vcombine.low %v773_v61, %v777_v55  ;;  %v689_v31 = vld [vmem:[#allocation8 + $0x6f8] sm:$0xff] }
 0x276   :  { %v677_v38 = vld [vmem:[#allocation8 + $0x698] sm:$0xff] }
 0x277   :  { %2847 = vmatpush1.bf16.msra.mxu1 %v4444_v17  ;;  %v681_v39 = vld [vmem:[#allocation8 + $0x6b8] sm:$0xff] }
 0x278   :  { %2822 = vmatpush2.bf16.msra.mxu0 %v4380_v18  ;;  %2848 = vmatprep.subr.bf16.mxu1 %v4437_v19  ;;  %v757_v18 = vld [vmem:[#allocation8 + $0x918] sm:$0xff]  ;;  %v4524_v19 = vcombine.low %v701_v3, %v705_v4  ;;  %v4501_v44 = vcombine.high %v677_v38, %v681_v39 }
 0x279   :  { %2823 = vmatprep.subr.bf16.mxu0 %v4373_v20  ;;  %v4588_v20 = vcombine.low %v765_v59, %v769_v6  ;;  %v741_v40 = vld [vmem:[#allocation8 + $0x898] sm:$0xff] }
 0x27a   :  { %v669_v48 = vld [vmem:[#allocation8 + $0x658] sm:$0xff] }
 0x27b   :  { %2849 = vmatpush1.bf16.msra.mxu1 %v4436_v32  ;;  %v749_v32 = vld [vmem:[#allocation8 + $0x8d8] sm:$0xff] }
 0x27c   :  { %2824 = vmatpush2.bf16.msra.mxu0 %v4372_v33  ;;  %2850 = vmatprep.subr.bf16.mxu1 %v4429_v34  ;;  %v753_v33 = vld [vmem:[#allocation8 + $0x8f8] sm:$0xff]  ;;  %v4516_v34 = vcombine.low %v693_v15, %v697_v16  ;;  %v4868_v16 = vld [vmem:[#allocation11 + $0x64] ss:$8 sps:$4 sm:$0xff]  }
 0x27d   :  { %2825 = vmatprep.subr.bf16.mxu0 %v4365_v36  ;;  %v4509_v36 = vcombine.high %v685_v30, %v689_v31  ;;  %v4573_v37 = vcombine.high %v749_v32, %v753_v33  ;;  %v673_v50 = vld [vmem:[#allocation8 + $0x678] sm:$0xff] }
 0x27e   :  { %v4493_v26 = vcombine.high %v669_v48, %v673_v50  ;;  %v661_v55 = vld [vmem:[#allocation8 + $0x618] sm:$0xff] }
 0x27f   :  { %2851 = vmatpush1.bf16.msra.mxu1 %v4428_v54  ;;  %v745_v54 = vld [vmem:[#allocation8 + $0x8b8] sm:$0xff] }
 0x280   :  { %2826 = vmatpush2.bf16.msra.mxu0 %v4364_v41  ;;  %2852 = vmatprep.subr.bf16.mxu1 %v4421_v42  ;;  %v4508_v41 = vcombine.low %v685_v30, %v689_v31  ;;  %v795_v42 = vrot.slane %v5686_v21, %v5638_v27  ;;  %v4565_v45 = vcombine.high %v741_v40, %v745_v54  ;;  %v4860_v15 = vld [vmem:[#allocation11 + $0x70] ss:$8 sps:$4 sm:$0xff]  }
 0x281   :  { %2827 = vmatprep.subr.bf16.mxu0 %v4357_v43  ;;  %v4572_v43 = vcombine.low %v749_v32, %v753_v33  ;;  %v4564_v60 = vcombine.low %v741_v40, %v745_v54  ;;  %v4872_v30 = vld [vmem:[#allocation11 + $0x50] ss:$8 sps:$4 sm:$0xff]   ;;  %v4880_v32 = vld [vmem:[#allocation11 + $0x44] ss:$8 sps:$4 sm:$0xff]   ;;  %v4878_v33 = vld [vmem:[#allocation11 + $0x40] ss:$8 sps:$4 sm:$0xff]  }
 0x282   :  { %v4895_v40 = vld [vmem:[#allocation11 + $0x124] ss:$8 sps:$4 sm:$0xff]   ;;  %v4890_v54 = vld [vmem:[#allocation11 + $0x20] ss:$8 sps:$4 sm:$0xff]  }
 0x283   :  { %2853 = vmatpush1.bf16.msra.mxu1 %v4420_v52  ;;  %v733_v52 = vld [vmem:[#allocation8 + $0x858] sm:$0xff] }
 0x284   :  { %2828 = vmatpush2.bf16.msra.mxu0 %v4356_v53  ;;  %2854 = vmatprep.subr.bf16.mxu1 %v4541_v57  ;;  %v737_v53 = vld [vmem:[#allocation8 + $0x878] sm:$0xff]  ;;  %v4500_v57 = vcombine.low %v677_v38, %v681_v39  ;;  %v4892_v39 = vld [vmem:[#allocation11 + $0x24] ss:$8 sps:$4 sm:$0xff]  }
 0x285   :  { %2879 = vmatprep.subr.bf16.mxu0 %v4605_v58  ;;  %v2465_v58 = vadd.f32 %v5692_v46, %v795_v42  ;;  %v4557_v61 = vcombine.high %v733_v52, %v737_v53  ;;  %v4556_v4 = vcombine.low %v733_v52, %v737_v53  ;;  %v4887_v38 = vld [vmem:[#allocation11 + $0x130] ss:$8 sps:$4 sm:$0xff]   ;;  %v4898_v42 = vld [vmem:[#allocation11 + $0x14] ss:$8 sps:$4 sm:$0xff]   ;;  %v4902_v52 = vld [vmem:[#allocation11] ss:$8 sps:$4 sm:$0xff]  }
 0x286   :  { %v2544_v5 = vpop.f32.mrf.mxu1  ;;  %v4905_v53 = vld [vmem:[#allocation11 + $0x100] ss:$8 sps:$4 sm:$0xff]  }
 0x287   :  { %v5699_v7 = vadd.f32 %v2544_v5, %v5696_v51  ;;  %2830 = vmatmul.mubr.bf16.vlgmr.msra.gmra.mxu0 %v5657_v56  ;;  %2855 = vmatpush2.bf16.msra.mxu1 %v4540_v62  ;;  %v761_v51 = vld [vmem:[#allocation8 + $0x938] sm:$0xff]  ;;  %v2506_v3 = vadd.f32 %v5694_v47, %v2465_v58 }
 0x288   :  { %2880 = vmatpush1.bf16.msra.mxu0 %v4604_v63  ;;  %v5702_v10 = vpop.f32.mrf.mxu1  ;;  %2856 = vmatprep.subr.bf16.mxu1 %v4533_v0  ;;  %v4581_v29 = vcombine.high %v757_v18, %v761_v51  ;;  %v665_v62 = vld [vmem:[#allocation8 + $0x638] sm:$0xff] }
 0x289   :  { %2881 = vmatprep.subr.bf16.mxu0 %v4597_v2  ;;  %2911 = vmatprep.mubr.bf16.mxu0 %v5464_v1  ;;  %v4580_v1 = vcombine.low %v757_v18, %v761_v51  ;;  %v725_v63 = vld [vmem:[#allocation8 + $0x818] sm:$0xff]  ;;  %v4492_v2 = vcombine.low %v669_v48, %v673_v50  ;;  %v4485_v5 = vcombine.high %v661_v55, %v665_v62  ;;  %v4904_v48 = vld [vmem:[#allocation11 + $0x4] ss:$8 sps:$4 sm:$0xff]  }
 0x28a   :  { %v2548_v17 = vpop.f32.mrf.mxu1  ;;  %v729_v0 = vld [vmem:[#allocation8 + $0x838] sm:$0xff]  ;;  %v2547_v59 = vadd.f32 %v5702_v10, %v2506_v3  ;;  %v4484_v6 = vcombine.low %v661_v55, %v665_v62  ;;  %v4866_v10 = vld [vmem:[#allocation11 + $0x60] ss:$8 sps:$4 sm:$0xff]   ;;  %v4907_v50 = vld [vmem:[#allocation11 + $0x104] ss:$8 sps:$4 sm:$0xff]  }
 0x28b   :  { %2857 = vmatpush2.bf16.msra.mxu1 %v4532_v8  ;;  %v4549_v46 = vcombine.high %v725_v63, %v729_v0  ;;  %v4548_v8 = vcombine.low %v725_v63, %v729_v0  ;;  %v4863_v47 = vld [vmem:[#allocation11 + $0x170] ss:$8 sps:$4 sm:$0xff]   ;;  %v4871_v17 = vld [vmem:[#allocation11 + $0x164] ss:$8 sps:$4 sm:$0xff]   ;;  %v4913_v58 = vld [vmem:[#allocation11 + $0x1f4] ss:$8 sps:$4 sm:$0xff]  }
 0x28c   :  { %2882 = vmatpush1.bf16.msra.mxu0 %v4596_v11  ;;  %v2549_v56 = vpop.f32.mrf.mxu1  ;;  %2858 = vmatprep.subr.bf16.mxu1 %v4525_v13  ;;  %v4862_v11 = vld [vmem:[#allocation11 + $0x74] ss:$8 sps:$4 sm:$0xff]   ;;  %v4916_v55 = vld [vmem:[#allocation11 + $0xe4] ss:$8 sps:$4 sm:$0xff]   ;;  %v4914_v3 = vld [vmem:[#allocation11 + $0xe0] ss:$8 sps:$4 sm:$0xff]  }
 0x28d   :  { %2883 = vmatprep.subr.bf16.mxu0 %v4589_v14  ;;  %v4865_v13 = vld [vmem:[#allocation11 + $0x174] ss:$8 sps:$4 sm:$0xff]   ;;  %v2921_v14 = vmax.f32 %v2547_v59, 0.0  ;;  %v4869_v56 = vld [vmem:[#allocation11 + $0x160] ss:$8 sps:$4 sm:$0xff]  }
 0x28e   :  { %v4919_v62 = vld [vmem:[#allocation11 + $0x1e4] ss:$8 sps:$4 sm:$0xff]  }
 0x28f   :  { %2859 = vmatpush2.bf16.msra.mxu1 %v4524_v19  ;;  %v2929_v18 = vpack.c.bf16 %v2921_v14, %v2921_v14  ;;  %v4920_v14 = vld [vmem:[#allocation11 + $0xd0] ss:$8 sps:$4 sm:$0xff]  }
 0x290   :  { %2884 = vmatpush1.bf16.msra.mxu0 %v4588_v20  ;;  %2860 = vmatprep.subr.bf16.mxu1 %v4517_v22  ;;  %v4874_v20 = vld [vmem:[#allocation11 + $0x54] ss:$8 sps:$4 sm:$0xff]  }
 0x291   :  { %2885 = vmatprep.subr.bf16.mxu0 %v4581_v29  ;;  %v4877_v22 = vld [vmem:[#allocation11 + $0x154] ss:$8 sps:$4 sm:$0xff]  }
 0x293   :  { %2861 = vmatpush2.bf16.msra.mxu1 %v4516_v34  ;;  %v4881_v34 = vld [vmem:[#allocation11 + $0x140] ss:$8 sps:$4 sm:$0xff]  }
 0x294   :  { %2886 = vmatpush1.bf16.msra.mxu0 %v4580_v1  ;;  %2862 = vmatprep.subr.bf16.mxu1 %v4509_v36  ;;  %v4886_v1 = vld [vmem:[#allocation11 + $0x34] ss:$8 sps:$4 sm:$0xff]  }
 0x295   :  { %2887 = vmatprep.subr.bf16.mxu0 %v4573_v37  ;;  %v4889_v36 = vld [vmem:[#allocation11 + $0x134] ss:$8 sps:$4 sm:$0xff]   ;;  %v4884_v37 = vld [vmem:[#allocation11 + $0x30] ss:$8 sps:$4 sm:$0xff]  }
 0x297   :  { %2863 = vmatpush2.bf16.msra.mxu1 %v4508_v41  ;;  %v4893_v41 = vld [vmem:[#allocation11 + $0x120] ss:$8 sps:$4 sm:$0xff]  }
 0x298   :  { %2888 = vmatpush1.bf16.msra.mxu0 %v4572_v43  ;;  %2864 = vmatprep.subr.bf16.mxu1 %v4501_v44  ;;  %v4901_v43 = vld [vmem:[#allocation11 + $0x114] ss:$8 sps:$4 sm:$0xff]   ;;  %v4896_v44 = vld [vmem:[#allocation11 + $0x10] ss:$8 sps:$4 sm:$0xff]  }
 0x299   :  { %2889 = vmatprep.subr.bf16.mxu0 %v4565_v45  ;;  %v4899_v45 = vld [vmem:[#allocation11 + $0x110] ss:$8 sps:$4 sm:$0xff]  }
 0x29b   :  { %2865 = vmatpush2.bf16.msra.mxu1 %v4500_v57  ;;  %v4910_v57 = vld [vmem:[#allocation11 + $0xf4] ss:$8 sps:$4 sm:$0xff]  }
 0x29c   :  { %2890 = vmatpush1.bf16.msra.mxu0 %v4564_v60  ;;  %2866 = vmatprep.subr.bf16.mxu1 %v4493_v26  ;;  %v803_v60 = vrot.slane %v5686_v21, %v293_v28  ;;  %v4908_v26 = vld [vmem:[#allocation11 + $0xf0] ss:$8 sps:$4 sm:$0xff]   ;;  %v4922_v28 = vld [vmem:[#allocation11 + $0xd4] ss:$8 sps:$4 sm:$0xff]  }
 0x29d   :  { %2891 = vmatprep.subr.bf16.mxu0 %v4557_v61  ;;  %v4911_v61 = vld [vmem:[#allocation11 + $0x1f0] ss:$8 sps:$4 sm:$0xff]  }
 0x29f   :  { %2867 = vmatpush2.bf16.msra.mxu1 %v4492_v2 }
 0x2a0   :  { %2892 = vmatpush1.bf16.msra.mxu0 %v4556_v4  ;;  %2868 = vmatprep.subr.bf16.mxu1 %v4485_v5 }
 0x2a1   :  { %2893 = vmatprep.subr.bf16.mxu0 %v4549_v46  ;;  %v4917_v46 = vld [vmem:[#allocation11 + $0x1e0] ss:$8 sps:$4 sm:$0xff]  }
 0x2a3   :  { %2869 = vmatpush2.bf16.msra.mxu1 %v4484_v6  ;;  %v4925_v6 = vld [vmem:[#allocation11 + $0x1d4] ss:$8 sps:$4 sm:$0xff]  }
 0x2a4   :  { %2894 = vmatpush1.bf16.msra.mxu0 %v4548_v8  ;;  %3716 = vmatprep.subr.bf16.mxu1 %v4862_v11 }
 0x2a5   :  { %3757 = vmatprep.subr.bf16.mxu0 %v4865_v13 }
 0x2a6   :  { %v5710_v51 = vpop.f32.mrf.mxu0  ;;  %2871 = vmatmul.mubr.bf16.vlgmr.msra.gmra.mxu1 %v5651_v49  ;;  %v4875_v49 = vld [vmem:[#allocation11 + $0x150] ss:$8 sps:$4 sm:$0xff]  }
 0x2a7   :  { %2912 = vmatmul.mubr.bf16.vlgmr.msra.gmra.mxu0 %v5672_v9  ;;  %3717 = vmatpush1.bf16.msra.mxu1 %v4860_v15  ;;  %v4883_v9 = vld [vmem:[#allocation11 + $0x144] ss:$8 sps:$4 sm:$0xff]  }
 0x2a8   :  { %3748 = vmatprep.mubr.bf16.mxu1 %v2929_v18  ;;  %3758 = vmatpush1.bf16.msra.mxu0 %v4863_v47  ;;  %v5714_v19 = vpop.f32.mrf.mxu0 }
 0x2a9   :  { %3718 = vmatprep.subr.bf16.mxu1 %v4868_v16  ;;  %3759 = vmatprep.subr.bf16.mxu0 %v4871_v17  ;;  %v2588_v2 = vadd.f32 %v5714_v19, %v803_v60  ;;  %v4923_v16 = vld [vmem:[#allocation11 + $0x1d0] ss:$8 sps:$4 sm:$0xff]   ;;  %v4928_v17 = vld [vmem:[#allocation11 + $0xc4] ss:$8 sps:$4 sm:$0xff]  }
 0x2aa   :  { %v2589_v29 = vpop.f32.mrf.mxu0  ;;  %v5009_v60 = vld [vmem:[#allocation11 + $0x364] ss:$8 sps:$4 sm:$0xff]  }
 0x2ab   :  { %3719 = vmatpush1.bf16.msra.mxu1 %v4866_v10  ;;  %v4931_v10 = vld [vmem:[#allocation11 + $0x1c4] ss:$8 sps:$4 sm:$0xff]   ;;  %v4937_v29 = vld [vmem:[#allocation11 + $0x1b4] ss:$8 sps:$4 sm:$0xff]  }
 0x2ac   :  { %3760 = vmatpush1.bf16.msra.mxu0 %v4869_v56  ;;  %v2590_v31 = vpop.f32.mrf.mxu0  ;;  %3720 = vmatprep.subr.bf16.mxu1 %v4874_v20  ;;  %v4926_v56 = vld [vmem:[#allocation11 + $0xc0] ss:$8 sps:$4 sm:$0xff]  }
 0x2ad   :  { %3761 = vmatprep.subr.bf16.mxu0 %v4877_v22  ;;  %v4929_v20 = vld [vmem:[#allocation11 + $0x1c0] ss:$8 sps:$4 sm:$0xff]   ;;  %v4934_v22 = vld [vmem:[#allocation11 + $0xb4] ss:$8 sps:$4 sm:$0xff]   ;;  %v4932_v31 = vld [vmem:[#allocation11 + $0xb0] ss:$8 sps:$4 sm:$0xff]  }
 0x2af   :  { %3721 = vmatpush1.bf16.msra.mxu1 %v4872_v30  ;;  %v799_v30 = vrot.slane %v5686_v21, %v289_v25  ;;  %v4944_v25 = vld [vmem:[#allocation11 + $0x90] ss:$8 sps:$4 sm:$0xff]  }
 0x2b0   :  { %3762 = vmatpush1.bf16.msra.mxu0 %v4875_v49  ;;  %3722 = vmatprep.subr.bf16.mxu1 %v4880_v32  ;;  %v4935_v49 = vld [vmem:[#allocation11 + $0x1b0] ss:$8 sps:$4 sm:$0xff]   ;;  %v4940_v32 = vld [vmem:[#allocation11 + $0xa4] ss:$8 sps:$4 sm:$0xff]  }
 0x2b1   :  { %3763 = vmatprep.subr.bf16.mxu0 %v4883_v9  ;;  %v4943_v9 = vld [vmem:[#allocation11 + $0x1a4] ss:$8 sps:$4 sm:$0xff]  }
 0x2b3   :  { %3723 = vmatpush1.bf16.msra.mxu1 %v4878_v33  ;;  %v2586_v33 = vadd.f32 %v5710_v51, %v799_v30  ;;  %v4950_v51 = vld [vmem:[#allocation11 + $0x80] ss:$8 sps:$4 sm:$0xff]   ;;  %v5028_v30 = vld [vmem:[#allocation11 + $0x3f0] ss:$8 sps:$4 sm:$0xff]  }
 0x2b4   :  { %3764 = vmatpush1.bf16.msra.mxu0 %v4881_v34  ;;  %3724 = vmatprep.subr.bf16.mxu1 %v4886_v1  ;;  %v4938_v34 = vld [vmem:[#allocation11 + $0xa0] ss:$8 sps:$4 sm:$0xff]  }
 0x2b5   :  { %3765 = vmatprep.subr.bf16.mxu0 %v4889_v36  ;;  %v4941_v1 = vld [vmem:[#allocation11 + $0x1a0] ss:$8 sps:$4 sm:$0xff]   ;;  %v4946_v36 = vld [vmem:[#allocation11 + $0x94] ss:$8 sps:$4 sm:$0xff]  }
 0x2b7   :  { %3725 = vmatpush1.bf16.msra.mxu1 %v4884_v37 }
 0x2b8   :  { %3766 = vmatpush1.bf16.msra.mxu0 %v4887_v38  ;;  %3726 = vmatprep.subr.bf16.mxu1 %v4892_v39  ;;  %v4949_v38 = vld [vmem:[#allocation11 + $0x194] ss:$8 sps:$4 sm:$0xff]   ;;  %v4947_v39 = vld [vmem:[#allocation11 + $0x190] ss:$8 sps:$4 sm:$0xff]  }
 0x2b9   :  { %3767 = vmatprep.subr.bf16.mxu0 %v4895_v40  ;;  %v4952_v40 = vld [vmem:[#allocation11 + $0x84] ss:$8 sps:$4 sm:$0xff]  }
 0x2bb   :  { %3727 = vmatpush1.bf16.msra.mxu1 %v4890_v54 }
 0x2bc   :  { %3768 = vmatpush1.bf16.msra.mxu0 %v4893_v41  ;;  %3728 = vmatprep.subr.bf16.mxu1 %v4898_v42  ;;  %v4955_v41 = vld [vmem:[#allocation11 + $0x184] ss:$8 sps:$4 sm:$0xff]   ;;  %v2920_v42 = vmax.f32 %v5699_v7, 0.0  ;;  %v4959_v7 = vld [vmem:[#allocation11 + $0x260] ss:$8 sps:$4 sm:$0xff]  }
 0x2bd   :  { %3769 = vmatprep.subr.bf16.mxu0 %v4901_v43  ;;  %v4953_v43 = vld [vmem:[#allocation11 + $0x180] ss:$8 sps:$4 sm:$0xff]  }
 0x2bf   :  { %3729 = vmatpush1.bf16.msra.mxu1 %v4896_v44  ;;  %v4958_v44 = vld [vmem:[#allocation11 + $0x274] ss:$8 sps:$4 sm:$0xff]  }
 0x2c0   :  { %3770 = vmatpush1.bf16.msra.mxu0 %v4899_v45  ;;  %3730 = vmatprep.subr.bf16.mxu1 %v4904_v48  ;;  %v5006_v48 = vld [vmem:[#allocation11 + $0x374] ss:$8 sps:$4 sm:$0xff]  }
 0x2c1   :  { %3771 = vmatprep.subr.bf16.mxu0 %v4907_v50  ;;  %v4956_v50 = vld [vmem:[#allocation11 + $0x270] ss:$8 sps:$4 sm:$0xff]  }
 0x2c3   :  { %3731 = vmatpush1.bf16.msra.mxu1 %v4902_v52  ;;  %v2928_v52 = vpack.c.bf16 %v2920_v42, %v2920_v42  ;;  %v5039_v42 = vld [vmem:[#allocation11 + $0x3c4] ss:$8 sps:$4 sm:$0xff]  }
 0x2c4   :  { %3772 = vmatpush1.bf16.msra.mxu0 %v4905_v53  ;;  %3732 = vmatprep.subr.bf16.mxu1 %v4910_v57  ;;  %v4961_v53 = vld [vmem:[#allocation11 + $0x264] ss:$8 sps:$4 sm:$0xff]   ;;  %v5004_v57 = vld [vmem:[#allocation11 + $0x370] ss:$8 sps:$4 sm:$0xff]  }
 0x2c5   :  { %3773 = vmatprep.subr.bf16.mxu0 %v4913_v58 }
 0x2c6   :  { %v2626_v63 = vpop.f32.mrf.mxu1  ;;  %v2667_v0 = vpop.f32.mrf.mxu0 }
 0x2c7   :  { %3733 = vmatpush2.bf16.msra.mxu1 %v4908_v26  ;;  %v2627_v37 = vadd.f32 %v2626_v63, %v2586_v33  ;;  %v4964_v26 = vld [vmem:[#allocation11 + $0x254] ss:$8 sps:$4 sm:$0xff]   ;;  %v4967_v63 = vld [vmem:[#allocation11 + $0x244] ss:$8 sps:$4 sm:$0xff]  }
 0x2c8   :  { %3774 = vmatpush2.bf16.msra.mxu0 %v4911_v61  ;;  %v2628_v4 = vpop.f32.mrf.mxu1  ;;  %v2669_v5 = vpop.f32.mrf.mxu0  ;;  %3734 = vmatprep.subr.bf16.mxu1 %v4916_v55  ;;  %v5007_v61 = vld [vmem:[#allocation11 + $0x360] ss:$8 sps:$4 sm:$0xff]   ;;  %v5012_v55 = vld [vmem:[#allocation11 + $0x354] ss:$8 sps:$4 sm:$0xff]  }
 0x2c9   :  { %v2629_v59 = vadd.f32 %v2628_v4, %v2588_v2  ;;  %3775 = vmatprep.subr.bf16.mxu0 %v4919_v62  ;;  %v2668_v54 = vadd.f32 %v2667_v0, %v2627_v37  ;;  %v4962_v62 = vld [vmem:[#allocation11 + $0x250] ss:$8 sps:$4 sm:$0xff]   ;;  %v5015_v2 = vld [vmem:[#allocation11 + $0x344] ss:$8 sps:$4 sm:$0xff]   ;;  %v4970_v4 = vld [vmem:[#allocation11 + $0x234] ss:$8 sps:$4 sm:$0xff]  }
 0x2ca   :  { %v2630_v8 = vpop.f32.mrf.mxu1  ;;  %v2671_v11 = vpop.f32.mrf.mxu0  ;;  %v5010_v0 = vld [vmem:[#allocation11 + $0x350] ss:$8 sps:$4 sm:$0xff]   ;;  %v5036_v37 = vld [vmem:[#allocation11 + $0x3d4] ss:$8 sps:$4 sm:$0xff]  }
 0x2cb   :  { %v2670_v13 = vadd.f32 %v2669_v5, %v2629_v59  ;;  %3735 = vmatpush2.bf16.msra.mxu1 %v4914_v3  ;;  %v2922_v45 = vmax.f32 %v2668_v54, 0.0  ;;  %v4965_v3 = vld [vmem:[#allocation11 + $0x240] ss:$8 sps:$4 sm:$0xff]   ;;  %v4973_v59 = vld [vmem:[#allocation11 + $0x224] ss:$8 sps:$4 sm:$0xff]  }
 0x2cc   :  { %3776 = vmatpush2.bf16.msra.mxu0 %v4917_v46  ;;  %v2631_v15 = vpop.f32.mrf.mxu1  ;;  %v2672_v47 = vpop.f32.mrf.mxu0  ;;  %3736 = vmatprep.subr.bf16.mxu1 %v4922_v28  ;;  %v5013_v5 = vld [vmem:[#allocation11 + $0x340] ss:$8 sps:$4 sm:$0xff]   ;;  %v5018_v46 = vld [vmem:[#allocation11 + $0x334] ss:$8 sps:$4 sm:$0xff]   ;;  %v4968_v28 = vld [vmem:[#allocation11 + $0x230] ss:$8 sps:$4 sm:$0xff]  }
 0x2cd   :  { %v2923_v18 = vmax.f32 %v2670_v13, 0.0  ;;  %3777 = vmatprep.subr.bf16.mxu0 %v4925_v6  ;;  %v2930_v58 = vpack.c.bf16 %v2922_v45, %v2922_v45  ;;  %v5016_v6 = vld [vmem:[#allocation11 + $0x330] ss:$8 sps:$4 sm:$0xff]   ;;  %v5021_v8 = vld [vmem:[#allocation11 + $0x324] ss:$8 sps:$4 sm:$0xff]  }
 0x2ce   :  { %v4971_v11 = vld [vmem:[#allocation11 + $0x220] ss:$8 sps:$4 sm:$0xff]   ;;  %v4976_v13 = vld [vmem:[#allocation11 + $0x214] ss:$8 sps:$4 sm:$0xff]   ;;  %v4974_v47 = vld [vmem:[#allocation11 + $0x210] ss:$8 sps:$4 sm:$0xff]  }
 0x2cf   :  { %v2931_v19 = vpack.c.bf16 %v2923_v18, %v2923_v18  ;;  %3737 = vmatpush2.bf16.msra.mxu1 %v4920_v14  ;;  %v5019_v14 = vld [vmem:[#allocation11 + $0x320] ss:$8 sps:$4 sm:$0xff]   ;;  %v5024_v15 = vld [vmem:[#allocation11 + $0x314] ss:$8 sps:$4 sm:$0xff]   ;;  %v5027_v18 = vld [vmem:[#allocation11 + $0x304] ss:$8 sps:$4 sm:$0xff]  }
 0x2d0   :  { %3778 = vmatpush2.bf16.msra.mxu0 %v4923_v16  ;;  %3738 = vmatprep.subr.bf16.mxu1 %v4928_v17  ;;  %v4979_v16 = vld [vmem:[#allocation11 + $0x204] ss:$8 sps:$4 sm:$0xff]   ;;  %v5022_v17 = vld [vmem:[#allocation11 + $0x310] ss:$8 sps:$4 sm:$0xff]   ;;  %v5037_v45 = vld [vmem:[#allocation11 + $0x3c0] ss:$8 sps:$4 sm:$0xff]  }
 0x2d1   :  { %3789 = vmatprep.mubr.bf16.mxu0 %v2931_v19  ;;  %3779 = vmatprep.subr.bf16.mxu0 %v4931_v10  ;;  %v4977_v10 = vld [vmem:[#allocation11 + $0x200] ss:$8 sps:$4 sm:$0xff]   ;;  %v4982_v19 = vld [vmem:[#allocation11 + $0x2f4] ss:$8 sps:$4 sm:$0xff]   ;;  %v4991_v54 = vld [vmem:[#allocation11 + $0x2c4] ss:$8 sps:$4 sm:$0xff]  }
 0x2d3   :  { %3739 = vmatpush2.bf16.msra.mxu1 %v4926_v56  ;;  %v5025_v56 = vld [vmem:[#allocation11 + $0x300] ss:$8 sps:$4 sm:$0xff]  }
 0x2d4   :  { %3780 = vmatpush2.bf16.msra.mxu0 %v4929_v20  ;;  %3740 = vmatprep.subr.bf16.mxu1 %v4934_v22  ;;  %v5030_v20 = vld [vmem:[#allocation11 + $0x3f4] ss:$8 sps:$4 sm:$0xff]   ;;  %v4980_v22 = vld [vmem:[#allocation11 + $0x2f0] ss:$8 sps:$4 sm:$0xff]  }
 0x2d5   :  { %3781 = vmatprep.subr.bf16.mxu0 %v4937_v29  ;;  %v4985_v29 = vld [vmem:[#allocation11 + $0x2e4] ss:$8 sps:$4 sm:$0xff]  }
 0x2d7   :  { %3741 = vmatpush2.bf16.msra.mxu1 %v4932_v31  ;;  %v5033_v31 = vld [vmem:[#allocation11 + $0x3e4] ss:$8 sps:$4 sm:$0xff]  }
 0x2d8   :  { %3782 = vmatpush2.bf16.msra.mxu0 %v4935_v49  ;;  %3742 = vmatprep.subr.bf16.mxu1 %v4940_v32 }
 0x2d9   :  { %3783 = vmatprep.subr.bf16.mxu0 %v4943_v9  ;;  %v4983_v9 = vld [vmem:[#allocation11 + $0x2e0] ss:$8 sps:$4 sm:$0xff]  }
 0x2db   :  { %3743 = vmatpush2.bf16.msra.mxu1 %v4938_v34  ;;  %v4988_v34 = vld [vmem:[#allocation11 + $0x2d4] ss:$8 sps:$4 sm:$0xff]  }
 0x2dc   :  { %3784 = vmatpush2.bf16.msra.mxu0 %v4941_v1  ;;  %3744 = vmatprep.subr.bf16.mxu1 %v4946_v36  ;;  %v5031_v1 = vld [vmem:[#allocation11 + $0x3e0] ss:$8 sps:$4 sm:$0xff]  }
 0x2dd   :  { %3785 = vmatprep.subr.bf16.mxu0 %v4949_v38 }
 0x2df   :  { %3745 = vmatpush2.bf16.msra.mxu1 %v4944_v25 }
 0x2e0   :  { %3786 = vmatpush2.bf16.msra.mxu0 %v4947_v39  ;;  %3746 = vmatprep.subr.bf16.mxu1 %v4952_v40  ;;  %v4986_v39 = vld [vmem:[#allocation11 + $0x2d0] ss:$8 sps:$4 sm:$0xff]  }
 0x2e1   :  { %3787 = vmatprep.subr.bf16.mxu0 %v4955_v41  ;;  %v5034_v41 = vld [vmem:[#allocation11 + $0x3d0] ss:$8 sps:$4 sm:$0xff]  }
 0x2e3   :  { %3747 = vmatpush2.bf16.msra.mxu1 %v4950_v51 }
 0x2e4   :  { %3788 = vmatpush2.bf16.msra.mxu0 %v4953_v43  ;;  %3798 = vmatprep.subr.bf16.mxu1 %v4958_v44  ;;  %v4989_v43 = vld [vmem:[#allocation11 + $0x2c0] ss:$8 sps:$4 sm:$0xff]   ;;  %v4994_v44 = vld [vmem:[#allocation11 + $0x2b4] ss:$8 sps:$4 sm:$0xff]  }
 0x2e5   :  { %3839 = vmatprep.subr.bf16.mxu0 %v5006_v48  ;;  %v5042_v48 = vld [vmem:[#allocation11 + $0x3b4] ss:$8 sps:$4 sm:$0xff]  }
 0x2e6   :  { %3749 = vmatmul.mubr.bf16.vlgmr.msra.gmra.mxu1 %v2928_v52  ;;  %v4997_v52 = vld [vmem:[#allocation11 + $0x2a4] ss:$8 sps:$4 sm:$0xff]  }
 0x2e7   :  { %3790 = vmatmul.mubr.bf16.vlgmr.msra.gmra.mxu0 %v2930_v58  ;;  %3799 = vmatpush1.bf16.msra.mxu1 %v4956_v50  ;;  %v4992_v50 = vld [vmem:[#allocation11 + $0x2b0] ss:$8 sps:$4 sm:$0xff]   ;;  %v4995_v58 = vld [vmem:[#allocation11 + $0x2a0] ss:$8 sps:$4 sm:$0xff]  }
 0x2e8   :  { %3800 = vmatprep.subr.bf16.mxu1 %v4961_v53  ;;  %3840 = vmatpush1.bf16.msra.mxu0 %v5004_v57  ;;  %v5040_v53 = vld [vmem:[#allocation11 + $0x3b0] ss:$8 sps:$4 sm:$0xff]   ;;  %v5045_v57 = vld [vmem:[#allocation11 + $0x3a4] ss:$8 sps:$4 sm:$0xff]  }
 0x2e9   :  { %3841 = vmatprep.subr.bf16.mxu0 %v5009_v60  ;;  %v5000_v60 = vld [vmem:[#allocation11 + $0x294] ss:$8 sps:$4 sm:$0xff]  }
 0x2eb   :  { %3801 = vmatpush1.bf16.msra.mxu1 %v4959_v7  ;;  %v5043_v7 = vld [vmem:[#allocation11 + $0x3a0] ss:$8 sps:$4 sm:$0xff]  }
 0x2ec   :  { %3802 = vmatprep.subr.bf16.mxu1 %v4964_v26  ;;  %3842 = vmatpush1.bf16.msra.mxu0 %v5007_v61  ;;  %v5048_v26 = vld [vmem:[#allocation11 + $0x394] ss:$8 sps:$4 sm:$0xff]   ;;  %v810_v61 = vsub.s32 5, %v5629_v23 }
 0x2ed   :  { %3843 = vmatprep.subr.bf16.mxu0 %v5012_v55  ;;  %v4998_v55 = vld [vmem:[#allocation11 + $0x290] ss:$8 sps:$4 sm:$0xff]  }
 0x2ef   :  { %3803 = vmatpush1.bf16.msra.mxu1 %v4962_v62  ;;  %v5003_v62 = vld [vmem:[#allocation11 + $0x284] ss:$8 sps:$4 sm:$0xff]  }
 0x2f0   :  { %3804 = vmatprep.subr.bf16.mxu1 %v4967_v63  ;;  %3844 = vmatpush1.bf16.msra.mxu0 %v5010_v0  ;;  %v5046_v63 = vld [vmem:[#allocation11 + $0x390] ss:$8 sps:$4 sm:$0xff]   ;;  %v807_v0 = vrot.slane %v5686_v21, %v297_v35 }
 0x2f1   :  { %3845 = vmatprep.subr.bf16.mxu0 %v5015_v2  ;;  %v5051_v2 = vld [vmem:[#allocation11 + $0x384] ss:$8 sps:$4 sm:$0xff]  }
 0x2f3   :  { %3805 = vmatpush1.bf16.msra.mxu1 %v4965_v3  ;;  %v811_v3 = vrot.slane %v5686_v21, %v810_v61 }
 0x2f4   :  { %3806 = vmatprep.subr.bf16.mxu1 %v4970_v4  ;;  %3846 = vmatpush1.bf16.msra.mxu0 %v5013_v5  ;;  %v5001_v4 = vld [vmem:[#allocation11 + $0x280] ss:$8 sps:$4 sm:$0xff]  }
 0x2f5   :  { %3847 = vmatprep.subr.bf16.mxu0 %v5018_v46  ;;  %v5049_v5 = vld [vmem:[#allocation11 + $0x380] ss:$8 sps:$4 sm:$0xff]  }
 0x2f7   :  { %3807 = vmatpush1.bf16.msra.mxu1 %v4968_v28 }
 0x2f8   :  { %3808 = vmatprep.subr.bf16.mxu1 %v4973_v59  ;;  %3848 = vmatpush1.bf16.msra.mxu0 %v5016_v6 }
 0x2f9   :  { %3849 = vmatprep.subr.bf16.mxu0 %v5021_v8 }
 0x2fb   :  { %3809 = vmatpush1.bf16.msra.mxu1 %v4971_v11 }
 0x2fc   :  { %3810 = vmatprep.subr.bf16.mxu1 %v4976_v13  ;;  %3850 = vmatpush1.bf16.msra.mxu0 %v5019_v14 }
 0x2fd   :  { %3851 = vmatprep.subr.bf16.mxu0 %v5024_v15 }
 0x2ff   :  { %3811 = vmatpush1.bf16.msra.mxu1 %v4974_v47 }
 0x300   :  { %3812 = vmatprep.subr.bf16.mxu1 %v4979_v16  ;;  %3852 = vmatpush1.bf16.msra.mxu0 %v5022_v17 }
 0x301   :  { %3853 = vmatprep.subr.bf16.mxu0 %v5027_v18 }
 0x303   :  { %3813 = vmatpush1.bf16.msra.mxu1 %v4977_v10 }
 0x304   :  { %3814 = vmatprep.subr.bf16.mxu1 %v4982_v19  ;;  %3854 = vmatpush1.bf16.msra.mxu0 %v5025_v56 }
 0x305   :  { %3855 = vmatprep.subr.bf16.mxu0 %v5030_v20  ;;  %v814_v20 = vsub.s32 6, %v5629_v23 }
 0x306   :  { %v5725_v49 = vpop.f32.mrf.mxu1 }
 0x307   :  { %v5727_v32 = vpop.f32.mrf.mxu0  ;;  %3815 = vmatpush2.bf16.msra.mxu1 %v4980_v22  ;;  %v2709_v46 = vadd.f32 %v5725_v49, %v807_v0  ;;  %v818_v22 = vsub.s32 7, %v5629_v23 }
 0x308   :  { %v2710_v33 = vpop.f32.mrf.mxu1  ;;  %3816 = vmatprep.subr.bf16.mxu1 %v4985_v29  ;;  %3856 = vmatpush2.bf16.msra.mxu0 %v5028_v30  ;;  %v5080_v29 = vld [vmem:[#allocation10] sm:$0xff] }
 0x309   :  { %v5729_v36 = vpop.f32.mrf.mxu0  ;;  %3857 = vmatprep.subr.bf16.mxu0 %v5033_v31  ;;  %v2711_v28 = vadd.f32 %v2710_v33, %v811_v3  ;;  %v2750_v59 = vadd.f32 %v5727_v32, %v2709_v46  ;;  %v815_v30 = vrot.slane %v5080_v29, %v814_v20  ;;  %v819_v31 = vrot.slane %v5080_v29, %v818_v22 }
 0x30a   :  { %v2712_v38 = vpop.f32.mrf.mxu1 }
 0x30b   :  { %v2753_v25 = vpop.f32.mrf.mxu0  ;;  %3817 = vmatpush2.bf16.msra.mxu1 %v4983_v9  ;;  %v2752_v6 = vadd.f32 %v5729_v36, %v2711_v28 }
 0x30c   :  { %v2713_v40 = vpop.f32.mrf.mxu1  ;;  %3818 = vmatprep.subr.bf16.mxu1 %v4988_v34  ;;  %3858 = vmatpush2.bf16.msra.mxu0 %v5031_v1 }
 0x30d   :  { %v2754_v51 = vpop.f32.mrf.mxu0  ;;  %3859 = vmatprep.subr.bf16.mxu0 %v5036_v37 }
 0x30f   :  { %3819 = vmatpush2.bf16.msra.mxu1 %v4986_v39 }
 0x310   :  { %3820 = vmatprep.subr.bf16.mxu1 %v4991_v54  ;;  %3860 = vmatpush2.bf16.msra.mxu0 %v5034_v41 }
 0x311   :  { %3861 = vmatprep.subr.bf16.mxu0 %v5039_v42 }
 0x313   :  { %3821 = vmatpush2.bf16.msra.mxu1 %v4989_v43 }
 0x314   :  { %3822 = vmatprep.subr.bf16.mxu1 %v4994_v44  ;;  %3862 = vmatpush2.bf16.msra.mxu0 %v5037_v45  ;;  %v5052_v44 = vld [vmem:[#allocation17 + $0x78] sm:$0xff]  }
 0x315   :  { %3863 = vmatprep.subr.bf16.mxu0 %v5042_v48  ;;  %v5053_v45 = vld [vmem:[#allocation17 + $0x38] sm:$0xff]   ;;  %v5054_v48 = vld [vmem:[#allocation17 + $0x70] sm:$0xff]  }
 0x317   :  { %3823 = vmatpush2.bf16.msra.mxu1 %v4992_v50  ;;  %v5055_v50 = vld [vmem:[#allocation17 + $0x30] sm:$0xff]  }
 0x318   :  { %3824 = vmatprep.subr.bf16.mxu1 %v4997_v52  ;;  %3864 = vmatpush2.bf16.msra.mxu0 %v5040_v53  ;;  %v5056_v52 = vld [vmem:[#allocation17 + $0x68] sm:$0xff]  }
 0x319   :  { %3865 = vmatprep.subr.bf16.mxu0 %v5045_v57  ;;  %v5057_v53 = vld [vmem:[#allocation17 + $0x28] sm:$0xff]   ;;  %v5058_v57 = vld [vmem:[#allocation17 + $0x60] sm:$0xff]  }
 0x31b   :  { %3825 = vmatpush2.bf16.msra.mxu1 %v4995_v58  ;;  %v5059_v58 = vld [vmem:[#allocation17 + $0x20] sm:$0xff]  }
 0x31c   :  { %3826 = vmatprep.subr.bf16.mxu1 %v5000_v60  ;;  %3866 = vmatpush2.bf16.msra.mxu0 %v5043_v7  ;;  %v5060_v60 = vld [vmem:[#allocation17 + $0x58] sm:$0xff]  }
 0x31d   :  { %3867 = vmatprep.subr.bf16.mxu0 %v5048_v26  ;;  %v5061_v7 = vld [vmem:[#allocation17 + $0x18] sm:$0xff]  }
 0x31e   :  { %v3064_v26 = vld [vmem:[#allocation13] sm:$0x3] }
 0x31f   :  { %3827 = vmatpush2.bf16.msra.mxu1 %v4998_v55  ;;  %v3069_v61 = vrot.slane %v3064_v26, %v5632_v24  ;;  %v3073_v55 = vrot.slane %v3064_v26, %v5638_v27 }
 0x320   :  { %3828 = vmatprep.subr.bf16.mxu1 %v5003_v62  ;;  %3868 = vmatpush2.bf16.msra.mxu0 %v5046_v63 }
 0x321   :  { %3869 = vmatprep.subr.bf16.mxu0 %v5051_v2 }
 0x323   :  { %3829 = vmatpush2.bf16.msra.mxu1 %v5001_v4 }
 0x324   :  { %3870 = vmatpush2.bf16.msra.mxu0 %v5049_v5  ;;  %4768 = vmatprep.subr.bf16.mxu1 %v5052_v44  ;;  %v5074_v44 = vld [vmem:[%s5797_s13 + $0x8] sm:$0xff]  }
 0x325   :  { %4805 = vmatprep.subr.bf16.mxu0 %v5465_v12 }
 0x326   :  { %v2790_v35 = vpop.f32.mrf.mxu1 }
 0x327   :  { %v2791_v8 = vadd.f32 %v2790_v35, %v2750_v59 }
 0x328   :  { %v2792_v21 = vpop.f32.mrf.mxu1 }
 0x329   :  { %v2793_v11 = vadd.f32 %v2792_v21, %v2752_v6  ;;  %v2924_v13 = vmax.f32 %v2791_v8, 0.0  ;;  %v5062_v8 = vld [vmem:[#allocation17 + $0x50] sm:$0xff]  }
 0x32a   :  { %v2794_v14 = vpop.f32.mrf.mxu1  ;;  %v5063_v21 = vld [vmem:[#allocation17 + $0x10] sm:$0xff]  }
 0x32b   :  { %v2925_v15 = vmax.f32 %v2793_v11, 0.0  ;;  %v2932_v17 = vpack.c.bf16 %v2924_v13, %v2924_v13  ;;  %v5064_v11 = vld [vmem:[#allocation17 + $0x48] sm:$0xff]   ;;  %v5066_v14 = vld [vmem:[#allocation17 + $0x40] sm:$0xff]  }
 0x32c   :  { %v2795_v47 = vpop.f32.mrf.mxu1  ;;  %v5065_v13 = vld [vmem:[#allocation17 + $0x8] sm:$0xff]  }
 0x32d   :  { %v2933_v16 = vpack.c.bf16 %v2925_v15, %v2925_v15  ;;  %v5067_v15 = vld [vmem:[#allocation17] sm:$0xff]  }
 0x32e   :  { %v5068_v47 = vld [vmem:[%s5797_s13 + $0x38] sm:$0xff]  }
 0x32f   :  { %3830 = vmatprep.mubr.bf16.mxu1 %v2933_v16  ;;  %v5069_v16 = vld [vmem:[%s5797_s13 + $0x30] sm:$0xff]  }
 0x330   :  { %3831 = vmatmul.mubr.bf16.vlgmr.msra.gmra.mxu1 %v2932_v17  ;;  %v5070_v17 = vld [vmem:[%s5797_s13 + $0x28] sm:$0xff]  }
 0x331   :  { %4769 = vmatpush3.bf16.msra.mxu1 %v5053_v45  ;;  %v5075_v45 = vld [vmem:[%s5797_s13] sm:$0xff]  }
 0x332   :  { %4770 = vmatprep.subr.bf16.mxu1 %v5054_v48 }
 0x335   :  { %4771 = vmatpush3.bf16.msra.mxu1 %v5055_v50  ;;  %v4734_v50 = vld [vmem:[#allocation19] ss:$0 sm:$0xff] }
 0x336   :  { %4772 = vmatprep.subr.bf16.mxu1 %v5056_v52 }
 0x339   :  { %4773 = vmatpush3.bf16.msra.mxu1 %v5057_v53 }
 0x33a   :  { %4774 = vmatprep.subr.bf16.mxu1 %v5058_v57  ;;  %v4751_v57 = vld [vmem:[#allocation20] ss:$0 sm:$0xff] }
 0x33d   :  { %4775 = vmatpush3.bf16.msra.mxu1 %v5059_v58 }
 0x33e   :  { %4776 = vmatprep.subr.bf16.mxu1 %v5060_v60 }
 0x341   :  { %4777 = vmatpush3.bf16.msra.mxu1 %v5061_v7  ;;  %v4752_v7 = vld [vmem:[#allocation22] ss:$0 sm:$0xff] }
 0x342   :  { %4778 = vmatprep.subr.bf16.mxu1 %v5062_v8 }
 0x345   :  { %4779 = vmatpush3.bf16.msra.mxu1 %v5063_v21 }
 0x346   :  { %4780 = vmatprep.subr.bf16.mxu1 %v5064_v11 }
 0x347   :  { %v2831_v18 = vpop.f32.mrf.mxu0 }
 0x348   :  { %v2832_v49 = vadd.f32 %v2831_v18, %v815_v30  ;;  %v5071_v18 = vld [vmem:[%s5797_s13 + $0x20] sm:$0xff]   ;;  %v3880_v30 = vld [vmem:[#allocation14] sm:$0x3] }
 0x349   :  { %v2833_v10 = vpop.f32.mrf.mxu0  ;;  %4781 = vmatpush3.bf16.msra.mxu1 %v5065_v13  ;;  %v4765_v13 = vld [vmem:[#allocation2] ss:$0 sm:$0xff] }
 0x34a   :  { %v2834_v9 = vadd.f32 %v2833_v10, %v819_v31  ;;  %4782 = vmatprep.subr.bf16.mxu1 %v5066_v14  ;;  %v3894_v31 = vld [vmem:[#allocation16] sm:$0x3] }
 0x34b   :  { %v2835_v19 = vpop.f32.mrf.mxu0 }
 0x34d   :  { %v2836_v56 = vpop.f32.mrf.mxu0  ;;  %4783 = vmatpush3.bf16.msra.mxu1 %v5067_v15 }
 0x366   :  { %v2872_v32 = vpop.f32.mrf.mxu1 }
 0x367   :  { %v2873_v33 = vadd.f32 %v2872_v32, %v2832_v49  ;;  %v2913_v34 = vpop.f32.mrf.mxu0  ;;  %v3885_v49 = vrot.slane %v3880_v30, %v5632_v24 }
 0x368   :  { %v2874_v1 = vpop.f32.mrf.mxu1 }
 0x369   :  { %v2914_v36 = vadd.f32 %v2913_v34, %v2873_v33  ;;  %v2875_v37 = vadd.f32 %v2874_v1, %v2834_v9  ;;  %v2915_v38 = vpop.f32.mrf.mxu0  ;;  %v3899_v33 = vrot.slane %v3894_v31, %v5632_v24  ;;  %v3889_v34 = vrot.slane %v3880_v30, %v5638_v27  ;;  %v5072_v24 = vld [vmem:[%s5797_s13 + $0x18] sm:$0xff]  }
 0x36a   :  { %v2876_v25 = vpop.f32.mrf.mxu1 }
 0x36b   :  { %v2916_v39 = vadd.f32 %v2915_v38, %v2875_v37  ;;  %v2917_v40 = vpop.f32.mrf.mxu0  ;;  %v2926_v54 = vmax.f32 %v2914_v36, 0.0  ;;  %v3903_v38 = vrot.slane %v3894_v31, %v5638_v27  ;;  %v5073_v27 = vld [vmem:[%s5797_s13 + $0x10] sm:$0xff]  }
 0x36c   :  { %v2877_v41 = vpop.f32.mrf.mxu1 }
 0x36d   :  { %v2927_v51 = vmax.f32 %v2916_v39, 0.0  ;;  %v2918_v42 = vpop.f32.mrf.mxu0  ;;  %v2934_v43 = vpack.c.bf16 %v2926_v54, %v2926_v54 }
 0x36f   :  { %v2935_v23 = vpack.c.bf16 %v2927_v51, %v2927_v51 }
 0x371   :  { %3871 = vmatprep.mubr.bf16.mxu0 %v2935_v23 }
 0x372   :  { %3872 = vmatmul.mubr.bf16.vlgmr.msra.gmra.mxu0 %v2934_v43 }
 0x373   :  { %4821 = vmatprep.mubr.msk.bf16.mxu0 %vm5466_vm1, %v5465_v12  ;;  %4806 = vmatpush3.bf16.msra.mxu0 %v5068_v47 }
 0x374   :  { %4807 = vmatprep.subr.bf16.mxu0 %v5465_v12 }
 0x377   :  { %4808 = vmatpush3.bf16.msra.mxu0 %v5069_v16 }
 0x378   :  { %4809 = vmatprep.subr.bf16.mxu0 %v5465_v12 }
 0x37b   :  { %4810 = vmatpush3.bf16.msra.mxu0 %v5070_v17 }
 0x37c   :  { %4811 = vmatprep.subr.bf16.mxu0 %v5465_v12 }
 0x37f   :  { %4812 = vmatpush3.bf16.msra.mxu0 %v5071_v18 }
 0x380   :  { %4813 = vmatprep.subr.bf16.mxu0 %v5465_v12 }
 0x383   :  { %4814 = vmatpush3.bf16.msra.mxu0 %v5072_v24 }
 0x384   :  { %4815 = vmatprep.subr.bf16.mxu0 %v5465_v12 }
 0x387   :  { %4816 = vmatpush3.bf16.msra.mxu0 %v5073_v27 }
 0x388   :  { %4817 = vmatprep.subr.bf16.mxu0 %v5465_v12 }
 0x38b   :  { %4818 = vmatpush3.bf16.msra.mxu0 %v5074_v44 }
 0x38c   :  { %4819 = vmatprep.subr.bf16.mxu0 %v5465_v12  ;;  %v4753_v12 = vld [vmem:[#allocation23] ss:$0 sm:$0xff] }
 0x38f   :  { %4820 = vmatpush3.bf16.msra.mxu0 %v5075_v45 }
 0x3a6   :  { %v3750_v62 = vpop.f32.mrf.mxu1 }
 0x3a7   :  { %v3751_v63 = vadd.f32 %v3750_v62, %v3069_v61  ;;  %v3791_v0 = vpop.f32.mrf.mxu0 }
 0x3a8   :  { %v3752_v2 = vpop.f32.mrf.mxu1 }
 0x3a9   :  { %v3792_v3 = vadd.f32 %v3791_v0, %v3751_v63  ;;  %v3753_v4 = vadd.f32 %v3752_v2, %v3073_v55  ;;  %v3793_v5 = vpop.f32.mrf.mxu0  ;;  %v4762_v2 = vld [vmem:[#allocation25] ss:$0 sm:$0xff] }
 0x3aa   :  { %v3754_v46 = vpop.f32.mrf.mxu1 }
 0x3ab   :  { %v3794_v28 = vadd.f32 %v3793_v5, %v3753_v4  ;;  %v3795_v59 = vpop.f32.mrf.mxu0  ;;  %v4763_v5 = vld [vmem:[#allocation26] ss:$0 sm:$0xff] }
 0x3ac   :  { %v3755_v35 = vpop.f32.mrf.mxu1 }
 0x3ad   :  { %v3796_v6 = vpop.f32.mrf.mxu0 }
 0x3ae   :  { %v4764_v6 = vld [vmem:[#allocation28] ss:$0 sm:$0xff] }
 0x3f0   :  { %v3832_v10 = vpop.f32.mrf.mxu1 }
 0x3f1   :  { %v3833_v19 = vadd.f32 %v3832_v10, %v3792_v3 }
 0x3f2   :  { %v3834_v56 = vpop.f32.mrf.mxu1 }
 0x3f3   :  { %v3835_v20 = vadd.f32 %v3834_v56, %v3794_v28 }
 0x3f4   :  { %v3836_v22 = vpop.f32.mrf.mxu1 }
 0x3f6   :  { %v3837_v29 = vpop.f32.mrf.mxu1 }
 0x432   :  { %v3873_v32 = vpop.f32.mrf.mxu0 }
 0x433   :  { %v3874_v9 = vadd.f32 %v3873_v32, %v3833_v19 }
 0x434   :  { %v3875_v1 = vpop.f32.mrf.mxu0 }
 0x435   :  { %v3892_v36 = vmul.f32 %v3885_v49, %v3874_v9  ;;  %v3876_v37 = vadd.f32 %v3875_v1, %v3835_v20 }
 0x436   :  { %v3877_v25 = vpop.f32.mrf.mxu0 }
 0x437   :  { %v3906_v39 = vadd.f32 %v3899_v33, %v3892_v36  ;;  %v3893_v40 = vmul.f32 %v3889_v34, %v3876_v37 }
 0x438   :  { %v3878_v54 = vpop.f32.mrf.mxu0 }
 0x439   :  { %v3907_v41 = vadd.f32 %v3903_v38, %v3893_v40  ;;  %v3908_v51 = vmax.f32 %v3906_v39, 0.0 }
 0x43b   :  { %v3909_v42 = vmax.f32 %v3907_v41, 0.0  ;;  %v3910_v43 = vpack.c.bf16 %v3908_v51, %v3908_v51 }
 0x43d   :  { %v3911_v23 = vpack.c.bf16 %v3909_v42, %v3909_v42 }
 0x43f   :  { %4079 = vmatprep.mubr.bf16.mxu1 %v3911_v23 }
 0x440   :  { %4080 = vmatmul.mubr.bf16.vlgmr.msra.gmra.mxu1 %v3910_v43 }
 0x500   :  { %v4784_v48 = vpop.f32.mrf.mxu1 }
 0x502   :  { %v4785_v52 = vpop.f32.mrf.mxu1 }
 0x503   :  { %v4786_v53 = vadd.f32 %v4785_v52, %v4784_v48 }
 0x504   :  { %v4787_v58 = vpop.f32.mrf.mxu1 }
 0x505   :  { %v4082_v60 = vadd.f32 %v4786_v53, %v4734_v50 }
 0x506   :  { %v4788_v26 = vpop.f32.mrf.mxu1 }
 0x507   :  { %v4094_v61 = vmul.f32 %v4751_v57, %v4082_v60 }
 0x509   :  { %v4102_v55 = vadd.f32 %v4752_v7, %v4094_v61 }
 0x50b   :  { %v4103_v62 = vmax.f32 %v4102_v55, 0.0 }
 0x50d   :  { %v4104_v63 = vpack.c.bf16 %v4103_v62, %v4103_v62 }
 0x50f   :  { %4822 = vmatmul.mubr.bf16.vlgmr.msra.gmra.mxu0 %v4104_v63 }
 0x5cf   :  { %v4210_v0 = vpop.f32.mrf.mxu0 }
 0x5d0   :  { %v4211_v3 = vadd.f32 %v4753_v12, %v4210_v0 }
 0x5d1   :  { %v4823_v4 = vpop.f32.mrf.mxu0 }
 0x5d2   :  { %v4223_v46 = vmul.f32 %v4762_v2, %v4211_v3 }
 0x5d3   :  { %v4213_v28 = vpop.f32.mrf.mxu0 }
 0x5d4   :  { %v4231_v59 = vadd.f32 %v4763_v5, %v4223_v46 }
 0x5d5   :  { %v4824_v35 = vpop.f32.mrf.mxu0 }
 0x5d6   :  { %v4232_v8 = vmax.f32 %v4231_v59, 0.0 }
 0x5d8   :  { %v4240_v21 = vmul.f32 %v4764_v6, %v4232_v8 }
 0x5da   :  { %v4242_v11 = vsel %vm4241_vm2, %v4240_v21, 0.0 }
 0x5db   :  { %4243 = vadd.xlane.f32.xlu0 %v4242_v11 }
 0x664   :  { %v4244_v14 = vpop.xlane.xlu0 %4243 }
 0x665   :  { %v4252_v15 = vadd.f32 %v4765_v13, %v4244_v14 }
 0x667   :  { %v4253_v47 = vand.u32 2147483647, %v4252_v15  ;;  %vm4257_vm4 = vcmp.ge.f32.partialorder %v4252_v15, 0.0 }
 0x669   :  { %v4254_v16 = vsub.f32 0.0, %v4253_v47 }
 0x66b   :  { %v4255_v17 = vmul.f32 1.442695, %v4254_v16 }
 0x66d   :  { %5076 = vpow2.f32 %v4255_v17 }
 0x67a   :  { %v5077_v18 = vpop.eup %5076 }
 0x67b   :  { %v4258_v10 = vadd.f32 1.0, %v5077_v18 }
 0x67d   :  { %5078 = vrcp.f32 %v4258_v10 }
 0x68a   :  { %v5079_v19 = vpop.eup %5078 }
 0x68b   :  { %v4261_v56 = vmul.f32 %v5079_v19, %v5077_v18 }
 0x68d   :  { %v4262_v20 = vsel %vm4257_vm4, %v5079_v19, %v4261_v56 }
 0x68e   :  { %4264 = vst.msk [vmem:[%s5803_s19] sm:$0x3] %vm4263_vm3, %v4262_v20 }
 0x68f   :  { %4269 = vsyncpa [#allocation4], 1 }
 0x690   :  { %4270 = vsyncpa [#allocation6], 1 }
 0x691   :  { %4271 = vsyncpa [#allocation9], 1 }
 0x692   :  { %4272 = vsyncpa [#allocation12], 1 }
 0x693   :  { %4273 = vsyncpa [#allocation15], 1 }
 0x694   :  { %4274 = vsyncpa [#allocation18], 1 }
 0x695   :  { %4275 = vsyncpa [#allocation21], 1 }
 0x696   :  { %4276 = vsyncpa [#allocation24], 1 }
 0x697   :  { %4277 = vsyncpa [#allocation27], 1 }

</bundles_post_ra>
